<compile_context>
chip_gen: v7x
topology: tpu7x:2x2x1
jax: 0.10.0
libtpu: 0.0.40
codegen_flags: <defaults>
</compile_context>

<pallas_src>
import jax
import jax.numpy as jnp
from jax import lax
from jax.experimental import pallas as pl
from jax.experimental.pallas import tpu as pltpu


# --------------------------- in-kernel building blocks ----------------------

def _conv_bn_relu_pool(x_ref, w_ref, b_ref, store):
    """Conv2d(3x3, valid) [BN folded] + bias + ReLU + MaxPool2d(2), one image.

    x_ref : (1, Hi, Wi, Cin)  VMEM ref (input activation, f32)
    w_ref : (9*Cin, Cout)     VMEM ref (HWIO weights flattened, BN scale folded)
    b_ref : (1, Cout)         VMEM ref (conv bias + BN shift folded)
    store : callback store(hp, pooled) receiving each pooled row (Wp, Cout) f32
    """
    _, Hi, Wi, Cin = x_ref.shape
    Cout = w_ref.shape[1]
    Ho, Wo = Hi - 2, Wi - 2
    Hp, Wp = Ho // 2, Wo // 2

    bias = b_ref[...]                                        # (1, Cout) f32

    # Even/odd column selectors: the W-direction half of the 2x2 max-pool is
    # done as two tiny exact 0/1 selection matmuls on the MXU, avoiding
    # stride-2 slicing along the sublane axis.
    rows = lax.broadcasted_iota(jnp.int32, (Wp, Wo), 0)
    cols = lax.broadcasted_iota(jnp.int32, (Wp, Wo), 1)
    sel_even = (cols == 2 * rows).astype(jnp.float32)        # (Wp, Wo)
    sel_odd = (cols == 2 * rows + 1).astype(jnp.float32)

    def body(hp, carry):
        # Conv output rows 2*hp and 2*hp+1 (the pair consumed by the pool).
        y0 = jnp.zeros((Wo, Cout), jnp.float32)
        y1 = jnp.zeros((Wo, Cout), jnp.float32)
        for ky in range(3):
            row0 = x_ref[0, 2 * hp + ky, :, :]               # (Wi, Cin) f32
            row1 = x_ref[0, 2 * hp + 1 + ky, :, :]
            for kx in range(3):
                tap = 3 * ky + kx
                wt = w_ref[tap * Cin:(tap + 1) * Cin, :].astype(jnp.bfloat16)
                s0 = row0[kx:kx + Wo, :].astype(jnp.bfloat16)
                s1 = row1[kx:kx + Wo, :].astype(jnp.bfloat16)
                y0 = y0 + jnp.dot(s0, wt, preferred_element_type=jnp.float32)
                y1 = y1 + jnp.dot(s1, wt, preferred_element_type=jnp.float32)
        y0 = jnp.maximum(y0 + bias, 0.0)                     # bias + ReLU
        y1 = jnp.maximum(y1 + bias, 0.0)
        m = jnp.maximum(y0, y1)                              # pool over H pair
        pooled = jnp.maximum(                                # pool over W pairs
            jnp.dot(sel_even, m, preferred_element_type=jnp.float32),
            jnp.dot(sel_odd, m, preferred_element_type=jnp.float32))
        store(hp, pooled)                                    # (Wp, Cout) f32
        return carry

    lax.fori_loop(0, Hp, body, 0)


def mynet_kernel(x_ref, w1_ref, b1_ref, w2_ref, b2_ref, w3_ref, b3_ref,
                 fcw_ref, fcb_ref, out_ref, a1_ref, a2_ref, g_ref):
    # conv1 block: (1, 32, 32, 3) -> a1 (1, 15, 15, 32), stays in VMEM.
    def store_a1(hp, pooled):
        a1_ref[0, hp, :, :] = pooled
    _conv_bn_relu_pool(x_ref, w1_ref, b1_ref, store_a1)

    # conv2 block: a1 -> a2 (1, 6, 6, 64), stays in VMEM.
    def store_a2(hp, pooled):
        a2_ref[0, hp, :, :] = pooled
    _conv_bn_relu_pool(a1_ref, w2_ref, b2_ref, store_a2)

    # conv3 block: a2 -> running channel sum g (1, 128); the global average
    # pool is fused directly into this block's epilogue.
    g_ref[...] = jnp.zeros_like(g_ref)

    def store_g(hp, pooled):
        g_ref[...] = g_ref[...] + jnp.sum(pooled, axis=0, keepdims=True)
    _conv_bn_relu_pool(a2_ref, w3_ref, b3_ref, store_g)

    # AdaptiveAvgPool2d(1) (divide the accumulated sum) + Linear(128, 10).
    hp3 = (a2_ref.shape[1] - 2) // 2
    wp3 = (a2_ref.shape[2] - 2) // 2
    mean = g_ref[...] * (1.0 / float(hp3 * wp3))             # (1, 128)
    logits = jnp.dot(mean, fcw_ref[...],
                     preferred_element_type=jnp.float32) + fcb_ref[...]
    out_ref[0, :, :] = logits                                # (1, 10)


# ------------------------------ JAX wrappers --------------------------------

def init_params(key):
    ks = jax.random.split(key, 14)
    eps = 1e-5
    params = {}
    i = 0
    for idx, (cin, cout) in enumerate([(3, 32), (32, 64), (64, 128)], start=1):
        w = 0.1 * jax.random.normal(ks[i], (3, 3, cin, cout), jnp.float32); i += 1
        conv_b = 0.1 * jax.random.normal(ks[i], (cout,), jnp.float32); i += 1
        gamma = 1.0 + 0.1 * jax.random.normal(ks[i], (cout,), jnp.float32); i += 1
        beta = 0.1 * jax.random.normal(ks[i], (cout,), jnp.float32); i += 1
        running_mean = jnp.zeros((cout,), jnp.float32)
        running_var = jnp.ones((cout,), jnp.float32)
        scale = gamma * jax.lax.rsqrt(running_var + eps)
        # Fold the BN scale into the conv weight columns, BN shift into bias.
        w2d = w.reshape(9 * cin, cout) * scale[None, :]         # (9*Cin, Cout)
        bias = (conv_b - running_mean) * scale + beta
        params[f"conv{idx}"] = (w2d, bias.reshape(1, cout))
    fc_w = 0.1 * jax.random.normal(ks[i], (128, 10), jnp.float32); i += 1
    fc_b = 0.1 * jax.random.normal(ks[i], (10,), jnp.float32)
    params["fc"] = (fc_w, fc_b.reshape(1, 10))
    return params


@jax.jit
def mynet_forward(x_nchw, params):
    # PyTorch-style NCHW -> NHWC. This is a single ~24 KB copy at batch=2;
    # everything after it is one fused Pallas kernel.
    x = jnp.transpose(x_nchw, (0, 2, 3, 1)).astype(jnp.float32)
    N, H, W, Cin = x.shape
    w1, b1 = params["conv1"]
    w2, b2 = params["conv2"]
    w3, b3 = params["conv3"]
    fcw, fcb = params["fc"]
    c1, c2, c3 = w1.shape[1], w2.shape[1], w3.shape[1]
    # Pooled spatial sizes after each (3x3 valid conv, 2x2 floor maxpool).
    ph1, pw1 = (H - 2) // 2, (W - 2) // 2       # 15, 15
    ph2, pw2 = (ph1 - 2) // 2, (pw1 - 2) // 2   # 6, 6

    out = pl.pallas_call(
        mynet_kernel,
        out_shape=jax.ShapeDtypeStruct((N, 1, 10), jnp.float32),
        grid=(N,),
        in_specs=[
            pl.BlockSpec((1, H, W, Cin), lambda i: (i, 0, 0, 0)),
            pl.BlockSpec(w1.shape, lambda i: (0, 0)),
            pl.BlockSpec(b1.shape, lambda i: (0, 0)),
            pl.BlockSpec(w2.shape, lambda i: (0, 0)),
            pl.BlockSpec(b2.shape, lambda i: (0, 0)),
            pl.BlockSpec(w3.shape, lambda i: (0, 0)),
            pl.BlockSpec(b3.shape, lambda i: (0, 0)),
            pl.BlockSpec(fcw.shape, lambda i: (0, 0)),
            pl.BlockSpec(fcb.shape, lambda i: (0, 0)),
        ],
        out_specs=pl.BlockSpec((1, 1, 10), lambda i: (i, 0, 0)),
        scratch_shapes=[
            pltpu.VMEM((1, ph1, pw1, c1), jnp.float32),   # conv1 block output
            pltpu.VMEM((1, ph2, pw2, c2), jnp.float32),   # conv2 block output
            pltpu.VMEM((1, c3), jnp.float32),             # avg-pool accumulator
        ],
        compiler_params=pltpu.CompilerParams(
            dimension_semantics=("parallel",),
        ),
    )(x, w1, b1, w2, b2, w3, b3, fcw, fcb)
    return out.reshape(N, 10)


if __name__ == "__main__":
    key = jax.random.PRNGKey(0)
    k_params, k_x = jax.random.split(key)
    params = init_params(k_params)
    # Small CIFAR-like input: (batch=2, channels=3, 32, 32), NCHW like PyTorch.
    x = jax.random.normal(k_x, (2, 3, 32, 32), jnp.float32)
    logits = mynet_forward(x, params)
    jax.block_until_ready(logits)
    assert logits.shape == (2, 10)
    assert bool(jnp.all(jnp.isfinite(logits)))
    print("KERNEL_OK")
</pallas_src>

<mosaic_0001>
module attributes {stable_mosaic.version = 11 : i64} {
  func.func @mynet_kernel(%arg0: i32, %arg1: memref<1x32x32x3xf32, #tpu.memory_space<vmem>>, %arg2: memref<27x32xf32, #tpu.memory_space<vmem>>, %arg3: memref<1x32xf32, #tpu.memory_space<vmem>>, %arg4: memref<288x64xf32, #tpu.memory_space<vmem>>, %arg5: memref<1x64xf32, #tpu.memory_space<vmem>>, %arg6: memref<576x128xf32, #tpu.memory_space<vmem>>, %arg7: memref<1x128xf32, #tpu.memory_space<vmem>>, %arg8: memref<128x10xf32, #tpu.memory_space<vmem>>, %arg9: memref<1x10xf32, #tpu.memory_space<vmem>>, %arg10: memref<1x1x10xf32, #tpu.memory_space<vmem>>, %arg11: memref<1x15x15x32xf32, #tpu.memory_space<vmem>>, %arg12: memref<1x6x6x64xf32, #tpu.memory_space<vmem>>, %arg13: memref<1x128xf32, #tpu.memory_space<vmem>>) attributes {dimension_semantics = [#tpu.dimension_semantics<parallel>], iteration_bounds = array<i64: 2>, scalar_prefetch = 0 : i64, scratch_operands = 3 : i64, tpu.core_type = #tpu.core_type<tc>, window_params = [{transform_indices = @transform_0, window_bounds = array<i64: 1, 32, 32, 3>}, {pipeline_mode = #tpu.pipeline_mode<synchronous>, transform_indices = @transform_1, window_bounds = array<i64: 27, 32>}, {pipeline_mode = #tpu.pipeline_mode<synchronous>, transform_indices = @transform_2, window_bounds = array<i64: 1, 32>}, {pipeline_mode = #tpu.pipeline_mode<synchronous>, transform_indices = @transform_3, window_bounds = array<i64: 288, 64>}, {pipeline_mode = #tpu.pipeline_mode<synchronous>, transform_indices = @transform_4, window_bounds = array<i64: 1, 64>}, {pipeline_mode = #tpu.pipeline_mode<synchronous>, transform_indices = @transform_5, window_bounds = array<i64: 576, 128>}, {pipeline_mode = #tpu.pipeline_mode<synchronous>, transform_indices = @transform_6, window_bounds = array<i64: 1, 128>}, {pipeline_mode = #tpu.pipeline_mode<synchronous>, transform_indices = @transform_7, window_bounds = array<i64: 128, 10>}, {pipeline_mode = #tpu.pipeline_mode<synchronous>, transform_indices = @transform_8, window_bounds = array<i64: 1, 10>}, {transform_indices = @transform_9, window_bounds = array<i64: 1, 1, 10>}]} {
    %c0 = arith.constant 0 : index
    %c0_0 = arith.constant 0 : index
    %0 = vector.load %arg3[%c0, %c0_0] : memref<1x32xf32, #tpu.memory_space<vmem>>, vector<1x32xf32>
    %1 = tpu.iota {dimensions = array<i32: 0>} : vector<15x30xi32>
    %2 = tpu.iota {dimensions = array<i32: 1>} : vector<15x30xi32>
    %c2_i32 = arith.constant 2 : i32
    %3 = vector.broadcast %c2_i32 : i32 to vector<15x30xi32>
    %4 = arith.muli %3, %1 : vector<15x30xi32>
    %5 = arith.cmpi eq, %2, %4 : vector<15x30xi32>
    %6 = arith.extui %5 : vector<15x30xi1> to vector<15x30xi32>
    %7 = arith.sitofp %6 : vector<15x30xi32> to vector<15x30xf32>
    %c2_i32_1 = arith.constant 2 : i32
    %8 = vector.broadcast %c2_i32_1 : i32 to vector<15x30xi32>
    %9 = arith.muli %8, %1 : vector<15x30xi32>
    %c1_i32 = arith.constant 1 : i32
    %10 = vector.broadcast %c1_i32 : i32 to vector<15x30xi32>
    %11 = arith.addi %9, %10 : vector<15x30xi32>
    %12 = arith.cmpi eq, %2, %11 : vector<15x30xi32>
    %13 = arith.extui %12 : vector<15x30xi1> to vector<15x30xi32>
    %14 = arith.sitofp %13 : vector<15x30xi32> to vector<15x30xf32>
    %c0_i32 = arith.constant 0 : i32
    %c15_i32 = arith.constant 15 : i32
    %15 = arith.addi %c0_i32, %c15_i32 : i32
    %c1_i32_2 = arith.constant 1 : i32
    scf.for %arg14 = %c0_i32 to %15 step %c1_i32_2  : i32 {
      %cst_34 = arith.constant 0.000000e+00 : f32
      %60 = vector.broadcast %cst_34 : f32 to vector<30x32xf32>
      %cst_35 = arith.constant 0.000000e+00 : f32
      %61 = vector.broadcast %cst_35 : f32 to vector<30x32xf32>
      %c2_i32_36 = arith.constant 2 : i32
      %62 = arith.muli %c2_i32_36, %arg14 : i32
      %c0_i32_37 = arith.constant 0 : i32
      %63 = arith.addi %62, %c0_i32_37 : i32
      %c0_38 = arith.constant 0 : index
      %64 = arith.index_cast %63 : i32 to index
      %c0_39 = arith.constant 0 : index
      %c0_40 = arith.constant 0 : index
      %65 = vector.load %arg1[%c0_38, %64, %c0_39, %c0_40] : memref<1x32x32x3xf32, #tpu.memory_space<vmem>>, vector<1x1x32x3xf32>
      %66 = vector.shape_cast %65 : vector<1x1x32x3xf32> to vector<32x3xf32>
      %c2_i32_41 = arith.constant 2 : i32
      %67 = arith.muli %c2_i32_41, %arg14 : i32
      %c1_i32_42 = arith.constant 1 : i32
      %68 = arith.addi %67, %c1_i32_42 : i32
      %c0_i32_43 = arith.constant 0 : i32
      %69 = arith.addi %68, %c0_i32_43 : i32
      %c0_44 = arith.constant 0 : index
      %70 = arith.index_cast %69 : i32 to index
      %c0_45 = arith.constant 0 : index
      %c0_46 = arith.constant 0 : index
      %71 = vector.load %arg1[%c0_44, %70, %c0_45, %c0_46] : memref<1x32x32x3xf32, #tpu.memory_space<vmem>>, vector<1x1x32x3xf32>
      %72 = vector.shape_cast %71 : vector<1x1x32x3xf32> to vector<32x3xf32>
      %c0_47 = arith.constant 0 : index
      %c0_48 = arith.constant 0 : index
      %73 = vector.load %arg2[%c0_47, %c0_48] : memref<27x32xf32, #tpu.memory_space<vmem>>, vector<3x32xf32>
      %74 = arith.truncf %73 : vector<3x32xf32> to vector<3x32xbf16>
      %75 = vector.extract_strided_slice %66 {offsets = [0, 0], sizes = [30, 3], strides = [1, 1]} : vector<32x3xf32> to vector<30x3xf32>
      %76 = arith.truncf %75 : vector<30x3xf32> to vector<30x3xbf16>
      %77 = vector.extract_strided_slice %72 {offsets = [0, 0], sizes = [30, 3], strides = [1, 1]} : vector<32x3xf32> to vector<30x3xf32>
      %78 = arith.truncf %77 : vector<30x3xf32> to vector<30x3xbf16>
      %cst_49 = arith.constant dense<0.000000e+00> : vector<30x32xf32>
      %79 = tpu.matmul %76, %74, %cst_49 {dimension_numbers = #tpu.dot_dimension_numbers<[1], [0], [0], [1], [0, 0, 1, 1], [], []>} : vector<30x3xbf16>, vector<3x32xbf16>, vector<30x32xf32> -> vector<30x32xf32>
      %80 = arith.addf %60, %79 : vector<30x32xf32>
      %cst_50 = arith.constant dense<0.000000e+00> : vector<30x32xf32>
      %81 = tpu.matmul %78, %74, %cst_50 {dimension_numbers = #tpu.dot_dimension_numbers<[1], [0], [0], [1], [0, 0, 1, 1], [], []>} : vector<30x3xbf16>, vector<3x32xbf16>, vector<30x32xf32> -> vector<30x32xf32>
      %82 = arith.addf %61, %81 : vector<30x32xf32>
      %c3 = arith.constant 3 : index
      %c0_51 = arith.constant 0 : index
      %83 = vector.load %arg2[%c3, %c0_51] : memref<27x32xf32, #tpu.memory_space<vmem>>, vector<3x32xf32>
      %84 = arith.truncf %83 : vector<3x32xf32> to vector<3x32xbf16>
      %85 = vector.extract_strided_slice %66 {offsets = [1, 0], sizes = [30, 3], strides = [1, 1]} : vector<32x3xf32> to vector<30x3xf32>
      %86 = arith.truncf %85 : vector<30x3xf32> to vector<30x3xbf16>
      %87 = vector.extract_strided_slice %72 {offsets = [1, 0], sizes = [30, 3], strides = [1, 1]} : vector<32x3xf32> to vector<30x3xf32>
      %88 = arith.truncf %87 : vector<30x3xf32> to vector<30x3xbf16>
      %cst_52 = arith.constant dense<0.000000e+00> : vector<30x32xf32>
      %89 = tpu.matmul %86, %84, %cst_52 {dimension_numbers = #tpu.dot_dimension_numbers<[1], [0], [0], [1], [0, 0, 1, 1], [], []>} : vector<30x3xbf16>, vector<3x32xbf16>, vector<30x32xf32> -> vector<30x32xf32>
      %90 = arith.addf %80, %89 : vector<30x32xf32>
      %cst_53 = arith.constant dense<0.000000e+00> : vector<30x32xf32>
      %91 = tpu.matmul %88, %84, %cst_53 {dimension_numbers = #tpu.dot_dimension_numbers<[1], [0], [0], [1], [0, 0, 1, 1], [], []>} : vector<30x3xbf16>, vector<3x32xbf16>, vector<30x32xf32> -> vector<30x32xf32>
      %92 = arith.addf %82, %91 : vector<30x32xf32>
      %c6 = arith.constant 6 : index
      %c0_54 = arith.constant 0 : index
      %93 = vector.load %arg2[%c6, %c0_54] : memref<27x32xf32, #tpu.memory_space<vmem>>, vector<3x32xf32>
      %94 = arith.truncf %93 : vector<3x32xf32> to vector<3x32xbf16>
      %95 = vector.extract_strided_slice %66 {offsets = [2, 0], sizes = [30, 3], strides = [1, 1]} : vector<32x3xf32> to vector<30x3xf32>
      %96 = arith.truncf %95 : vector<30x3xf32> to vector<30x3xbf16>
      %97 = vector.extract_strided_slice %72 {offsets = [2, 0], sizes = [30, 3], strides = [1, 1]} : vector<32x3xf32> to vector<30x3xf32>
      %98 = arith.truncf %97 : vector<30x3xf32> to vector<30x3xbf16>
      %cst_55 = arith.constant dense<0.000000e+00> : vector<30x32xf32>
      %99 = tpu.matmul %96, %94, %cst_55 {dimension_numbers = #tpu.dot_dimension_numbers<[1], [0], [0], [1], [0, 0, 1, 1], [], []>} : vector<30x3xbf16>, vector<3x32xbf16>, vector<30x32xf32> -> vector<30x32xf32>
      %100 = arith.addf %90, %99 : vector<30x32xf32>
      %cst_56 = arith.constant dense<0.000000e+00> : vector<30x32xf32>
      %101 = tpu.matmul %98, %94, %cst_56 {dimension_numbers = #tpu.dot_dimension_numbers<[1], [0], [0], [1], [0, 0, 1, 1], [], []>} : vector<30x3xbf16>, vector<3x32xbf16>, vector<30x32xf32> -> vector<30x32xf32>
      %102 = arith.addf %92, %101 : vector<30x32xf32>
      %c2_i32_57 = arith.constant 2 : i32
      %103 = arith.muli %c2_i32_57, %arg14 : i32
      %c1_i32_58 = arith.constant 1 : i32
      %104 = arith.addi %103, %c1_i32_58 : i32
      %c0_59 = arith.constant 0 : index
      %105 = arith.index_cast %104 : i32 to index
      %c0_60 = arith.constant 0 : index
      %c0_61 = arith.constant 0 : index
      %106 = vector.load %arg1[%c0_59, %105, %c0_60, %c0_61] : memref<1x32x32x3xf32, #tpu.memory_space<vmem>>, vector<1x1x32x3xf32>
      %107 = vector.shape_cast %106 : vector<1x1x32x3xf32> to vector<32x3xf32>
      %c2_i32_62 = arith.constant 2 : i32
      %108 = arith.muli %c2_i32_62, %arg14 : i32
      %c1_i32_63 = arith.constant 1 : i32
      %109 = arith.addi %108, %c1_i32_63 : i32
      %c1_i32_64 = arith.constant 1 : i32
      %110 = arith.addi %109, %c1_i32_64 : i32
      %c0_65 = arith.constant 0 : index
      %111 = arith.index_cast %110 : i32 to index
      %c0_66 = arith.constant 0 : index
      %c0_67 = arith.constant 0 : index
      %112 = vector.load %arg1[%c0_65, %111, %c0_66, %c0_67] : memref<1x32x32x3xf32, #tpu.memory_space<vmem>>, vector<1x1x32x3xf32>
      %113 = vector.shape_cast %112 : vector<1x1x32x3xf32> to vector<32x3xf32>
      %c9 = arith.constant 9 : index
      %c0_68 = arith.constant 0 : index
      %114 = vector.load %arg2[%c9, %c0_68] : memref<27x32xf32, #tpu.memory_space<vmem>>, vector<3x32xf32>
      %115 = arith.truncf %114 : vector<3x32xf32> to vector<3x32xbf16>
      %116 = vector.extract_strided_slice %107 {offsets = [0, 0], sizes = [30, 3], strides = [1, 1]} : vector<32x3xf32> to vector<30x3xf32>
      %117 = arith.truncf %116 : vector<30x3xf32> to vector<30x3xbf16>
      %118 = vector.extract_strided_slice %113 {offsets = [0, 0], sizes = [30, 3], strides = [1, 1]} : vector<32x3xf32> to vector<30x3xf32>
      %119 = arith.truncf %118 : vector<30x3xf32> to vector<30x3xbf16>
      %cst_69 = arith.constant dense<0.000000e+00> : vector<30x32xf32>
      %120 = tpu.matmul %117, %115, %cst_69 {dimension_numbers = #tpu.dot_dimension_numbers<[1], [0], [0], [1], [0, 0, 1, 1], [], []>} : vector<30x3xbf16>, vector<3x32xbf16>, vector<30x32xf32> -> vector<30x32xf32>
      %121 = arith.addf %100, %120 : vector<30x32xf32>
      %cst_70 = arith.constant dense<0.000000e+00> : vector<30x32xf32>
      %122 = tpu.matmul %119, %115, %cst_70 {dimension_numbers = #tpu.dot_dimension_numbers<[1], [0], [0], [1], [0, 0, 1, 1], [], []>} : vector<30x3xbf16>, vector<3x32xbf16>, vector<30x32xf32> -> vector<30x32xf32>
      %123 = arith.addf %102, %122 : vector<30x32xf32>
      %c12 = arith.constant 12 : index
      %c0_71 = arith.constant 0 : index
      %124 = vector.load %arg2[%c12, %c0_71] : memref<27x32xf32, #tpu.memory_space<vmem>>, vector<3x32xf32>
      %125 = arith.truncf %124 : vector<3x32xf32> to vector<3x32xbf16>
      %126 = vector.extract_strided_slice %107 {offsets = [1, 0], sizes = [30, 3], strides = [1, 1]} : vector<32x3xf32> to vector<30x3xf32>
      %127 = arith.truncf %126 : vector<30x3xf32> to vector<30x3xbf16>
      %128 = vector.extract_strided_slice %113 {offsets = [1, 0], sizes = [30, 3], strides = [1, 1]} : vector<32x3xf32> to vector<30x3xf32>
      %129 = arith.truncf %128 : vector<30x3xf32> to vector<30x3xbf16>
      %cst_72 = arith.constant dense<0.000000e+00> : vector<30x32xf32>
      %130 = tpu.matmul %127, %125, %cst_72 {dimension_numbers = #tpu.dot_dimension_numbers<[1], [0], [0], [1], [0, 0, 1, 1], [], []>} : vector<30x3xbf16>, vector<3x32xbf16>, vector<30x32xf32> -> vector<30x32xf32>
      %131 = arith.addf %121, %130 : vector<30x32xf32>
      %cst_73 = arith.constant dense<0.000000e+00> : vector<30x32xf32>
      %132 = tpu.matmul %129, %125, %cst_73 {dimension_numbers = #tpu.dot_dimension_numbers<[1], [0], [0], [1], [0, 0, 1, 1], [], []>} : vector<30x3xbf16>, vector<3x32xbf16>, vector<30x32xf32> -> vector<30x32xf32>
      %133 = arith.addf %123, %132 : vector<30x32xf32>
      %c15 = arith.constant 15 : index
      %c0_74 = arith.constant 0 : index
      %134 = vector.load %arg2[%c15, %c0_74] : memref<27x32xf32, #tpu.memory_space<vmem>>, vector<3x32xf32>
      %135 = arith.truncf %134 : vector<3x32xf32> to vector<3x32xbf16>
      %136 = vector.extract_strided_slice %107 {offsets = [2, 0], sizes = [30, 3], strides = [1, 1]} : vector<32x3xf32> to vector<30x3xf32>
      %137 = arith.truncf %136 : vector<30x3xf32> to vector<30x3xbf16>
      %138 = vector.extract_strided_slice %113 {offsets = [2, 0], sizes = [30, 3], strides = [1, 1]} : vector<32x3xf32> to vector<30x3xf32>
      %139 = arith.truncf %138 : vector<30x3xf32> to vector<30x3xbf16>
      %cst_75 = arith.constant dense<0.000000e+00> : vector<30x32xf32>
      %140 = tpu.matmul %137, %135, %cst_75 {dimension_numbers = #tpu.dot_dimension_numbers<[1], [0], [0], [1], [0, 0, 1, 1], [], []>} : vector<30x3xbf16>, vector<3x32xbf16>, vector<30x32xf32> -> vector<30x32xf32>
      %141 = arith.addf %131, %140 : vector<30x32xf32>
      %cst_76 = arith.constant dense<0.000000e+00> : vector<30x32xf32>
      %142 = tpu.matmul %139, %135, %cst_76 {dimension_numbers = #tpu.dot_dimension_numbers<[1], [0], [0], [1], [0, 0, 1, 1], [], []>} : vector<30x3xbf16>, vector<3x32xbf16>, vector<30x32xf32> -> vector<30x32xf32>
      %143 = arith.addf %133, %142 : vector<30x32xf32>
      %c2_i32_77 = arith.constant 2 : i32
      %144 = arith.muli %c2_i32_77, %arg14 : i32
      %c2_i32_78 = arith.constant 2 : i32
      %145 = arith.addi %144, %c2_i32_78 : i32
      %c0_79 = arith.constant 0 : index
      %146 = arith.index_cast %145 : i32 to index
      %c0_80 = arith.constant 0 : index
      %c0_81 = arith.constant 0 : index
      %147 = vector.load %arg1[%c0_79, %146, %c0_80, %c0_81] : memref<1x32x32x3xf32, #tpu.memory_space<vmem>>, vector<1x1x32x3xf32>
      %148 = vector.shape_cast %147 : vector<1x1x32x3xf32> to vector<32x3xf32>
      %c2_i32_82 = arith.constant 2 : i32
      %149 = arith.muli %c2_i32_82, %arg14 : i32
      %c1_i32_83 = arith.constant 1 : i32
      %150 = arith.addi %149, %c1_i32_83 : i32
      %c2_i32_84 = arith.constant 2 : i32
      %151 = arith.addi %150, %c2_i32_84 : i32
      %c0_85 = arith.constant 0 : index
      %152 = arith.index_cast %151 : i32 to index
      %c0_86 = arith.constant 0 : index
      %c0_87 = arith.constant 0 : index
      %153 = vector.load %arg1[%c0_85, %152, %c0_86, %c0_87] : memref<1x32x32x3xf32, #tpu.memory_space<vmem>>, vector<1x1x32x3xf32>
      %154 = vector.shape_cast %153 : vector<1x1x32x3xf32> to vector<32x3xf32>
      %c18 = arith.constant 18 : index
      %c0_88 = arith.constant 0 : index
      %155 = vector.load %arg2[%c18, %c0_88] : memref<27x32xf32, #tpu.memory_space<vmem>>, vector<3x32xf32>
      %156 = arith.truncf %155 : vector<3x32xf32> to vector<3x32xbf16>
      %157 = vector.extract_strided_slice %148 {offsets = [0, 0], sizes = [30, 3], strides = [1, 1]} : vector<32x3xf32> to vector<30x3xf32>
      %158 = arith.truncf %157 : vector<30x3xf32> to vector<30x3xbf16>
      %159 = vector.extract_strided_slice %154 {offsets = [0, 0], sizes = [30, 3], strides = [1, 1]} : vector<32x3xf32> to vector<30x3xf32>
      %160 = arith.truncf %159 : vector<30x3xf32> to vector<30x3xbf16>
      %cst_89 = arith.constant dense<0.000000e+00> : vector<30x32xf32>
      %161 = tpu.matmul %158, %156, %cst_89 {dimension_numbers = #tpu.dot_dimension_numbers<[1], [0], [0], [1], [0, 0, 1, 1], [], []>} : vector<30x3xbf16>, vector<3x32xbf16>, vector<30x32xf32> -> vector<30x32xf32>
      %162 = arith.addf %141, %161 : vector<30x32xf32>
      %cst_90 = arith.constant dense<0.000000e+00> : vector<30x32xf32>
      %163 = tpu.matmul %160, %156, %cst_90 {dimension_numbers = #tpu.dot_dimension_numbers<[1], [0], [0], [1], [0, 0, 1, 1], [], []>} : vector<30x3xbf16>, vector<3x32xbf16>, vector<30x32xf32> -> vector<30x32xf32>
      %164 = arith.addf %143, %163 : vector<30x32xf32>
      %c21 = arith.constant 21 : index
      %c0_91 = arith.constant 0 : index
      %165 = vector.load %arg2[%c21, %c0_91] : memref<27x32xf32, #tpu.memory_space<vmem>>, vector<3x32xf32>
      %166 = arith.truncf %165 : vector<3x32xf32> to vector<3x32xbf16>
      %167 = vector.extract_strided_slice %148 {offsets = [1, 0], sizes = [30, 3], strides = [1, 1]} : vector<32x3xf32> to vector<30x3xf32>
      %168 = arith.truncf %167 : vector<30x3xf32> to vector<30x3xbf16>
      %169 = vector.extract_strided_slice %154 {offsets = [1, 0], sizes = [30, 3], strides = [1, 1]} : vector<32x3xf32> to vector<30x3xf32>
      %170 = arith.truncf %169 : vector<30x3xf32> to vector<30x3xbf16>
      %cst_92 = arith.constant dense<0.000000e+00> : vector<30x32xf32>
      %171 = tpu.matmul %168, %166, %cst_92 {dimension_numbers = #tpu.dot_dimension_numbers<[1], [0], [0], [1], [0, 0, 1, 1], [], []>} : vector<30x3xbf16>, vector<3x32xbf16>, vector<30x32xf32> -> vector<30x32xf32>
      %172 = arith.addf %162, %171 : vector<30x32xf32>
      %cst_93 = arith.constant dense<0.000000e+00> : vector<30x32xf32>
      %173 = tpu.matmul %170, %166, %cst_93 {dimension_numbers = #tpu.dot_dimension_numbers<[1], [0], [0], [1], [0, 0, 1, 1], [], []>} : vector<30x3xbf16>, vector<3x32xbf16>, vector<30x32xf32> -> vector<30x32xf32>
      %174 = arith.addf %164, %173 : vector<30x32xf32>
      %c24 = arith.constant 24 : index
      %c0_94 = arith.constant 0 : index
      %175 = vector.load %arg2[%c24, %c0_94] : memref<27x32xf32, #tpu.memory_space<vmem>>, vector<3x32xf32>
      %176 = arith.truncf %175 : vector<3x32xf32> to vector<3x32xbf16>
      %177 = vector.extract_strided_slice %148 {offsets = [2, 0], sizes = [30, 3], strides = [1, 1]} : vector<32x3xf32> to vector<30x3xf32>
      %178 = arith.truncf %177 : vector<30x3xf32> to vector<30x3xbf16>
      %179 = vector.extract_strided_slice %154 {offsets = [2, 0], sizes = [30, 3], strides = [1, 1]} : vector<32x3xf32> to vector<30x3xf32>
      %180 = arith.truncf %179 : vector<30x3xf32> to vector<30x3xbf16>
      %cst_95 = arith.constant dense<0.000000e+00> : vector<30x32xf32>
      %181 = tpu.matmul %178, %176, %cst_95 {dimension_numbers = #tpu.dot_dimension_numbers<[1], [0], [0], [1], [0, 0, 1, 1], [], []>} : vector<30x3xbf16>, vector<3x32xbf16>, vector<30x32xf32> -> vector<30x32xf32>
      %182 = arith.addf %172, %181 : vector<30x32xf32>
      %cst_96 = arith.constant dense<0.000000e+00> : vector<30x32xf32>
      %183 = tpu.matmul %180, %176, %cst_96 {dimension_numbers = #tpu.dot_dimension_numbers<[1], [0], [0], [1], [0, 0, 1, 1], [], []>} : vector<30x3xbf16>, vector<3x32xbf16>, vector<30x32xf32> -> vector<30x32xf32>
      %184 = arith.addf %174, %183 : vector<30x32xf32>
      %185 = vector.broadcast %0 : vector<1x32xf32> to vector<30x32xf32>
      %186 = arith.addf %182, %185 : vector<30x32xf32>
      %cst_97 = arith.constant 0.000000e+00 : f32
      %187 = vector.broadcast %cst_97 : f32 to vector<30x32xf32>
      %188 = arith.maximumf %186, %187 : vector<30x32xf32>
      %189 = vector.broadcast %0 : vector<1x32xf32> to vector<30x32xf32>
      %190 = arith.addf %184, %189 : vector<30x32xf32>
      %cst_98 = arith.constant 0.000000e+00 : f32
      %191 = vector.broadcast %cst_98 : f32 to vector<30x32xf32>
      %192 = arith.maximumf %190, %191 : vector<30x32xf32>
      %193 = arith.maximumf %188, %192 : vector<30x32xf32>
      %cst_99 = arith.constant dense<0.000000e+00> : vector<15x32xf32>
      %194 = tpu.matmul %7, %193, %cst_99 {dimension_numbers = #tpu.dot_dimension_numbers<[1], [0], [0], [1], [0, 0, 1, 1], [], []>} : vector<15x30xf32>, vector<30x32xf32>, vector<15x32xf32> -> vector<15x32xf32>
      %cst_100 = arith.constant dense<0.000000e+00> : vector<15x32xf32>
      %195 = tpu.matmul %14, %193, %cst_100 {dimension_numbers = #tpu.dot_dimension_numbers<[1], [0], [0], [1], [0, 0, 1, 1], [], []>} : vector<15x30xf32>, vector<30x32xf32>, vector<15x32xf32> -> vector<15x32xf32>
      %196 = arith.maximumf %194, %195 : vector<15x32xf32>
      %c0_101 = arith.constant 0 : index
      %197 = arith.index_cast %arg14 : i32 to index
      %c0_102 = arith.constant 0 : index
      %c0_103 = arith.constant 0 : index
      %198 = vector.load %arg11[%c0_101, %197, %c0_102, %c0_103] : memref<1x15x15x32xf32, #tpu.memory_space<vmem>>, vector<1x1x15x32xf32>
      %199 = vector.shape_cast %198 : vector<1x1x15x32xf32> to vector<15x32xf32>
      %200 = vector.shape_cast %196 : vector<15x32xf32> to vector<1x1x15x32xf32>
      tpu.vector_store %arg11[%c0_101, %197, %c0_102, %c0_103], %200 {strides = array<i32>} : memref<1x15x15x32xf32, #tpu.memory_space<vmem>>, vector<1x1x15x32xf32>,
    }
    %c15_i32_3 = arith.constant 15 : i32
    %c0_4 = arith.constant 0 : index
    %c0_5 = arith.constant 0 : index
    %16 = vector.load %arg5[%c0_4, %c0_5] : memref<1x64xf32, #tpu.memory_space<vmem>>, vector<1x64xf32>
    %17 = tpu.iota {dimensions = array<i32: 0>} : vector<6x13xi32>
    %18 = tpu.iota {dimensions = array<i32: 1>} : vector<6x13xi32>
    %c2_i32_6 = arith.constant 2 : i32
    %19 = vector.broadcast %c2_i32_6 : i32 to vector<6x13xi32>
    %20 = arith.muli %19, %17 : vector<6x13xi32>
    %21 = arith.cmpi eq, %18, %20 : vector<6x13xi32>
    %22 = arith.extui %21 : vector<6x13xi1> to vector<6x13xi32>
    %23 = arith.sitofp %22 : vector<6x13xi32> to vector<6x13xf32>
    %c2_i32_7 = arith.constant 2 : i32
    %24 = vector.broadcast %c2_i32_7 : i32 to vector<6x13xi32>
    %25 = arith.muli %24, %17 : vector<6x13xi32>
    %c1_i32_8 = arith.constant 1 : i32
    %26 = vector.broadcast %c1_i32_8 : i32 to vector<6x13xi32>
    %27 = arith.addi %25, %26 : vector<6x13xi32>
    %28 = arith.cmpi eq, %18, %27 : vector<6x13xi32>
    %29 = arith.extui %28 : vector<6x13xi1> to vector<6x13xi32>
    %30 = arith.sitofp %29 : vector<6x13xi32> to vector<6x13xf32>
    %c0_i32_9 = arith.constant 0 : i32
    %c6_i32 = arith.constant 6 : i32
    %31 = arith.addi %c0_i32_9, %c6_i32 : i32
    %c1_i32_10 = arith.constant 1 : i32
    scf.for %arg14 = %c0_i32_9 to %31 step %c1_i32_10  : i32 {
      %cst_34 = arith.constant 0.000000e+00 : f32
      %60 = vector.broadcast %cst_34 : f32 to vector<13x64xf32>
      %cst_35 = arith.constant 0.000000e+00 : f32
      %61 = vector.broadcast %cst_35 : f32 to vector<13x64xf32>
      %c2_i32_36 = arith.constant 2 : i32
      %62 = arith.muli %c2_i32_36, %arg14 : i32
      %c0_i32_37 = arith.constant 0 : i32
      %63 = arith.addi %62, %c0_i32_37 : i32
      %c0_38 = arith.constant 0 : index
      %64 = arith.index_cast %63 : i32 to index
      %c0_39 = arith.constant 0 : index
      %c0_40 = arith.constant 0 : index
      %65 = vector.load %arg11[%c0_38, %64, %c0_39, %c0_40] : memref<1x15x15x32xf32, #tpu.memory_space<vmem>>, vector<1x1x15x32xf32>
      %66 = vector.shape_cast %65 : vector<1x1x15x32xf32> to vector<15x32xf32>
      %c2_i32_41 = arith.constant 2 : i32
      %67 = arith.muli %c2_i32_41, %arg14 : i32
      %c1_i32_42 = arith.constant 1 : i32
      %68 = arith.addi %67, %c1_i32_42 : i32
      %c0_i32_43 = arith.constant 0 : i32
      %69 = arith.addi %68, %c0_i32_43 : i32
      %c0_44 = arith.constant 0 : index
      %70 = arith.index_cast %69 : i32 to index
      %c0_45 = arith.constant 0 : index
      %c0_46 = arith.constant 0 : index
      %71 = vector.load %arg11[%c0_44, %70, %c0_45, %c0_46] : memref<1x15x15x32xf32, #tpu.memory_space<vmem>>, vector<1x1x15x32xf32>
      %72 = vector.shape_cast %71 : vector<1x1x15x32xf32> to vector<15x32xf32>
      %c0_47 = arith.constant 0 : index
      %c0_48 = arith.constant 0 : index
      %73 = vector.load %arg4[%c0_47, %c0_48] : memref<288x64xf32, #tpu.memory_space<vmem>>, vector<32x64xf32>
      %74 = arith.truncf %73 : vector<32x64xf32> to vector<32x64xbf16>
      %75 = vector.extract_strided_slice %66 {offsets = [0, 0], sizes = [13, 32], strides = [1, 1]} : vector<15x32xf32> to vector<13x32xf32>
      %76 = arith.truncf %75 : vector<13x32xf32> to vector<13x32xbf16>
      %77 = vector.extract_strided_slice %72 {offsets = [0, 0], sizes = [13, 32], strides = [1, 1]} : vector<15x32xf32> to vector<13x32xf32>
      %78 = arith.truncf %77 : vector<13x32xf32> to vector<13x32xbf16>
      %cst_49 = arith.constant dense<0.000000e+00> : vector<13x64xf32>
      %79 = tpu.matmul %76, %74, %cst_49 {dimension_numbers = #tpu.dot_dimension_numbers<[1], [0], [0], [1], [0, 0, 1, 1], [], []>} : vector<13x32xbf16>, vector<32x64xbf16>, vector<13x64xf32> -> vector<13x64xf32>
      %80 = arith.addf %60, %79 : vector<13x64xf32>
      %cst_50 = arith.constant dense<0.000000e+00> : vector<13x64xf32>
      %81 = tpu.matmul %78, %74, %cst_50 {dimension_numbers = #tpu.dot_dimension_numbers<[1], [0], [0], [1], [0, 0, 1, 1], [], []>} : vector<13x32xbf16>, vector<32x64xbf16>, vector<13x64xf32> -> vector<13x64xf32>
      %82 = arith.addf %61, %81 : vector<13x64xf32>
      %c32 = arith.constant 32 : index
      %c0_51 = arith.constant 0 : index
      %83 = vector.load %arg4[%c32, %c0_51] : memref<288x64xf32, #tpu.memory_space<vmem>>, vector<32x64xf32>
      %84 = arith.truncf %83 : vector<32x64xf32> to vector<32x64xbf16>
      %85 = vector.extract_strided_slice %66 {offsets = [1, 0], sizes = [13, 32], strides = [1, 1]} : vector<15x32xf32> to vector<13x32xf32>
      %86 = arith.truncf %85 : vector<13x32xf32> to vector<13x32xbf16>
      %87 = vector.extract_strided_slice %72 {offsets = [1, 0], sizes = [13, 32], strides = [1, 1]} : vector<15x32xf32> to vector<13x32xf32>
      %88 = arith.truncf %87 : vector<13x32xf32> to vector<13x32xbf16>
      %cst_52 = arith.constant dense<0.000000e+00> : vector<13x64xf32>
      %89 = tpu.matmul %86, %84, %cst_52 {dimension_numbers = #tpu.dot_dimension_numbers<[1], [0], [0], [1], [0, 0, 1, 1], [], []>} : vector<13x32xbf16>, vector<32x64xbf16>, vector<13x64xf32> -> vector<13x64xf32>
      %90 = arith.addf %80, %89 : vector<13x64xf32>
      %cst_53 = arith.constant dense<0.000000e+00> : vector<13x64xf32>
      %91 = tpu.matmul %88, %84, %cst_53 {dimension_numbers = #tpu.dot_dimension_numbers<[1], [0], [0], [1], [0, 0, 1, 1], [], []>} : vector<13x32xbf16>, vector<32x64xbf16>, vector<13x64xf32> -> vector<13x64xf32>
      %92 = arith.addf %82, %91 : vector<13x64xf32>
      %c64 = arith.constant 64 : index
      %c0_54 = arith.constant 0 : index
      %93 = vector.load %arg4[%c64, %c0_54] : memref<288x64xf32, #tpu.memory_space<vmem>>, vector<32x64xf32>
      %94 = arith.truncf %93 : vector<32x64xf32> to vector<32x64xbf16>
      %95 = vector.extract_strided_slice %66 {offsets = [2, 0], sizes = [13, 32], strides = [1, 1]} : vector<15x32xf32> to vector<13x32xf32>
      %96 = arith.truncf %95 : vector<13x32xf32> to vector<13x32xbf16>
      %97 = vector.extract_strided_slice %72 {offsets = [2, 0], sizes = [13, 32], strides = [1, 1]} : vector<15x32xf32> to vector<13x32xf32>
      %98 = arith.truncf %97 : vector<13x32xf32> to vector<13x32xbf16>
      %cst_55 = arith.constant dense<0.000000e+00> : vector<13x64xf32>
      %99 = tpu.matmul %96, %94, %cst_55 {dimension_numbers = #tpu.dot_dimension_numbers<[1], [0], [0], [1], [0, 0, 1, 1], [], []>} : vector<13x32xbf16>, vector<32x64xbf16>, vector<13x64xf32> -> vector<13x64xf32>
      %100 = arith.addf %90, %99 : vector<13x64xf32>
      %cst_56 = arith.constant dense<0.000000e+00> : vector<13x64xf32>
      %101 = tpu.matmul %98, %94, %cst_56 {dimension_numbers = #tpu.dot_dimension_numbers<[1], [0], [0], [1], [0, 0, 1, 1], [], []>} : vector<13x32xbf16>, vector<32x64xbf16>, vector<13x64xf32> -> vector<13x64xf32>
      %102 = arith.addf %92, %101 : vector<13x64xf32>
      %c2_i32_57 = arith.constant 2 : i32
      %103 = arith.muli %c2_i32_57, %arg14 : i32
      %c1_i32_58 = arith.constant 1 : i32
      %104 = arith.addi %103, %c1_i32_58 : i32
      %c0_59 = arith.constant 0 : index
      %105 = arith.index_cast %104 : i32 to index
      %c0_60 = arith.constant 0 : index
      %c0_61 = arith.constant 0 : index
      %106 = vector.load %arg11[%c0_59, %105, %c0_60, %c0_61] : memref<1x15x15x32xf32, #tpu.memory_space<vmem>>, vector<1x1x15x32xf32>
      %107 = vector.shape_cast %106 : vector<1x1x15x32xf32> to vector<15x32xf32>
      %c2_i32_62 = arith.constant 2 : i32
      %108 = arith.muli %c2_i32_62, %arg14 : i32
      %c1_i32_63 = arith.constant 1 : i32
      %109 = arith.addi %108, %c1_i32_63 : i32
      %c1_i32_64 = arith.constant 1 : i32
      %110 = arith.addi %109, %c1_i32_64 : i32
      %c0_65 = arith.constant 0 : index
      %111 = arith.index_cast %110 : i32 to index
      %c0_66 = arith.constant 0 : index
      %c0_67 = arith.constant 0 : index
      %112 = vector.load %arg11[%c0_65, %111, %c0_66, %c0_67] : memref<1x15x15x32xf32, #tpu.memory_space<vmem>>, vector<1x1x15x32xf32>
      %113 = vector.shape_cast %112 : vector<1x1x15x32xf32> to vector<15x32xf32>
      %c96 = arith.constant 96 : index
      %c0_68 = arith.constant 0 : index
      %114 = vector.load %arg4[%c96, %c0_68] : memref<288x64xf32, #tpu.memory_space<vmem>>, vector<32x64xf32>
      %115 = arith.truncf %114 : vector<32x64xf32> to vector<32x64xbf16>
      %116 = vector.extract_strided_slice %107 {offsets = [0, 0], sizes = [13, 32], strides = [1, 1]} : vector<15x32xf32> to vector<13x32xf32>
      %117 = arith.truncf %116 : vector<13x32xf32> to vector<13x32xbf16>
      %118 = vector.extract_strided_slice %113 {offsets = [0, 0], sizes = [13, 32], strides = [1, 1]} : vector<15x32xf32> to vector<13x32xf32>
      %119 = arith.truncf %118 : vector<13x32xf32> to vector<13x32xbf16>
      %cst_69 = arith.constant dense<0.000000e+00> : vector<13x64xf32>
      %120 = tpu.matmul %117, %115, %cst_69 {dimension_numbers = #tpu.dot_dimension_numbers<[1], [0], [0], [1], [0, 0, 1, 1], [], []>} : vector<13x32xbf16>, vector<32x64xbf16>, vector<13x64xf32> -> vector<13x64xf32>
      %121 = arith.addf %100, %120 : vector<13x64xf32>
      %cst_70 = arith.constant dense<0.000000e+00> : vector<13x64xf32>
      %122 = tpu.matmul %119, %115, %cst_70 {dimension_numbers = #tpu.dot_dimension_numbers<[1], [0], [0], [1], [0, 0, 1, 1], [], []>} : vector<13x32xbf16>, vector<32x64xbf16>, vector<13x64xf32> -> vector<13x64xf32>
      %123 = arith.addf %102, %122 : vector<13x64xf32>
      %c128 = arith.constant 128 : index
      %c0_71 = arith.constant 0 : index
      %124 = vector.load %arg4[%c128, %c0_71] : memref<288x64xf32, #tpu.memory_space<vmem>>, vector<32x64xf32>
      %125 = arith.truncf %124 : vector<32x64xf32> to vector<32x64xbf16>
      %126 = vector.extract_strided_slice %107 {offsets = [1, 0], sizes = [13, 32], strides = [1, 1]} : vector<15x32xf32> to vector<13x32xf32>
      %127 = arith.truncf %126 : vector<13x32xf32> to vector<13x32xbf16>
      %128 = vector.extract_strided_slice %113 {offsets = [1, 0], sizes = [13, 32], strides = [1, 1]} : vector<15x32xf32> to vector<13x32xf32>
      %129 = arith.truncf %128 : vector<13x32xf32> to vector<13x32xbf16>
      %cst_72 = arith.constant dense<0.000000e+00> : vector<13x64xf32>
      %130 = tpu.matmul %127, %125, %cst_72 {dimension_numbers = #tpu.dot_dimension_numbers<[1], [0], [0], [1], [0, 0, 1, 1], [], []>} : vector<13x32xbf16>, vector<32x64xbf16>, vector<13x64xf32> -> vector<13x64xf32>
      %131 = arith.addf %121, %130 : vector<13x64xf32>
      %cst_73 = arith.constant dense<0.000000e+00> : vector<13x64xf32>
      %132 = tpu.matmul %129, %125, %cst_73 {dimension_numbers = #tpu.dot_dimension_numbers<[1], [0], [0], [1], [0, 0, 1, 1], [], []>} : vector<13x32xbf16>, vector<32x64xbf16>, vector<13x64xf32> -> vector<13x64xf32>
      %133 = arith.addf %123, %132 : vector<13x64xf32>
      %c160 = arith.constant 160 : index
      %c0_74 = arith.constant 0 : index
      %134 = vector.load %arg4[%c160, %c0_74] : memref<288x64xf32, #tpu.memory_space<vmem>>, vector<32x64xf32>
      %135 = arith.truncf %134 : vector<32x64xf32> to vector<32x64xbf16>
      %136 = vector.extract_strided_slice %107 {offsets = [2, 0], sizes = [13, 32], strides = [1, 1]} : vector<15x32xf32> to vector<13x32xf32>
      %137 = arith.truncf %136 : vector<13x32xf32> to vector<13x32xbf16>
      %138 = vector.extract_strided_slice %113 {offsets = [2, 0], sizes = [13, 32], strides = [1, 1]} : vector<15x32xf32> to vector<13x32xf32>
      %139 = arith.truncf %138 : vector<13x32xf32> to vector<13x32xbf16>
      %cst_75 = arith.constant dense<0.000000e+00> : vector<13x64xf32>
      %140 = tpu.matmul %137, %135, %cst_75 {dimension_numbers = #tpu.dot_dimension_numbers<[1], [0], [0], [1], [0, 0, 1, 1], [], []>} : vector<13x32xbf16>, vector<32x64xbf16>, vector<13x64xf32> -> vector<13x64xf32>
      %141 = arith.addf %131, %140 : vector<13x64xf32>
      %cst_76 = arith.constant dense<0.000000e+00> : vector<13x64xf32>
      %142 = tpu.matmul %139, %135, %cst_76 {dimension_numbers = #tpu.dot_dimension_numbers<[1], [0], [0], [1], [0, 0, 1, 1], [], []>} : vector<13x32xbf16>, vector<32x64xbf16>, vector<13x64xf32> -> vector<13x64xf32>
      %143 = arith.addf %133, %142 : vector<13x64xf32>
      %c2_i32_77 = arith.constant 2 : i32
      %144 = arith.muli %c2_i32_77, %arg14 : i32
      %c2_i32_78 = arith.constant 2 : i32
      %145 = arith.addi %144, %c2_i32_78 : i32
      %c0_79 = arith.constant 0 : index
      %146 = arith.index_cast %145 : i32 to index
      %c0_80 = arith.constant 0 : index
      %c0_81 = arith.constant 0 : index
      %147 = vector.load %arg11[%c0_79, %146, %c0_80, %c0_81] : memref<1x15x15x32xf32, #tpu.memory_space<vmem>>, vector<1x1x15x32xf32>
      %148 = vector.shape_cast %147 : vector<1x1x15x32xf32> to vector<15x32xf32>
      %c2_i32_82 = arith.constant 2 : i32
      %149 = arith.muli %c2_i32_82, %arg14 : i32
      %c1_i32_83 = arith.constant 1 : i32
      %150 = arith.addi %149, %c1_i32_83 : i32
      %c2_i32_84 = arith.constant 2 : i32
      %151 = arith.addi %150, %c2_i32_84 : i32
      %c0_85 = arith.constant 0 : index
      %152 = arith.index_cast %151 : i32 to index
      %c0_86 = arith.constant 0 : index
      %c0_87 = arith.constant 0 : index
      %153 = vector.load %arg11[%c0_85, %152, %c0_86, %c0_87] : memref<1x15x15x32xf32, #tpu.memory_space<vmem>>, vector<1x1x15x32xf32>
      %154 = vector.shape_cast %153 : vector<1x1x15x32xf32> to vector<15x32xf32>
      %c192 = arith.constant 192 : index
      %c0_88 = arith.constant 0 : index
      %155 = vector.load %arg4[%c192, %c0_88] : memref<288x64xf32, #tpu.memory_space<vmem>>, vector<32x64xf32>
      %156 = arith.truncf %155 : vector<32x64xf32> to vector<32x64xbf16>
      %157 = vector.extract_strided_slice %148 {offsets = [0, 0], sizes = [13, 32], strides = [1, 1]} : vector<15x32xf32> to vector<13x32xf32>
      %158 = arith.truncf %157 : vector<13x32xf32> to vector<13x32xbf16>
      %159 = vector.extract_strided_slice %154 {offsets = [0, 0], sizes = [13, 32], strides = [1, 1]} : vector<15x32xf32> to vector<13x32xf32>
      %160 = arith.truncf %159 : vector<13x32xf32> to vector<13x32xbf16>
      %cst_89 = arith.constant dense<0.000000e+00> : vector<13x64xf32>
      %161 = tpu.matmul %158, %156, %cst_89 {dimension_numbers = #tpu.dot_dimension_numbers<[1], [0], [0], [1], [0, 0, 1, 1], [], []>} : vector<13x32xbf16>, vector<32x64xbf16>, vector<13x64xf32> -> vector<13x64xf32>
      %162 = arith.addf %141, %161 : vector<13x64xf32>
      %cst_90 = arith.constant dense<0.000000e+00> : vector<13x64xf32>
      %163 = tpu.matmul %160, %156, %cst_90 {dimension_numbers = #tpu.dot_dimension_numbers<[1], [0], [0], [1], [0, 0, 1, 1], [], []>} : vector<13x32xbf16>, vector<32x64xbf16>, vector<13x64xf32> -> vector<13x64xf32>
      %164 = arith.addf %143, %163 : vector<13x64xf32>
      %c224 = arith.constant 224 : index
      %c0_91 = arith.constant 0 : index
      %165 = vector.load %arg4[%c224, %c0_91] : memref<288x64xf32, #tpu.memory_space<vmem>>, vector<32x64xf32>
      %166 = arith.truncf %165 : vector<32x64xf32> to vector<32x64xbf16>
      %167 = vector.extract_strided_slice %148 {offsets = [1, 0], sizes = [13, 32], strides = [1, 1]} : vector<15x32xf32> to vector<13x32xf32>
      %168 = arith.truncf %167 : vector<13x32xf32> to vector<13x32xbf16>
      %169 = vector.extract_strided_slice %154 {offsets = [1, 0], sizes = [13, 32], strides = [1, 1]} : vector<15x32xf32> to vector<13x32xf32>
      %170 = arith.truncf %169 : vector<13x32xf32> to vector<13x32xbf16>
      %cst_92 = arith.constant dense<0.000000e+00> : vector<13x64xf32>
      %171 = tpu.matmul %168, %166, %cst_92 {dimension_numbers = #tpu.dot_dimension_numbers<[1], [0], [0], [1], [0, 0, 1, 1], [], []>} : vector<13x32xbf16>, vector<32x64xbf16>, vector<13x64xf32> -> vector<13x64xf32>
      %172 = arith.addf %162, %171 : vector<13x64xf32>
      %cst_93 = arith.constant dense<0.000000e+00> : vector<13x64xf32>
      %173 = tpu.matmul %170, %166, %cst_93 {dimension_numbers = #tpu.dot_dimension_numbers<[1], [0], [0], [1], [0, 0, 1, 1], [], []>} : vector<13x32xbf16>, vector<32x64xbf16>, vector<13x64xf32> -> vector<13x64xf32>
      %174 = arith.addf %164, %173 : vector<13x64xf32>
      %c256 = arith.constant 256 : index
      %c0_94 = arith.constant 0 : index
      %175 = vector.load %arg4[%c256, %c0_94] : memref<288x64xf32, #tpu.memory_space<vmem>>, vector<32x64xf32>
      %176 = arith.truncf %175 : vector<32x64xf32> to vector<32x64xbf16>
      %177 = vector.extract_strided_slice %148 {offsets = [2, 0], sizes = [13, 32], strides = [1, 1]} : vector<15x32xf32> to vector<13x32xf32>
      %178 = arith.truncf %177 : vector<13x32xf32> to vector<13x32xbf16>
      %179 = vector.extract_strided_slice %154 {offsets = [2, 0], sizes = [13, 32], strides = [1, 1]} : vector<15x32xf32> to vector<13x32xf32>
      %180 = arith.truncf %179 : vector<13x32xf32> to vector<13x32xbf16>
      %cst_95 = arith.constant dense<0.000000e+00> : vector<13x64xf32>
      %181 = tpu.matmul %178, %176, %cst_95 {dimension_numbers = #tpu.dot_dimension_numbers<[1], [0], [0], [1], [0, 0, 1, 1], [], []>} : vector<13x32xbf16>, vector<32x64xbf16>, vector<13x64xf32> -> vector<13x64xf32>
      %182 = arith.addf %172, %181 : vector<13x64xf32>
      %cst_96 = arith.constant dense<0.000000e+00> : vector<13x64xf32>
      %183 = tpu.matmul %180, %176, %cst_96 {dimension_numbers = #tpu.dot_dimension_numbers<[1], [0], [0], [1], [0, 0, 1, 1], [], []>} : vector<13x32xbf16>, vector<32x64xbf16>, vector<13x64xf32> -> vector<13x64xf32>
      %184 = arith.addf %174, %183 : vector<13x64xf32>
      %185 = vector.broadcast %16 : vector<1x64xf32> to vector<13x64xf32>
      %186 = arith.addf %182, %185 : vector<13x64xf32>
      %cst_97 = arith.constant 0.000000e+00 : f32
      %187 = vector.broadcast %cst_97 : f32 to vector<13x64xf32>
      %188 = arith.maximumf %186, %187 : vector<13x64xf32>
      %189 = vector.broadcast %16 : vector<1x64xf32> to vector<13x64xf32>
      %190 = arith.addf %184, %189 : vector<13x64xf32>
      %cst_98 = arith.constant 0.000000e+00 : f32
      %191 = vector.broadcast %cst_98 : f32 to vector<13x64xf32>
      %192 = arith.maximumf %190, %191 : vector<13x64xf32>
      %193 = arith.maximumf %188, %192 : vector<13x64xf32>
      %cst_99 = arith.constant dense<0.000000e+00> : vector<6x64xf32>
      %194 = tpu.matmul %23, %193, %cst_99 {dimension_numbers = #tpu.dot_dimension_numbers<[1], [0], [0], [1], [0, 0, 1, 1], [], []>} : vector<6x13xf32>, vector<13x64xf32>, vector<6x64xf32> -> vector<6x64xf32>
      %cst_100 = arith.constant dense<0.000000e+00> : vector<6x64xf32>
      %195 = tpu.matmul %30, %193, %cst_100 {dimension_numbers = #tpu.dot_dimension_numbers<[1], [0], [0], [1], [0, 0, 1, 1], [], []>} : vector<6x13xf32>, vector<13x64xf32>, vector<6x64xf32> -> vector<6x64xf32>
      %196 = arith.maximumf %194, %195 : vector<6x64xf32>
      %c0_101 = arith.constant 0 : index
      %197 = arith.index_cast %arg14 : i32 to index
      %c0_102 = arith.constant 0 : index
      %c0_103 = arith.constant 0 : index
      %198 = vector.load %arg12[%c0_101, %197, %c0_102, %c0_103] : memref<1x6x6x64xf32, #tpu.memory_space<vmem>>, vector<1x1x6x64xf32>
      %199 = vector.shape_cast %198 : vector<1x1x6x64xf32> to vector<6x64xf32>
      %200 = vector.shape_cast %196 : vector<6x64xf32> to vector<1x1x6x64xf32>
      tpu.vector_store %arg12[%c0_101, %197, %c0_102, %c0_103], %200 {strides = array<i32>} : memref<1x6x6x64xf32, #tpu.memory_space<vmem>>, vector<1x1x6x64xf32>,
    }
    %c6_i32_11 = arith.constant 6 : i32
    %cst = arith.constant 0.000000e+00 : f32
    %32 = vector.broadcast %cst : f32 to vector<1x128xf32>
    %c0_12 = arith.constant 0 : index
    %c0_13 = arith.constant 0 : index
    %33 = vector.load %arg13[%c0_12, %c0_13] : memref<1x128xf32, #tpu.memory_space<vmem>>, vector<1x128xf32>
    tpu.vector_store %arg13[%c0_12, %c0_13], %32 {strides = array<i32>} : memref<1x128xf32, #tpu.memory_space<vmem>>, vector<1x128xf32>,
    %c0_14 = arith.constant 0 : index
    %c0_15 = arith.constant 0 : index
    %34 = vector.load %arg7[%c0_14, %c0_15] : memref<1x128xf32, #tpu.memory_space<vmem>>, vector<1x128xf32>
    %35 = tpu.iota {dimensions = array<i32: 0>} : vector<2x4xi32>
    %36 = tpu.iota {dimensions = array<i32: 1>} : vector<2x4xi32>
    %c2_i32_16 = arith.constant 2 : i32
    %37 = vector.broadcast %c2_i32_16 : i32 to vector<2x4xi32>
    %38 = arith.muli %37, %35 : vector<2x4xi32>
    %39 = arith.cmpi eq, %36, %38 : vector<2x4xi32>
    %40 = arith.extui %39 : vector<2x4xi1> to vector<2x4xi32>
    %41 = arith.sitofp %40 : vector<2x4xi32> to vector<2x4xf32>
    %c2_i32_17 = arith.constant 2 : i32
    %42 = vector.broadcast %c2_i32_17 : i32 to vector<2x4xi32>
    %43 = arith.muli %42, %35 : vector<2x4xi32>
    %c1_i32_18 = arith.constant 1 : i32
    %44 = vector.broadcast %c1_i32_18 : i32 to vector<2x4xi32>
    %45 = arith.addi %43, %44 : vector<2x4xi32>
    %46 = arith.cmpi eq, %36, %45 : vector<2x4xi32>
    %47 = arith.extui %46 : vector<2x4xi1> to vector<2x4xi32>
    %48 = arith.sitofp %47 : vector<2x4xi32> to vector<2x4xf32>
    %c0_i32_19 = arith.constant 0 : i32
    %c2_i32_20 = arith.constant 2 : i32
    %49 = arith.addi %c0_i32_19, %c2_i32_20 : i32
    %c1_i32_21 = arith.constant 1 : i32
    scf.for %arg14 = %c0_i32_19 to %49 step %c1_i32_21  : i32 {
      %cst_34 = arith.constant 0.000000e+00 : f32
      %60 = vector.broadcast %cst_34 : f32 to vector<4x128xf32>
      %cst_35 = arith.constant 0.000000e+00 : f32
      %61 = vector.broadcast %cst_35 : f32 to vector<4x128xf32>
      %c2_i32_36 = arith.constant 2 : i32
      %62 = arith.muli %c2_i32_36, %arg14 : i32
      %c0_i32_37 = arith.constant 0 : i32
      %63 = arith.addi %62, %c0_i32_37 : i32
      %c0_38 = arith.constant 0 : index
      %64 = arith.index_cast %63 : i32 to index
      %c0_39 = arith.constant 0 : index
      %c0_40 = arith.constant 0 : index
      %65 = vector.load %arg12[%c0_38, %64, %c0_39, %c0_40] : memref<1x6x6x64xf32, #tpu.memory_space<vmem>>, vector<1x1x6x64xf32>
      %66 = vector.shape_cast %65 : vector<1x1x6x64xf32> to vector<6x64xf32>
      %c2_i32_41 = arith.constant 2 : i32
      %67 = arith.muli %c2_i32_41, %arg14 : i32
      %c1_i32_42 = arith.constant 1 : i32
      %68 = arith.addi %67, %c1_i32_42 : i32
      %c0_i32_43 = arith.constant 0 : i32
      %69 = arith.addi %68, %c0_i32_43 : i32
      %c0_44 = arith.constant 0 : index
      %70 = arith.index_cast %69 : i32 to index
      %c0_45 = arith.constant 0 : index
      %c0_46 = arith.constant 0 : index
      %71 = vector.load %arg12[%c0_44, %70, %c0_45, %c0_46] : memref<1x6x6x64xf32, #tpu.memory_space<vmem>>, vector<1x1x6x64xf32>
      %72 = vector.shape_cast %71 : vector<1x1x6x64xf32> to vector<6x64xf32>
      %c0_47 = arith.constant 0 : index
      %c0_48 = arith.constant 0 : index
      %73 = vector.load %arg6[%c0_47, %c0_48] : memref<576x128xf32, #tpu.memory_space<vmem>>, vector<64x128xf32>
      %74 = arith.truncf %73 : vector<64x128xf32> to vector<64x128xbf16>
      %75 = vector.extract_strided_slice %66 {offsets = [0, 0], sizes = [4, 64], strides = [1, 1]} : vector<6x64xf32> to vector<4x64xf32>
      %76 = arith.truncf %75 : vector<4x64xf32> to vector<4x64xbf16>
      %77 = vector.extract_strided_slice %72 {offsets = [0, 0], sizes = [4, 64], strides = [1, 1]} : vector<6x64xf32> to vector<4x64xf32>
      %78 = arith.truncf %77 : vector<4x64xf32> to vector<4x64xbf16>
      %cst_49 = arith.constant dense<0.000000e+00> : vector<4x128xf32>
      %79 = tpu.matmul %76, %74, %cst_49 {dimension_numbers = #tpu.dot_dimension_numbers<[1], [0], [0], [1], [0, 0, 1, 1], [], []>} : vector<4x64xbf16>, vector<64x128xbf16>, vector<4x128xf32> -> vector<4x128xf32>
      %80 = arith.addf %60, %79 : vector<4x128xf32>
      %cst_50 = arith.constant dense<0.000000e+00> : vector<4x128xf32>
      %81 = tpu.matmul %78, %74, %cst_50 {dimension_numbers = #tpu.dot_dimension_numbers<[1], [0], [0], [1], [0, 0, 1, 1], [], []>} : vector<4x64xbf16>, vector<64x128xbf16>, vector<4x128xf32> -> vector<4x128xf32>
      %82 = arith.addf %61, %81 : vector<4x128xf32>
      %c64 = arith.constant 64 : index
      %c0_51 = arith.constant 0 : index
      %83 = vector.load %arg6[%c64, %c0_51] : memref<576x128xf32, #tpu.memory_space<vmem>>, vector<64x128xf32>
      %84 = arith.truncf %83 : vector<64x128xf32> to vector<64x128xbf16>
      %85 = vector.extract_strided_slice %66 {offsets = [1, 0], sizes = [4, 64], strides = [1, 1]} : vector<6x64xf32> to vector<4x64xf32>
      %86 = arith.truncf %85 : vector<4x64xf32> to vector<4x64xbf16>
      %87 = vector.extract_strided_slice %72 {offsets = [1, 0], sizes = [4, 64], strides = [1, 1]} : vector<6x64xf32> to vector<4x64xf32>
      %88 = arith.truncf %87 : vector<4x64xf32> to vector<4x64xbf16>
      %cst_52 = arith.constant dense<0.000000e+00> : vector<4x128xf32>
      %89 = tpu.matmul %86, %84, %cst_52 {dimension_numbers = #tpu.dot_dimension_numbers<[1], [0], [0], [1], [0, 0, 1, 1], [], []>} : vector<4x64xbf16>, vector<64x128xbf16>, vector<4x128xf32> -> vector<4x128xf32>
      %90 = arith.addf %80, %89 : vector<4x128xf32>
      %cst_53 = arith.constant dense<0.000000e+00> : vector<4x128xf32>
      %91 = tpu.matmul %88, %84, %cst_53 {dimension_numbers = #tpu.dot_dimension_numbers<[1], [0], [0], [1], [0, 0, 1, 1], [], []>} : vector<4x64xbf16>, vector<64x128xbf16>, vector<4x128xf32> -> vector<4x128xf32>
      %92 = arith.addf %82, %91 : vector<4x128xf32>
      %c128 = arith.constant 128 : index
      %c0_54 = arith.constant 0 : index
      %93 = vector.load %arg6[%c128, %c0_54] : memref<576x128xf32, #tpu.memory_space<vmem>>, vector<64x128xf32>
      %94 = arith.truncf %93 : vector<64x128xf32> to vector<64x128xbf16>
      %95 = vector.extract_strided_slice %66 {offsets = [2, 0], sizes = [4, 64], strides = [1, 1]} : vector<6x64xf32> to vector<4x64xf32>
      %96 = arith.truncf %95 : vector<4x64xf32> to vector<4x64xbf16>
      %97 = vector.extract_strided_slice %72 {offsets = [2, 0], sizes = [4, 64], strides = [1, 1]} : vector<6x64xf32> to vector<4x64xf32>
      %98 = arith.truncf %97 : vector<4x64xf32> to vector<4x64xbf16>
      %cst_55 = arith.constant dense<0.000000e+00> : vector<4x128xf32>
      %99 = tpu.matmul %96, %94, %cst_55 {dimension_numbers = #tpu.dot_dimension_numbers<[1], [0], [0], [1], [0, 0, 1, 1], [], []>} : vector<4x64xbf16>, vector<64x128xbf16>, vector<4x128xf32> -> vector<4x128xf32>
      %100 = arith.addf %90, %99 : vector<4x128xf32>
      %cst_56 = arith.constant dense<0.000000e+00> : vector<4x128xf32>
      %101 = tpu.matmul %98, %94, %cst_56 {dimension_numbers = #tpu.dot_dimension_numbers<[1], [0], [0], [1], [0, 0, 1, 1], [], []>} : vector<4x64xbf16>, vector<64x128xbf16>, vector<4x128xf32> -> vector<4x128xf32>
      %102 = arith.addf %92, %101 : vector<4x128xf32>
      %c2_i32_57 = arith.constant 2 : i32
      %103 = arith.muli %c2_i32_57, %arg14 : i32
      %c1_i32_58 = arith.constant 1 : i32
      %104 = arith.addi %103, %c1_i32_58 : i32
      %c0_59 = arith.constant 0 : index
      %105 = arith.index_cast %104 : i32 to index
      %c0_60 = arith.constant 0 : index
      %c0_61 = arith.constant 0 : index
      %106 = vector.load %arg12[%c0_59, %105, %c0_60, %c0_61] : memref<1x6x6x64xf32, #tpu.memory_space<vmem>>, vector<1x1x6x64xf32>
      %107 = vector.shape_cast %106 : vector<1x1x6x64xf32> to vector<6x64xf32>
      %c2_i32_62 = arith.constant 2 : i32
      %108 = arith.muli %c2_i32_62, %arg14 : i32
      %c1_i32_63 = arith.constant 1 : i32
      %109 = arith.addi %108, %c1_i32_63 : i32
      %c1_i32_64 = arith.constant 1 : i32
      %110 = arith.addi %109, %c1_i32_64 : i32
      %c0_65 = arith.constant 0 : index
      %111 = arith.index_cast %110 : i32 to index
      %c0_66 = arith.constant 0 : index
      %c0_67 = arith.constant 0 : index
      %112 = vector.load %arg12[%c0_65, %111, %c0_66, %c0_67] : memref<1x6x6x64xf32, #tpu.memory_space<vmem>>, vector<1x1x6x64xf32>
      %113 = vector.shape_cast %112 : vector<1x1x6x64xf32> to vector<6x64xf32>
      %c192 = arith.constant 192 : index
      %c0_68 = arith.constant 0 : index
      %114 = vector.load %arg6[%c192, %c0_68] : memref<576x128xf32, #tpu.memory_space<vmem>>, vector<64x128xf32>
      %115 = arith.truncf %114 : vector<64x128xf32> to vector<64x128xbf16>
      %116 = vector.extract_strided_slice %107 {offsets = [0, 0], sizes = [4, 64], strides = [1, 1]} : vector<6x64xf32> to vector<4x64xf32>
      %117 = arith.truncf %116 : vector<4x64xf32> to vector<4x64xbf16>
      %118 = vector.extract_strided_slice %113 {offsets = [0, 0], sizes = [4, 64], strides = [1, 1]} : vector<6x64xf32> to vector<4x64xf32>
      %119 = arith.truncf %118 : vector<4x64xf32> to vector<4x64xbf16>
      %cst_69 = arith.constant dense<0.000000e+00> : vector<4x128xf32>
      %120 = tpu.matmul %117, %115, %cst_69 {dimension_numbers = #tpu.dot_dimension_numbers<[1], [0], [0], [1], [0, 0, 1, 1], [], []>} : vector<4x64xbf16>, vector<64x128xbf16>, vector<4x128xf32> -> vector<4x128xf32>
      %121 = arith.addf %100, %120 : vector<4x128xf32>
      %cst_70 = arith.constant dense<0.000000e+00> : vector<4x128xf32>
      %122 = tpu.matmul %119, %115, %cst_70 {dimension_numbers = #tpu.dot_dimension_numbers<[1], [0], [0], [1], [0, 0, 1, 1], [], []>} : vector<4x64xbf16>, vector<64x128xbf16>, vector<4x128xf32> -> vector<4x128xf32>
      %123 = arith.addf %102, %122 : vector<4x128xf32>
      %c256 = arith.constant 256 : index
      %c0_71 = arith.constant 0 : index
      %124 = vector.load %arg6[%c256, %c0_71] : memref<576x128xf32, #tpu.memory_space<vmem>>, vector<64x128xf32>
      %125 = arith.truncf %124 : vector<64x128xf32> to vector<64x128xbf16>
      %126 = vector.extract_strided_slice %107 {offsets = [1, 0], sizes = [4, 64], strides = [1, 1]} : vector<6x64xf32> to vector<4x64xf32>
      %127 = arith.truncf %126 : vector<4x64xf32> to vector<4x64xbf16>
      %128 = vector.extract_strided_slice %113 {offsets = [1, 0], sizes = [4, 64], strides = [1, 1]} : vector<6x64xf32> to vector<4x64xf32>
      %129 = arith.truncf %128 : vector<4x64xf32> to vector<4x64xbf16>
      %cst_72 = arith.constant dense<0.000000e+00> : vector<4x128xf32>
      %130 = tpu.matmul %127, %125, %cst_72 {dimension_numbers = #tpu.dot_dimension_numbers<[1], [0], [0], [1], [0, 0, 1, 1], [], []>} : vector<4x64xbf16>, vector<64x128xbf16>, vector<4x128xf32> -> vector<4x128xf32>
      %131 = arith.addf %121, %130 : vector<4x128xf32>
      %cst_73 = arith.constant dense<0.000000e+00> : vector<4x128xf32>
      %132 = tpu.matmul %129, %125, %cst_73 {dimension_numbers = #tpu.dot_dimension_numbers<[1], [0], [0], [1], [0, 0, 1, 1], [], []>} : vector<4x64xbf16>, vector<64x128xbf16>, vector<4x128xf32> -> vector<4x128xf32>
      %133 = arith.addf %123, %132 : vector<4x128xf32>
      %c320 = arith.constant 320 : index
      %c0_74 = arith.constant 0 : index
      %134 = vector.load %arg6[%c320, %c0_74] : memref<576x128xf32, #tpu.memory_space<vmem>>, vector<64x128xf32>
      %135 = arith.truncf %134 : vector<64x128xf32> to vector<64x128xbf16>
      %136 = vector.extract_strided_slice %107 {offsets = [2, 0], sizes = [4, 64], strides = [1, 1]} : vector<6x64xf32> to vector<4x64xf32>
      %137 = arith.truncf %136 : vector<4x64xf32> to vector<4x64xbf16>
      %138 = vector.extract_strided_slice %113 {offsets = [2, 0], sizes = [4, 64], strides = [1, 1]} : vector<6x64xf32> to vector<4x64xf32>
      %139 = arith.truncf %138 : vector<4x64xf32> to vector<4x64xbf16>
      %cst_75 = arith.constant dense<0.000000e+00> : vector<4x128xf32>
      %140 = tpu.matmul %137, %135, %cst_75 {dimension_numbers = #tpu.dot_dimension_numbers<[1], [0], [0], [1], [0, 0, 1, 1], [], []>} : vector<4x64xbf16>, vector<64x128xbf16>, vector<4x128xf32> -> vector<4x128xf32>
      %141 = arith.addf %131, %140 : vector<4x128xf32>
      %cst_76 = arith.constant dense<0.000000e+00> : vector<4x128xf32>
      %142 = tpu.matmul %139, %135, %cst_76 {dimension_numbers = #tpu.dot_dimension_numbers<[1], [0], [0], [1], [0, 0, 1, 1], [], []>} : vector<4x64xbf16>, vector<64x128xbf16>, vector<4x128xf32> -> vector<4x128xf32>
      %143 = arith.addf %133, %142 : vector<4x128xf32>
      %c2_i32_77 = arith.constant 2 : i32
      %144 = arith.muli %c2_i32_77, %arg14 : i32
      %c2_i32_78 = arith.constant 2 : i32
      %145 = arith.addi %144, %c2_i32_78 : i32
      %c0_79 = arith.constant 0 : index
      %146 = arith.index_cast %145 : i32 to index
      %c0_80 = arith.constant 0 : index
      %c0_81 = arith.constant 0 : index
      %147 = vector.load %arg12[%c0_79, %146, %c0_80, %c0_81] : memref<1x6x6x64xf32, #tpu.memory_space<vmem>>, vector<1x1x6x64xf32>
      %148 = vector.shape_cast %147 : vector<1x1x6x64xf32> to vector<6x64xf32>
      %c2_i32_82 = arith.constant 2 : i32
      %149 = arith.muli %c2_i32_82, %arg14 : i32
      %c1_i32_83 = arith.constant 1 : i32
      %150 = arith.addi %149, %c1_i32_83 : i32
      %c2_i32_84 = arith.constant 2 : i32
      %151 = arith.addi %150, %c2_i32_84 : i32
      %c0_85 = arith.constant 0 : index
      %152 = arith.index_cast %151 : i32 to index
      %c0_86 = arith.constant 0 : index
      %c0_87 = arith.constant 0 : index
      %153 = vector.load %arg12[%c0_85, %152, %c0_86, %c0_87] : memref<1x6x6x64xf32, #tpu.memory_space<vmem>>, vector<1x1x6x64xf32>
      %154 = vector.shape_cast %153 : vector<1x1x6x64xf32> to vector<6x64xf32>
      %c384 = arith.constant 384 : index
      %c0_88 = arith.constant 0 : index
      %155 = vector.load %arg6[%c384, %c0_88] : memref<576x128xf32, #tpu.memory_space<vmem>>, vector<64x128xf32>
      %156 = arith.truncf %155 : vector<64x128xf32> to vector<64x128xbf16>
      %157 = vector.extract_strided_slice %148 {offsets = [0, 0], sizes = [4, 64], strides = [1, 1]} : vector<6x64xf32> to vector<4x64xf32>
      %158 = arith.truncf %157 : vector<4x64xf32> to vector<4x64xbf16>
      %159 = vector.extract_strided_slice %154 {offsets = [0, 0], sizes = [4, 64], strides = [1, 1]} : vector<6x64xf32> to vector<4x64xf32>
      %160 = arith.truncf %159 : vector<4x64xf32> to vector<4x64xbf16>
      %cst_89 = arith.constant dense<0.000000e+00> : vector<4x128xf32>
      %161 = tpu.matmul %158, %156, %cst_89 {dimension_numbers = #tpu.dot_dimension_numbers<[1], [0], [0], [1], [0, 0, 1, 1], [], []>} : vector<4x64xbf16>, vector<64x128xbf16>, vector<4x128xf32> -> vector<4x128xf32>
      %162 = arith.addf %141, %161 : vector<4x128xf32>
      %cst_90 = arith.constant dense<0.000000e+00> : vector<4x128xf32>
      %163 = tpu.matmul %160, %156, %cst_90 {dimension_numbers = #tpu.dot_dimension_numbers<[1], [0], [0], [1], [0, 0, 1, 1], [], []>} : vector<4x64xbf16>, vector<64x128xbf16>, vector<4x128xf32> -> vector<4x128xf32>
      %164 = arith.addf %143, %163 : vector<4x128xf32>
      %c448 = arith.constant 448 : index
      %c0_91 = arith.constant 0 : index
      %165 = vector.load %arg6[%c448, %c0_91] : memref<576x128xf32, #tpu.memory_space<vmem>>, vector<64x128xf32>
      %166 = arith.truncf %165 : vector<64x128xf32> to vector<64x128xbf16>
      %167 = vector.extract_strided_slice %148 {offsets = [1, 0], sizes = [4, 64], strides = [1, 1]} : vector<6x64xf32> to vector<4x64xf32>
      %168 = arith.truncf %167 : vector<4x64xf32> to vector<4x64xbf16>
      %169 = vector.extract_strided_slice %154 {offsets = [1, 0], sizes = [4, 64], strides = [1, 1]} : vector<6x64xf32> to vector<4x64xf32>
      %170 = arith.truncf %169 : vector<4x64xf32> to vector<4x64xbf16>
      %cst_92 = arith.constant dense<0.000000e+00> : vector<4x128xf32>
      %171 = tpu.matmul %168, %166, %cst_92 {dimension_numbers = #tpu.dot_dimension_numbers<[1], [0], [0], [1], [0, 0, 1, 1], [], []>} : vector<4x64xbf16>, vector<64x128xbf16>, vector<4x128xf32> -> vector<4x128xf32>
      %172 = arith.addf %162, %171 : vector<4x128xf32>
      %cst_93 = arith.constant dense<0.000000e+00> : vector<4x128xf32>
      %173 = tpu.matmul %170, %166, %cst_93 {dimension_numbers = #tpu.dot_dimension_numbers<[1], [0], [0], [1], [0, 0, 1, 1], [], []>} : vector<4x64xbf16>, vector<64x128xbf16>, vector<4x128xf32> -> vector<4x128xf32>
      %174 = arith.addf %164, %173 : vector<4x128xf32>
      %c512 = arith.constant 512 : index
      %c0_94 = arith.constant 0 : index
      %175 = vector.load %arg6[%c512, %c0_94] : memref<576x128xf32, #tpu.memory_space<vmem>>, vector<64x128xf32>
      %176 = arith.truncf %175 : vector<64x128xf32> to vector<64x128xbf16>
      %177 = vector.extract_strided_slice %148 {offsets = [2, 0], sizes = [4, 64], strides = [1, 1]} : vector<6x64xf32> to vector<4x64xf32>
      %178 = arith.truncf %177 : vector<4x64xf32> to vector<4x64xbf16>
      %179 = vector.extract_strided_slice %154 {offsets = [2, 0], sizes = [4, 64], strides = [1, 1]} : vector<6x64xf32> to vector<4x64xf32>
      %180 = arith.truncf %179 : vector<4x64xf32> to vector<4x64xbf16>
      %cst_95 = arith.constant dense<0.000000e+00> : vector<4x128xf32>
      %181 = tpu.matmul %178, %176, %cst_95 {dimension_numbers = #tpu.dot_dimension_numbers<[1], [0], [0], [1], [0, 0, 1, 1], [], []>} : vector<4x64xbf16>, vector<64x128xbf16>, vector<4x128xf32> -> vector<4x128xf32>
      %182 = arith.addf %172, %181 : vector<4x128xf32>
      %cst_96 = arith.constant dense<0.000000e+00> : vector<4x128xf32>
      %183 = tpu.matmul %180, %176, %cst_96 {dimension_numbers = #tpu.dot_dimension_numbers<[1], [0], [0], [1], [0, 0, 1, 1], [], []>} : vector<4x64xbf16>, vector<64x128xbf16>, vector<4x128xf32> -> vector<4x128xf32>
      %184 = arith.addf %174, %183 : vector<4x128xf32>
      %185 = vector.broadcast %34 : vector<1x128xf32> to vector<4x128xf32>
      %186 = arith.addf %182, %185 : vector<4x128xf32>
      %cst_97 = arith.constant 0.000000e+00 : f32
      %187 = vector.broadcast %cst_97 : f32 to vector<4x128xf32>
      %188 = arith.maximumf %186, %187 : vector<4x128xf32>
      %189 = vector.broadcast %34 : vector<1x128xf32> to vector<4x128xf32>
      %190 = arith.addf %184, %189 : vector<4x128xf32>
      %cst_98 = arith.constant 0.000000e+00 : f32
      %191 = vector.broadcast %cst_98 : f32 to vector<4x128xf32>
      %192 = arith.maximumf %190, %191 : vector<4x128xf32>
      %193 = arith.maximumf %188, %192 : vector<4x128xf32>
      %cst_99 = arith.constant dense<0.000000e+00> : vector<2x128xf32>
      %194 = tpu.matmul %41, %193, %cst_99 {dimension_numbers = #tpu.dot_dimension_numbers<[1], [0], [0], [1], [0, 0, 1, 1], [], []>} : vector<2x4xf32>, vector<4x128xf32>, vector<2x128xf32> -> vector<2x128xf32>
      %cst_100 = arith.constant dense<0.000000e+00> : vector<2x128xf32>
      %195 = tpu.matmul %48, %193, %cst_100 {dimension_numbers = #tpu.dot_dimension_numbers<[1], [0], [0], [1], [0, 0, 1, 1], [], []>} : vector<2x4xf32>, vector<4x128xf32>, vector<2x128xf32> -> vector<2x128xf32>
      %196 = arith.maximumf %194, %195 : vector<2x128xf32>
      %c0_101 = arith.constant 0 : index
      %c0_102 = arith.constant 0 : index
      %197 = vector.load %arg13[%c0_101, %c0_102] : memref<1x128xf32, #tpu.memory_space<vmem>>, vector<1x128xf32>
      %cst_103 = arith.constant dense<0.000000e+00> : vector<128xf32>
      %198 = vector.multi_reduction <add>, %196, %cst_103 [0] : vector<2x128xf32> to vector<128xf32>
      %199 = vector.shape_cast %198 : vector<128xf32> to vector<1x128xf32>
      %200 = arith.addf %197, %199 : vector<1x128xf32>
      %c0_104 = arith.constant 0 : index
      %c0_105 = arith.constant 0 : index
      %201 = vector.load %arg13[%c0_104, %c0_105] : memref<1x128xf32, #tpu.memory_space<vmem>>, vector<1x128xf32>
      tpu.vector_store %arg13[%c0_104, %c0_105], %200 {strides = array<i32>} : memref<1x128xf32, #tpu.memory_space<vmem>>, vector<1x128xf32>,
    }
    %c2_i32_22 = arith.constant 2 : i32
    %c0_23 = arith.constant 0 : index
    %c0_24 = arith.constant 0 : index
    %50 = vector.load %arg13[%c0_23, %c0_24] : memref<1x128xf32, #tpu.memory_space<vmem>>, vector<1x128xf32>
    %cst_25 = arith.constant 2.500000e-01 : f32
    %51 = vector.broadcast %cst_25 : f32 to vector<1x128xf32>
    %52 = arith.mulf %50, %51 : vector<1x128xf32>
    %c0_26 = arith.constant 0 : index
    %c0_27 = arith.constant 0 : index
    %53 = vector.load %arg8[%c0_26, %c0_27] : memref<128x10xf32, #tpu.memory_space<vmem>>, vector<128x10xf32>
    %cst_28 = arith.constant dense<0.000000e+00> : vector<1x10xf32>
    %54 = tpu.matmul %52, %53, %cst_28 {dimension_numbers = #tpu.dot_dimension_numbers<[1], [0], [0], [1], [0, 0, 1, 1], [], []>} : vector<1x128xf32>, vector<128x10xf32>, vector<1x10xf32> -> vector<1x10xf32>
    %c0_29 = arith.constant 0 : index
    %c0_30 = arith.constant 0 : index
    %55 = vector.load %arg9[%c0_29, %c0_30] : memref<1x10xf32, #tpu.memory_space<vmem>>, vector<1x10xf32>
    %56 = arith.addf %54, %55 : vector<1x10xf32>
    %c0_31 = arith.constant 0 : index
    %c0_32 = arith.constant 0 : index
    %c0_33 = arith.constant 0 : index
    %57 = vector.load %arg10[%c0_31, %c0_32, %c0_33] : memref<1x1x10xf32, #tpu.memory_space<vmem>>, vector<1x1x10xf32>
    %58 = vector.shape_cast %57 : vector<1x1x10xf32> to vector<1x10xf32>
    %59 = vector.shape_cast %56 : vector<1x10xf32> to vector<1x1x10xf32>
    tpu.vector_store %arg10[%c0_31, %c0_32, %c0_33], %59 {strides = array<i32>} : memref<1x1x10xf32, #tpu.memory_space<vmem>>, vector<1x1x10xf32>,
    return
  }
  func.func @transform_0(%arg0: i32) -> (i32, i32, i32, i32) {
    %c0_i32 = arith.constant 0 : i32
    %c0_i32_0 = arith.constant 0 : i32
    %c0_i32_1 = arith.constant 0 : i32
    %c0_i32_2 = arith.constant 0 : i32
    return %arg0, %c0_i32, %c0_i32_0, %c0_i32_1 : i32, i32, i32, i32
  }
  func.func @transform_1(%arg0: i32) -> (i32, i32) {
    %c0_i32 = arith.constant 0 : i32
    %c0_i32_0 = arith.constant 0 : i32
    %c0_i32_1 = arith.constant 0 : i32
    return %c0_i32, %c0_i32_0 : i32, i32
  }
  func.func @transform_2(%arg0: i32) -> (i32, i32) {
    %c0_i32 = arith.constant 0 : i32
    %c0_i32_0 = arith.constant 0 : i32
    %c0_i32_1 = arith.constant 0 : i32
    return %c0_i32, %c0_i32_0 : i32, i32
  }
  func.func @transform_3(%arg0: i32) -> (i32, i32) {
    %c0_i32 = arith.constant 0 : i32
    %c0_i32_0 = arith.constant 0 : i32
    %c0_i32_1 = arith.constant 0 : i32
    return %c0_i32, %c0_i32_0 : i32, i32
  }
  func.func @transform_4(%arg0: i32) -> (i32, i32) {
    %c0_i32 = arith.constant 0 : i32
    %c0_i32_0 = arith.constant 0 : i32
    %c0_i32_1 = arith.constant 0 : i32
    return %c0_i32, %c0_i32_0 : i32, i32
  }
  func.func @transform_5(%arg0: i32) -> (i32, i32) {
    %c0_i32 = arith.constant 0 : i32
    %c0_i32_0 = arith.constant 0 : i32
    %c0_i32_1 = arith.constant 0 : i32
    return %c0_i32, %c0_i32_0 : i32, i32
  }
  func.func @transform_6(%arg0: i32) -> (i32, i32) {
    %c0_i32 = arith.constant 0 : i32
    %c0_i32_0 = arith.constant 0 : i32
    %c0_i32_1 = arith.constant 0 : i32
    return %c0_i32, %c0_i32_0 : i32, i32
  }
  func.func @transform_7(%arg0: i32) -> (i32, i32) {
    %c0_i32 = arith.constant 0 : i32
    %c0_i32_0 = arith.constant 0 : i32
    %c0_i32_1 = arith.constant 0 : i32
    return %c0_i32, %c0_i32_0 : i32, i32
  }
  func.func @transform_8(%arg0: i32) -> (i32, i32) {
    %c0_i32 = arith.constant 0 : i32
    %c0_i32_0 = arith.constant 0 : i32
    %c0_i32_1 = arith.constant 0 : i32
    return %c0_i32, %c0_i32_0 : i32, i32
  }
  func.func @transform_9(%arg0: i32) -> (i32, i32, i32) {
    %c0_i32 = arith.constant 0 : i32
    %c0_i32_0 = arith.constant 0 : i32
    %c0_i32_1 = arith.constant 0 : i32
    return %arg0, %c0_i32, %c0_i32_0 : i32, i32, i32
  }
}

</mosaic_0001>

<bundles_post_ra>
// kernel: mynet_forward.1
= control target key start
LH: loop header
LB: loop body
LE: loop exit
PB: predicated region body
PF: predicated region fallthrough
CT: control target
= control target key end

     0   :  { %14 = vsyncpa [#allocation6], 0  ;;  %s6501_s0 = inlined_call_operand.vmem [shape: f32[2,32,32,3], index: 0, kind: input, shape index: {}]   ;;  %s6502_s1 = inlined_call_operand.vmem [shape: f32[27,32], index: 1, kind: input, shape index: {}]   ;;  %s6503_s2 = inlined_call_operand.vmem [shape: f32[1,32], index: 2, kind: input, shape index: {}]   ;;  %s6504_s3 = inlined_call_operand.vmem [shape: f32[288,64], index: 3, kind: input, shape index: {}]   ;;  %s6505_s4 = inlined_call_operand.vmem [shape: f32[1,64], index: 4, kind: input, shape index: {}]   ;;  %s6506_s5 = inlined_call_operand.vmem [shape: f32[576,128], index: 5, kind: input, shape index: {}]   ;;  %s6507_s6 = inlined_call_operand.vmem [shape: f32[1,128], index: 6, kind: input, shape index: {}]   ;;  %s6508_s7 = inlined_call_operand.vmem [shape: f32[128,10], index: 7, kind: input, shape index: {}]   ;;  %s6509_s8 = inlined_call_operand.vmem [shape: f32[1,10], index: 8, kind: input, shape index: {}]   ;;  %s6510_s9 = inlined_call_operand.hbm [shape: f32[2,1,10], index: 9, kind: output, shape index: {}]  }
   0x1   :  { %16 = vsyncpa [#allocation6 + $0x1], 0  ;;  %s5443_s30 = smov 0   ;;  %s5445_s10 = smov 0  }
   0x2   :  { %s5447_s11 = smov 0   ;;  %s5449_s12 = smov 0  }
   0x3 LB: > { %s5464_s13 = sadd.s32 4294967295, %s5367_s12   ;;  %s4155_s14 = sadd.s32 4294967294, %s5367_s12   ;;  %s5367_s12 = sphi %s5449_s12, %s6518_s12   ;;  %s5363_s11 = sphi %s5447_s11, %s6517_s11   ;;  %s5359_s10 = sphi %s5445_s10, %s6516_s10   ;;  %s5355_s30 = sphi %s5443_s30, %s6515_s30  }
   0x4   : > { %s5468_s15 = sadd.s32 1, %s5367_s12   ;;  %s223_s16 = sadd.s32 1, %s5363_s11 }
   0x5   : > { %s220_s17 = ssub.s32 %s5367_s12, %s5468_s15  ;;  %p233_p0 = scmp.ne.s32.totalorder %s5363_s11, %s5359_s10 }
   0x6   : > { %p221_p1 = scmp.eq.s32.totalorder %s220_s17, 0  ;;  %p234_p2 = scmp.eq.s32.totalorder %s5464_s13, 1 }
   0x7   : > { %p239_p3 = scmp.ne.s32.totalorder %s5359_s10, %s5355_s30  ;;  %p240_p4 = scmp.eq.s32.totalorder %s4155_s14, 1 }
   0x8   : > { %s5479_s18 = scalar_select %p221_p1, %s5363_s11, %s223_s16  }
   0x9   : > { %p5481_p5 = por %p234_p2, %p233_p0  ;;  %p5485_p6 = por %p240_p4, %p239_p3 }
   0xa   : > { %p4158_p7 = scmp.ge.s32.totalorder %s5367_s12, 1  ;;  %p290_p8 = scmp.lt.s32.totalorder %s5367_s12, 3 }
   0xc   : > { %p291_p9 = pnand %p4158_p7, %p290_p8 }
   0xd   : > { %s6511_s21 = sand.u32 (!%p291_p9), 1, %s5359_s10   ;;  %p325_p10 = scmp.lt.s32.totalorder (!%p291_p9), %s5464_s13, 1  ;;  %v5496_v0 = vld [vmem:[%s6503_s2] ss:$0 sm:$0xff] (!%p291_p9)  ;;  %v332_v1 = vlaneseq (!%p291_p9)  ;;  %v5381_v8 = vmov (!%p291_p9), 0.0  }
   0xe   : > { %294 = sbr.rel (%p291_p9) target bundleno = 1938 (0x792), region = 56  ;;  %s5518_s29 = scalar_lea.vmem (!%p291_p9), [#allocation5], %s6511_s21 }
   0xf   : > { %v333_v2 = vshrl.u32 (!%p291_p9), %v332_v1, 7  ;;  %v336_v3 = vand.u32 (!%p291_p9), 127, %v332_v1  ;;  %s5520_s14 = smov (!%p291_p9), 0  }
  0x11   : > { %v334_v4 = vadd.s32 (!%p291_p9), 8, %v333_v2  ;;  %v337_v5 = vmul.u32 (!%p291_p9), 2, %v333_v2 }
  0x13   : > { %v338_v6 = vmul.u32 (!%p291_p9), 2, %v334_v4  ;;  %vm339_vm0 = vcmp.eq.s32.totalorder (!%p291_p9), %v336_v3, %v337_v5  ;;  %v345_v7 = vadd.s32 (!%p291_p9), 1, %v337_v5 }
  0x14   : > { %v5505_v9 = vsel (!%p291_p9), %vm339_vm0, 1.0, %v5381_v8 }
  0x15   : > { %s326_s24 = scalar_select %p325_p10, %s5464_s13, 1  ;;  %vm340_vm1 = vcmp.eq.s32.totalorder %v336_v3, %v338_v6  ;;  %v346_v10 = vadd.s32 1, %v338_v6  ;;  %vm347_vm2 = vcmp.eq.s32.totalorder %v336_v3, %v345_v7 }
  0x16   : > { %v5508_v11 = vsel %vm340_vm1, 1.0, %v5381_v8  ;;  %v5511_v12 = vsel %vm347_vm2, 1.0, %v5381_v8 }
  0x17   : > { %s4304_s25 = sshll.u32 %s326_s24, 10  ;;  %vm348_vm3 = vcmp.eq.s32.totalorder %v336_v3, %v346_v10 }
  0x18   : > { %s5502_s28 = scalar_lea.vmem %s6501_s0, %s4304_s25  ;;  %v5514_v13 = vsel %vm348_vm3, 1.0, %v5381_v8 }
  0x19 LB: >> { %v379_v14 = vld [vmem:[%s6502_s1 + $0x3] sm:$0x7]  ;;  %vm404_vm4 = vcmask 1040384   ;;  %vm405_vm5 = vcmask 1041408   ;;  %v5382_v16 = vmov 65535   ;;  %s4305_s24 = sshll.u32 %s5371_s14, 6  ;;  %s5371_s14 = sphi %s5520_s14, %s358_s14  }
  0x1a   : >> { %v380_v15 = vpack.c.bf16 %v379_v14, %v379_v14  ;;  %v406_v17 = vsel %vm404_vm4, 4294967295, %v5382_v16  ;;  %v373_v18 = vld [vmem:[%s6502_s1] sm:$0x7]  ;;  %s5537_s25 = scalar_lea.vmem %s5502_s28, %s4305_s24  ;;  %v639_v37 = vld [vmem:[%s6502_s1 + $0x6] sm:$0x7]  ;;  %vm397_vm7 = vcmask 23552  }
  0x1b   : >> { %v5532_v19 = vsel %vm405_vm5, %v406_v17, 0  ;;  %v374_v20 = vpack.c.bf16 %v373_v18, %v373_v18  ;;  %v362_v22 = vld [vmem:[%s5537_s25] sm:$0xff]  ;;  %v363_v23 = vld [vmem:[%s5537_s25 + $0x8] sm:$0xff]  ;;  %v364_v24 = vld [vmem:[%s5537_s25 + $0x10] sm:$0xff]  ;;  %vm381_vm6 = vsmask.f32 7424  ;;  %v640_v47 = vpack.c.bf16 %v639_v37, %v639_v37 }
  0x1c   : >> { %v409_v21 = vand.u32 %v5532_v19, %v380_v15  ;;  %v365_v26 = vld [vmem:[%s5537_s25 + $0x18] sm:$0xff]  ;;  %v5544_v27 = vpack.c.bf16 %v363_v23, %v362_v22  ;;  %v4169_v28 = vld [vmem:[%s5537_s25 + $0x20] sm:$0xff]  ;;  %v4170_v29 = vld [vmem:[%s5537_s25 + $0x28] sm:$0xff]  ;;  %vm643_vm8 = vcmask 1046528   ;;  %vm1555_vm9 = vcmask 244736   ;;  %s4228_s24 = sshll.u32 %s5371_s14, 4 }
  0x1d   : >> { %v465_v25 = vand.u32 %v5532_v19, %v374_v20  ;;  %v5548_v30 = vpack.c.bf16 %v365_v26, %v364_v24  ;;  %v4171_v31 = vld [vmem:[%s5537_s25 + $0x30] sm:$0xff]  ;;  %v4172_v32 = vld [vmem:[%s5537_s25 + $0x38] sm:$0xff]  ;;  %v5552_v33 = vpack.c.bf16 %v4170_v29, %v4169_v28  ;;  %v4205_v54 = vld [vmem:[%s5537_s25 + $0x60] sm:$0xff]  ;;  %v654_v57 = vand.u32 %v640_v47, %v5532_v19  ;;  %s358_s14 = sadd.s32 1, %s5371_s14  }
  0x1e   : >> { %4554 = vmatprep.subr.bf16.mxu0 %v409_v21  ;;  %4566 = vmatprep.subr.bf16.mxu1 %v409_v21  ;;  %v383_v34 = vshrl.u32 %v5544_v27, 16  ;;  %v385_v35 = vshll.u32 %v5544_v27, 16  ;;  %v5556_v36 = vpack.c.bf16 %v4172_v32, %v4171_v31  ;;  %v4206_v55 = vld [vmem:[%s5537_s25 + $0x68] sm:$0xff]  ;;  %v4207_v58 = vld [vmem:[%s5537_s25 + $0x70] sm:$0xff]  ;;  %v4208_v59 = vld [vmem:[%s5537_s25 + $0x78] sm:$0xff]  ;;  %v644_v10 = vrot.slane %v5544_v27, 1 }
  0x1f   : >> { %4555 = vmatpush3.bf16.msra.mxu0 %v409_v21  ;;  %4567 = vmatpush3.bf16.msra.mxu1 %v409_v21  ;;  %v390_v38 = vshll.u32 %v5548_v30, 16  ;;  %v394_v39 = vshrl.u32 %v5548_v30, 16  ;;  %v517_v40 = vshrl.u32 %v5552_v33, 16  ;;  %v519_v41 = vshll.u32 %v5552_v33, 16  ;;  %v780_v62 = vld [vmem:[%s6502_s1 + $0x9] sm:$0x7] }
  0x20   : >> { %4560 = vmatprep.subr.bf16.mxu0 %v465_v25  ;;  %4572 = vmatprep.subr.bf16.mxu1 %v465_v25  ;;  %v387_v42 = vrot.slane %v385_v35, 1  ;;  %v524_v43 = vshll.u32 %v5556_v36, 16  ;;  %v528_v44 = vshrl.u32 %v5556_v36, 16  ;;  %v5584_v60 = vpack.c.bf16 %v4206_v55, %v4205_v54  ;;  %v899_v24 = vld [vmem:[%s6502_s1 + $0xc] sm:$0x7]  ;;  %v4189_v29 = vld [vmem:[%s5537_s25 + $0x50] sm:$0xff] }
  0x21   : >> { %v392_v45 = vrot.slane %v390_v38, 1  ;;  %v521_v46 = vrot.slane %v519_v41, 1  ;;  %v5588_v61 = vpack.c.bf16 %v4208_v59, %v4207_v58  ;;  %v781_v6 = vpack.c.bf16 %v780_v62, %v780_v62  ;;  %v4188_v26 = vld [vmem:[%s5537_s25 + $0x48] sm:$0xff]  ;;  %p355_p11 = scmp.ge.s32.totalorder %s358_s14, 15  }
  0x22   : >> { %v388_v48 = vor.u32 %v387_v42, %v383_v34  ;;  %v526_v49 = vrot.slane %v524_v43, 1  ;;  %v1335_v63 = vshrl.u32 %v5584_v60, 16  ;;  %v1337_v1 = vshll.u32 %v5584_v60, 16  ;;  %s5719_s16 = smov (%p355_p11), 0  }
  0x23   : >> { %v396_v50 = vor.u32 %v394_v39, %v392_v45  ;;  %v522_v51 = vor.u32 %v521_v46, %v517_v40  ;;  %v1341_v2 = vshll.u32 %v5588_v61, 16  ;;  %v1467_v4 = vrot.slane %v5584_v60, 1  ;;  %v1029_v39 = vld [vmem:[%s6502_s1 + $0xf] sm:$0x7] }
  0x24   : >> { %v393_v52 = vsel %vm381_vm6, %v388_v48, %v392_v45  ;;  %v5568_v53 = vor.u32 %v528_v44, %v526_v49  ;;  %v1339_v3 = vrot.slane %v1337_v1, 1  ;;  %v1468_v5 = vrot.slane %v5588_v61, 1  ;;  %v1158_v44 = vld [vmem:[%s6502_s1 + $0x12] sm:$0x7] }
  0x25   : >> { %4556 = vmatprep.mubr.msk.bf16.mxu0 %vm397_vm7, %v393_v52  ;;  %v5574_v56 = vsel %vm381_vm6, %v522_v51, %v526_v49  ;;  %v5600_v7 = vrot.slane %v1341_v2, 1  ;;  %v645_v14 = vrot.slane %v5548_v30, 1  ;;  %v711_v17 = vrot.slane %v5552_v33, 1  ;;  %v1277_v51 = vld [vmem:[%s6502_s1 + $0x15] sm:$0x7] }
  0x26   : >> { %4568 = vmatprep.mubr.msk.bf16.mxu1 %vm397_vm7, %v5574_v56  ;;  %4557 = vmatmul.mubr.msk.bf16.vlgmr.msra.gmra.mrb[0].mxu0 %vm397_vm7, %v396_v50  ;;  %v1340_v15 = vor.u32 %v1339_v3, %v1335_v63  ;;  %v5607_v16 = vsel %vm643_vm8, %v1467_v4, %v1468_v5  ;;  %v5611_v18 = vrot.slane %v5556_v36, 1  ;;  %v785_v22 = vand.u32 %v781_v6, %v5532_v19 }
  0x27   : >> { %4569 = vmatmul.mubr.msk.bf16.vlgmr.msra.gmra.mrb[0].mxu1 %vm397_vm7, %v5568_v53  ;;  %4561 = vmatpush3.bf16.msra.mxu0 %v465_v25  ;;  %v646_v21 = vsel %vm643_vm8, %v644_v10, %v645_v14  ;;  %v1030_v40 = vpack.c.bf16 %v1029_v39, %v1029_v39  ;;  %v1159_v46 = vpack.c.bf16 %v1158_v44, %v1158_v44  ;;  %vm1562_vm10 = vcmask 1045504   ;;  %v5717_v39 = vld [vmem:[%s6505_s4] ss:$0 sm:$0xff] (%p355_p11) }
  0x28   : >> { %4573 = vmatpush3.bf16.msra.mxu1 %v465_v25  ;;  %4562 = vmatprep.mubr.msk.bf16.mxu0 %vm397_vm7, %v5544_v27  ;;  %v5615_v20 = vsel %vm381_vm6, %v1340_v15, %v5600_v7  ;;  %v713_v23 = vsel %vm643_vm8, %v711_v17, %v5611_v18  ;;  %v4187_v25 = vld [vmem:[%s5537_s25 + $0x40] sm:$0xff]  ;;  %v900_v27 = vpack.c.bf16 %v899_v24, %v899_v24  ;;  %vm5383_vm11 = vmmov 1  }
  0x29   : >> { %4574 = vmatprep.mubr.msk.bf16.mxu1 %vm397_vm7, %v5552_v33  ;;  %4578 = vmatprep.subr.bf16.mxu0 %v654_v57  ;;  %v782_v28 = vpack.c.bf16 %v4188_v26, %v4187_v25  ;;  %v1032_v43 = vand.u32 %v1030_v40, %v5532_v19  ;;  %v1163_v49 = vand.u32 %v1159_v46, %v5532_v19  ;;  %vm5108_vm12 = vmpackc.low %vm1562_vm10, %vm5383_vm11  ;;  %vm1728_vm13 = vcmask 260096  }
  0x2a   : >> { %4584 = vmatprep.subr.bf16.mxu1 %v654_v57  ;;  %v902_v31 = vand.u32 %v900_v27, %v5532_v19  ;;  %v1278_v52 = vpack.c.bf16 %v1277_v51, %v1277_v51  ;;  %vm1726_vm14 = vcmask 261120  }
  0x2b   : >> { %v959_v32 = vshll.u32 %v782_v28, 16  ;;  %v957_v35 = vshrl.u32 %v782_v28, 16 }
  0x2c   : >> { %v1280_v54 = vand.u32 %v1278_v52, %v5532_v19 }
  0x2d   : >> { %v961_v37 = vrot.slane %v959_v32, 1 }
  0x2f   : >> { %v962_v41 = vor.u32 %v961_v37, %v957_v35 }
  0x32   : >> { %4563 = vmatmul.mubr.msk.bf16.vlgmr.msra.gmra.mrb[0].mxu0 %vm397_vm7, %v5548_v30  ;;  %v4190_v30 = vld [vmem:[%s5537_s25 + $0x58] sm:$0xff]  ;;  %s1725_s25 = scalar_lea.vmem [#allocation2], %s4228_s24 }
  0x33   : >> { %4575 = vmatmul.mubr.msk.bf16.vlgmr.msra.gmra.mrb[0].mxu1 %vm397_vm7, %v5556_v36  ;;  %4579 = vmatpush3.bf16.msra.mxu0 %v654_v57  ;;  %v783_v34 = vpack.c.bf16 %v4190_v30, %v4189_v29 }
  0x34   : >> { %4585 = vmatpush3.bf16.msra.mxu1 %v654_v57  ;;  %4580 = vmatprep.mubr.msk.bf16.mxu0 %vm397_vm7, %v646_v21  ;;  %v1345_v57 = vshrl.u32 %v5588_v61, 16 }
  0x35   : >> { %4586 = vmatprep.mubr.msk.bf16.mxu1 %vm397_vm7, %v713_v23  ;;  %4590 = vmatprep.subr.bf16.mxu0 %v785_v22  ;;  %v963_v38 = vshll.u32 %v783_v34, 16  ;;  %v967_v45 = vshrl.u32 %v783_v34, 16  ;;  %v1090_v47 = vrot.slane %v783_v34, 1 }
  0x36   : >> { %4596 = vmatprep.subr.bf16.mxu1 %v785_v22  ;;  %v1347_v58 = vor.u32 %v1345_v57, %v5600_v7 }
  0x37   : >> { %v965_v42 = vrot.slane %v963_v38, 1 }
  0x39   : >> { %v969_v48 = vor.u32 %v967_v45, %v965_v42 }
  0x3e   : >> { %4581 = vmatmul.mubr.msk.bf16.vlgmr.msra.gmra.mrb[0].mxu0 %vm397_vm7, %v645_v14 }
  0x3f   : >> { %4587 = vmatmul.mubr.msk.bf16.vlgmr.msra.gmra.mrb[0].mxu1 %vm397_vm7, %v5611_v18  ;;  %4591 = vmatpush3.bf16.msra.mxu0 %v785_v22 }
  0x40   : >> { %4597 = vmatpush3.bf16.msra.mxu1 %v785_v22  ;;  %4592 = vmatprep.mubr.msk.bf16.mxu0 %vm397_vm7, %v5552_v33  ;;  %v966_v33 = vsel %vm381_vm6, %v962_v41, %v965_v42 }
  0x41   : >> { %4598 = vmatprep.mubr.msk.bf16.mxu1 %vm397_vm7, %v782_v28  ;;  %4602 = vmatprep.subr.bf16.mxu0 %v902_v31 }
  0x42   : >> { %4608 = vmatprep.subr.bf16.mxu1 %v902_v31 }
  0x4a   : >> { %4593 = vmatmul.mubr.msk.bf16.vlgmr.msra.gmra.mrb[0].mxu0 %vm397_vm7, %v5556_v36  ;;  %v1089_v36 = vrot.slane %v782_v28, 1 }
  0x4b   : >> { %4599 = vmatmul.mubr.msk.bf16.vlgmr.msra.gmra.mrb[0].mxu1 %vm397_vm7, %v783_v34  ;;  %4603 = vmatpush3.bf16.msra.mxu0 %v902_v31 }
  0x4c   : >> { %4609 = vmatpush3.bf16.msra.mxu1 %v902_v31  ;;  %4604 = vmatprep.mubr.msk.bf16.mxu0 %vm397_vm7, %v5574_v56  ;;  %v1091_v50 = vsel %vm643_vm8, %v1089_v36, %v1090_v47 }
  0x4d   : >> { %4610 = vmatprep.mubr.msk.bf16.mxu1 %vm397_vm7, %v966_v33  ;;  %4614 = vmatprep.subr.bf16.mxu0 %v1032_v43 }
  0x4e   : >> { %4620 = vmatprep.subr.bf16.mxu1 %v1032_v43 }
  0x56   : >> { %4605 = vmatmul.mubr.msk.bf16.vlgmr.msra.gmra.mrb[0].mxu0 %vm397_vm7, %v5568_v53  ;;  %v1407_v53 = vld [vmem:[%s6502_s1 + $0x18] sm:$0x7] }
  0x57   : >> { %4611 = vmatmul.mubr.msk.bf16.vlgmr.msra.gmra.mrb[0].mxu1 %vm397_vm7, %v969_v48  ;;  %4615 = vmatpush3.bf16.msra.mxu0 %v1032_v43  ;;  %v1408_v55 = vpack.c.bf16 %v1407_v53, %v1407_v53 }
  0x58   : >> { %4621 = vmatpush3.bf16.msra.mxu1 %v1032_v43  ;;  %4616 = vmatprep.mubr.msk.bf16.mxu0 %vm397_vm7, %v713_v23 }
  0x59   : >> { %4622 = vmatprep.mubr.msk.bf16.mxu1 %vm397_vm7, %v1091_v50  ;;  %4626 = vmatprep.subr.bf16.mxu0 %v1163_v49  ;;  %v1410_v56 = vand.u32 %v1408_v55, %v5532_v19 }
  0x5a   : >> { %4632 = vmatprep.subr.bf16.mxu1 %v1163_v49 }
  0x62   : >> { %4617 = vmatmul.mubr.msk.bf16.vlgmr.msra.gmra.mrb[0].mxu0 %vm397_vm7, %v5611_v18 }
  0x63   : >> { %4623 = vmatmul.mubr.msk.bf16.vlgmr.msra.gmra.mrb[0].mxu1 %vm397_vm7, %v1090_v47  ;;  %4627 = vmatpush3.bf16.msra.mxu0 %v1163_v49 }
  0x64   : >> { %4633 = vmatpush3.bf16.msra.mxu1 %v1163_v49  ;;  %4628 = vmatprep.mubr.msk.bf16.mxu0 %vm397_vm7, %v782_v28 }
  0x65   : >> { %4634 = vmatprep.mubr.msk.bf16.mxu1 %vm397_vm7, %v5584_v60  ;;  %4638 = vmatprep.subr.bf16.mxu0 %v1280_v54 }
  0x66   : >> { %4644 = vmatprep.subr.bf16.mxu1 %v1280_v54 }
  0x6e   : >> { %4629 = vmatmul.mubr.msk.bf16.vlgmr.msra.gmra.mrb[0].mxu0 %vm397_vm7, %v783_v34 }
  0x6f   : >> { %4635 = vmatmul.mubr.msk.bf16.vlgmr.msra.gmra.mrb[0].mxu1 %vm397_vm7, %v5588_v61  ;;  %4639 = vmatpush3.bf16.msra.mxu0 %v1280_v54 }
  0x70   : >> { %4645 = vmatpush3.bf16.msra.mxu1 %v1280_v54  ;;  %4640 = vmatprep.mubr.msk.bf16.mxu0 %vm397_vm7, %v966_v33 }
  0x71   : >> { %4646 = vmatprep.mubr.msk.bf16.mxu1 %vm397_vm7, %v5615_v20  ;;  %4650 = vmatprep.subr.bf16.mxu0 %v1410_v56 }
  0x72   : >> { %4656 = vmatprep.subr.bf16.mxu1 %v1410_v56 }
  0x7a   : >> { %4641 = vmatmul.mubr.msk.bf16.vlgmr.msra.gmra.mrb[0].mxu0 %vm397_vm7, %v969_v48 }
  0x7b   : >> { %4647 = vmatmul.mubr.msk.bf16.vlgmr.msra.gmra.mrb[0].mxu1 %vm397_vm7, %v1347_v58  ;;  %4651 = vmatpush3.bf16.msra.mxu0 %v1410_v56 }
  0x7c   : >> { %4657 = vmatpush3.bf16.msra.mxu1 %v1410_v56  ;;  %4652 = vmatprep.mubr.msk.bf16.mxu0 %vm397_vm7, %v1091_v50 }
  0x7d   : >> { %4658 = vmatprep.mubr.msk.bf16.mxu1 %vm397_vm7, %v5607_v16 }
  0x86   : >> { %4653 = vmatmul.mubr.msk.bf16.vlgmr.msra.gmra.mrb[0].mxu0 %vm397_vm7, %v1090_v47 }
  0x87   : >> { %4659 = vmatmul.mubr.msk.bf16.vlgmr.msra.gmra.mrb[0].mxu1 %vm397_vm7, %v1468_v5  ;;  %4670 = vmatprep.mubr.msk.f32.mxu0 %vm1555_vm9, %v5505_v9 }
  0x88   : >> { %4681 = vmatprep.mubr.msk.f32.mxu1 %vm1555_vm9, %v5511_v12 }
 0x159   : >> { %v4654_v19 = vpop.f32.mrb[0].mxu0 }
 0x15a   : >> { %v1537_v59 = vadd.f32 %v4654_v19, %v5496_v0  ;;  %v4660_v60 = vpop.f32.mrb[0].mxu1  ;;  %v1446_v62 = vpop.f32.mrb[1].mxu0 }
 0x15b   : >> { %v1545_v63 = vadd.f32 %v4660_v60, %v5496_v0  ;;  %v1535_v1 = vadd.f32 %v5496_v0, %v1446_v62  ;;  %v1510_v2 = vpop.f32.mrb[1].mxu1  ;;  %v4655_v61 = vpop.f32.mrb[2].mxu0 }
 0x15c   : >> { %v1541_v3 = vmax.f32 %v1537_v59, 0.0  ;;  %v1543_v4 = vadd.f32 %v5496_v0, %v1510_v2  ;;  %v1538_v5 = vadd.f32 %v4655_v61, %v5496_v0  ;;  %v4661_v6 = vpop.f32.mrb[2].mxu1  ;;  %v1449_v7 = vpop.f32.mrb[3].mxu0 }
 0x15d   : >> { %v1549_v10 = vmax.f32 %v1545_v63, 0.0  ;;  %v1539_v14 = vmax.f32 %v1535_v1, 0.0  ;;  %v1546_v15 = vadd.f32 %v4661_v6, %v5496_v0  ;;  %v1536_v16 = vadd.f32 %v5496_v0, %v1449_v7  ;;  %v1513_v17 = vpop.f32.mrb[3].mxu1 }
 0x15e   : >> { %v1547_v18 = vmax.f32 %v1543_v4, 0.0  ;;  %v1542_v20 = vmax.f32 %v1538_v5, 0.0  ;;  %v1544_v21 = vadd.f32 %v5496_v0, %v1513_v17 }
 0x15f   : >> { %v1553_v22 = vmax.f32 %v1541_v3, %v1549_v10  ;;  %v1550_v23 = vmax.f32 %v1546_v15, 0.0  ;;  %v1540_v24 = vmax.f32 %v1536_v16, 0.0 }
 0x160   : >> { %v1551_v25 = vmax.f32 %v1539_v14, %v1547_v18  ;;  %v1548_v26 = vmax.f32 %v1544_v21, 0.0 }
 0x161   : >> { %v1554_v27 = vmax.f32 %v1542_v20, %v1550_v23 }
 0x162   : >> { %v1552_v28 = vmax.f32 %v1540_v24, %v1548_v26 }
 0x163   : >> { %v5107_v29 = vpack.c.bf16 %v1554_v27, %v1553_v22 }
 0x164   : >> { %v5103_v30 = vpack.c.bf16 %v1552_v28, %v1551_v25 }
 0x166   : >> { %5104 = vmatprep.subr.bf16.mxu0 %v5103_v30  ;;  %5114 = vmatprep.subr.bf16.mxu1 %v5103_v30 }
 0x167   : >> { %5106 = vmatpush3.bf16.msra.mxu0 %v5103_v30  ;;  %5116 = vmatpush3.bf16.msra.mxu1 %v5103_v30 }
 0x168   : >> { %5109 = vmatprep.subr.msk.bf16.mxu0 %vm5108_vm12, %v5107_v29  ;;  %5119 = vmatprep.subr.msk.bf16.mxu1 %vm5108_vm12, %v5107_v29 }
 0x16b   : >> { %5112 = vmatpush3.bf16.msk.msra.mxu0 %vm5108_vm12, %v5107_v29  ;;  %5122 = vmatpush3.bf16.msk.msra.mxu1 %vm5108_vm12, %v5107_v29 }
 0x16e   : >> { %4671 = vmatmul.mubr.msk.f32.vlgmr.msra.gmra.mrb[4].mxu0 %vm1555_vm9, %v5508_v11  ;;  %4682 = vmatmul.mubr.msk.f32.vlgmr.msra.gmra.mrb[4].mxu1 %vm1555_vm9, %v5514_v13 }
 0x23f   : > { %357 = sbr.rel (!%p355_p11) target bundleno = 25 (0x19), region = 126 }
 0x241   : >> { %v4672_v31 = vpop.f32.mrb[4].mxu0  ;;  %v4683_v32 = vpop.f32.mrb[4].mxu1 }
 0x242   : >> { %v1723_v34 = vmax.f32 %v4672_v31, %v4683_v32  ;;  %v1632_v35 = vpop.f32.mrb[5].mxu0  ;;  %v1713_v37 = vpop.f32.mrb[5].mxu1 }
 0x243   : >> { %v1722_v38 = vmax.f32 %v1632_v35, %v1713_v37 }
 0x244   : >> { %1729 = vst.msk [vmem:[%s1725_s25 + $0x8] sm:$0x7f] %vm1728_vm13, %v1723_v34 }
 0x245   : >> { %1727 = vst.msk [vmem:[%s1725_s25] sm:$0xff] %vm1726_vm14, %v1722_v38 }
 0x246 LB: >> { %v1747_v40 = vld [vmem:[%s6504_s3] sm:$0xff]  ;;  %v1748_v0 = vld [vmem:[%s6504_s3 + $0x8] sm:$0xff]  ;;  %v5384_v13 = vmov 0.0   ;;  %v1749_v43 = vld [vmem:[%s6504_s3 + $0x10] sm:$0xff]  ;;  %vm5385_vm15 = vmmov 0   ;;  %s4309_s26 = sshll.u32 %s5375_s16, 5  ;;  %s5375_s16 = sphi %s5719_s16, %s1736_s16  }
 0x247   : >> { %v1755_v11 = vld [vmem:[%s6504_s3 + $0x20] sm:$0xff]  ;;  %4692 = vmatprep.subr.bf16.mxu1 %v5384_v13  ;;  %v1751_v41 = vpack.c.bf16 %v1748_v0, %v1747_v40  ;;  %4684 = vmatprep.subr.bf16.mxu0 %v5384_v13  ;;  %v1756_v42 = vld [vmem:[%s6504_s3 + $0x28] sm:$0xff]  ;;  %v1750_v33 = vld [vmem:[%s6504_s3 + $0x18] sm:$0xff]  ;;  %s5756_s27 = scalar_lea.vmem [#allocation2], %s4309_s26  ;;  %vm2670_vm0 = vcmask 1044480   ;;  %vm5387_vm1 = vmmov 1  }
 0x248   : >> { %v1759_v44 = vpack.c.bf16 %v1756_v42, %v1755_v11  ;;  %4696 = vmatprep.mubr.msk.bf16.mxu1 %vm5385_vm15, %v5384_v13  ;;  %v1757_v45 = vld [vmem:[%s6504_s3 + $0x30] sm:$0xff]  ;;  %v1758_v46 = vld [vmem:[%s6504_s3 + $0x38] sm:$0xff]  ;;  %4688 = vmatprep.mubr.msk.bf16.mxu0 %vm5385_vm15, %v5384_v13  ;;  %v1752_v36 = vpack.c.bf16 %v1750_v33, %v1749_v43  ;;  %v1950_v19 = vld [vmem:[%s6504_s3 + $0x40] sm:$0xff]  ;;  %vm2666_vm3 = vcmask 105472   ;;  %s4266_s25 = sshll.u32 %s5375_s16, 3  ;;  %vm2820_vm4 = vcmask 521216  }
 0x249   : >> { %4693 = vmatpush3.bf16.msra.mxu1 %v1751_v41  ;;  %v1760_v47 = vpack.c.bf16 %v1758_v46, %v1757_v45  ;;  %v1951_v59 = vld [vmem:[%s6504_s3 + $0x48] sm:$0xff]  ;;  %v1952_v1 = vld [vmem:[%s6504_s3 + $0x50] sm:$0xff]  ;;  %v1953_v2 = vld [vmem:[%s6504_s3 + $0x58] sm:$0xff]  ;;  %s2819_s26 = scalar_lea.vmem [#allocation3], %s4266_s25  ;;  %s1736_s16 = sadd.s32 1, %s5375_s16  }
 0x24a   : >> { %4685 = vmatpush3.bf16.msra.mxu0 %v1759_v44  ;;  %4694 = vmatprep.subr.bf16.mxu1 %v5384_v13  ;;  %v1954_v63 = vpack.c.bf16 %v1951_v59, %v1950_v19  ;;  %v1955_v3 = vpack.c.bf16 %v1953_v2, %v1952_v1  ;;  %v2057_v4 = vld [vmem:[%s6504_s3 + $0x60] sm:$0xff]  ;;  %v2058_v5 = vld [vmem:[%s6504_s3 + $0x68] sm:$0xff]  ;;  %v2059_v10 = vld [vmem:[%s6504_s3 + $0x70] sm:$0xff]  ;;  %p1733_p12 = scmp.ge.s32.totalorder %s1736_s16, 6  }
 0x24b   : >> { %4686 = vmatprep.subr.bf16.mxu0 %v5384_v13  ;;  %v2061_v7 = vpack.c.bf16 %v2058_v5, %v2057_v4  ;;  %v2060_v14 = vld [vmem:[%s6504_s3 + $0x78] sm:$0xff]  ;;  %v2153_v21 = vld [vmem:[%s6504_s3 + $0x80] sm:$0xff]  ;;  %v2154_v22 = vld [vmem:[%s6504_s3 + $0x88] sm:$0xff]  ;;  %2822 = vst [vmem:[#allocation4] sm:$0x1] (%p1733_p12), %v5381_v8 }
 0x24c   : >> { %v1740_v48 = vld [vmem:[%s5756_s27] sm:$0xff]  ;;  %v1741_v49 = vld [vmem:[%s5756_s27 + $0x8] sm:$0x7f]  ;;  %v4233_v50 = vld [vmem:[%s5756_s27 + $0x10] sm:$0xff]  ;;  %v2062_v18 = vpack.c.bf16 %v2060_v14, %v2059_v10  ;;  %v2157_v24 = vpack.c.bf16 %v2154_v22, %v2153_v21 }
 0x24d   : >> { %v5762_v51 = vpack.c.bf16 %v1741_v49, %v1740_v48  ;;  %v4234_v52 = vld [vmem:[%s5756_s27 + $0x18] sm:$0x7f]  ;;  %4695 = vmatpush3.bf16.msra.mxu1 %v1752_v36  ;;  %v4243_v16 = vld [vmem:[%s5756_s27 + $0x20] sm:$0xff]  ;;  %v4244_v17 = vld [vmem:[%s5756_s27 + $0x28] sm:$0x7f] }
 0x24e   : >> { %v5765_v54 = vpack.c.bf16 %v4234_v52, %v4233_v50  ;;  %4687 = vmatpush3.bf16.msra.mxu0 %v1760_v47  ;;  %4708 = vmatprep.subr.bf16.mxu1 %v5384_v13  ;;  %v5832_v20 = vpack.c.bf16 %v4244_v17, %v4243_v16  ;;  %v2155_v25 = vld [vmem:[%s6504_s3 + $0x90] sm:$0xff]  ;;  %v2156_v26 = vld [vmem:[%s6504_s3 + $0x98] sm:$0xff]  ;;  %v2254_v30 = vld [vmem:[%s6504_s3 + $0xa0] sm:$0xff] }
 0x24f   : >> { %v1762_v53 = vshrl.u32 %v5762_v51, 16  ;;  %v1764_v55 = vshll.u32 %v5762_v51, 16  ;;  %4700 = vmatprep.subr.bf16.mxu0 %v5384_v13  ;;  %v1957_v15 = vrot.slane %v5762_v51, 1  ;;  %v2158_v29 = vpack.c.bf16 %v2156_v26, %v2155_v25  ;;  %v2255_v31 = vld [vmem:[%s6504_s3 + $0xa8] sm:$0xff]  ;;  %v2256_v35 = vld [vmem:[%s6504_s3 + $0xb0] sm:$0xff]  ;;  %v2257_v37 = vld [vmem:[%s6504_s3 + $0xb8] sm:$0xff] }
 0x250   : >> { %v1859_v57 = vshll.u32 %v5765_v54, 16  ;;  %4697 = vmatmul.mubr.msk.bf16.vlgmr.msra.gmra.mrb[0].mxu1 %vm1726_vm14, %v5762_v51  ;;  %v1857_v60 = vshrl.u32 %v5765_v54, 16  ;;  %v2005_v6 = vrot.slane %v5765_v54, 1  ;;  %v2204_v23 = vshll.u32 %v5832_v20, 16  ;;  %v2356_v40 = vld [vmem:[%s6504_s3 + $0xc0] sm:$0xff]  ;;  %v2357_v0 = vld [vmem:[%s6504_s3 + $0xc8] sm:$0xff]  ;;  %vm5125_vm2 = vmpackc.low %vm2670_vm0, %vm5387_vm1 }
 0x251   : >> { %v1766_v56 = vrot.slane %v1764_v55, 1  ;;  %4709 = vmatpush3.bf16.msra.mxu1 %v1751_v41  ;;  %4712 = vmatprep.mubr.msk.bf16.mxu1 %vm5385_vm15, %v5384_v13  ;;  %v2202_v27 = vshrl.u32 %v5832_v20, 16  ;;  %v2258_v34 = vpack.c.bf16 %v2255_v31, %v2254_v30  ;;  %v2259_v38 = vpack.c.bf16 %v2257_v37, %v2256_v35  ;;  %v2358_v42 = vld [vmem:[%s6504_s3 + $0xd0] sm:$0xff]  ;;  %v2359_v43 = vld [vmem:[%s6504_s3 + $0xd8] sm:$0xff]  ;;  %v2553_v55 = vld [vmem:[%s6504_s3 + $0x100] sm:$0xff] }
 0x252   : >> { %4710 = vmatprep.subr.bf16.mxu1 %v5384_v13  ;;  %v1861_v62 = vrot.slane %v1859_v57, 1  ;;  %v2206_v28 = vrot.slane %v2204_v23, 1  ;;  %v2304_v11 = vrot.slane %v5832_v20, 1  ;;  %v2360_v41 = vpack.c.bf16 %v2357_v0, %v2356_v40  ;;  %v4253_v33 = vld [vmem:[%s5756_s27 + $0x30] sm:$0xff]  ;;  %v2455_v51 = vld [vmem:[%s6504_s3 + $0xf8] sm:$0xff] }
 0x253   : >> { %v1767_v58 = vor.u32 %v1766_v56, %v1762_v53  ;;  %v2361_v45 = vpack.c.bf16 %v2359_v43, %v2358_v42  ;;  %v2454_v50 = vld [vmem:[%s6504_s3 + $0xf0] sm:$0xff]  ;;  %v2554_v56 = vld [vmem:[%s6504_s3 + $0x108] sm:$0xff]  ;;  %v2556_v59 = vld [vmem:[%s6504_s3 + $0x118] sm:$0xff] }
 0x254   : >> { %v5795_v61 = vor.u32 %v1861_v62, %v1857_v60  ;;  %v5867_v32 = vor.u32 %v2206_v28, %v2202_v27  ;;  %v2457_v53 = vpack.c.bf16 %v2455_v51, %v2454_v50  ;;  %v2555_v19 = vld [vmem:[%s6504_s3 + $0x110] sm:$0xff] }
 0x255   : >> { %4689 = vmatmul.mubr.msk.bf16.vlgmr.msra.gmra.mrb[0].mxu0 %vm1726_vm14, %v1767_v58  ;;  %4711 = vmatpush3.bf16.msra.mxu1 %v1752_v36  ;;  %v2452_v36 = vld [vmem:[%s6504_s3 + $0xe0] sm:$0xff]  ;;  %v2557_v58 = vpack.c.bf16 %v2554_v56, %v2553_v55  ;;  %v2558_v60 = vpack.c.bf16 %v2556_v59, %v2555_v19 }
 0x256   : >> { %4701 = vmatpush3.bf16.msra.mxu0 %v1759_v44  ;;  %4704 = vmatprep.mubr.msk.bf16.mxu0 %vm5385_vm15, %v5384_v13  ;;  %v4254_v44 = vld [vmem:[%s5756_s27 + $0x38] sm:$0x7f]  ;;  %s5989_s27 = smov (%p1733_p12), 0  }
 0x257   : >> { %4702 = vmatprep.subr.bf16.mxu0 %v5384_v13  ;;  %4724 = vmatprep.subr.bf16.mxu1 %v5384_v13  ;;  %v2362_v46 = vpack.c.bf16 %v4254_v44, %v4253_v33 }
 0x258   : >> { %4713 = vmatmul.mubr.msk.bf16.vlgmr.msra.gmra.mrb[4].mxu1 %vm1726_vm14, %v5765_v54 }
 0x259   : >> { %4725 = vmatpush3.bf16.msra.mxu1 %v1954_v63  ;;  %4728 = vmatprep.mubr.msk.bf16.mxu1 %vm5385_vm15, %v5384_v13  ;;  %v2503_v48 = vshll.u32 %v2362_v46, 16  ;;  %v2501_v52 = vshrl.u32 %v2362_v46, 16  ;;  %v2603_v62 = vrot.slane %v2362_v46, 1 }
 0x25a   : >> { %4703 = vmatpush3.bf16.msra.mxu0 %v1760_v47  ;;  %4726 = vmatprep.subr.bf16.mxu1 %v5384_v13  ;;  %v2453_v47 = vld [vmem:[%s6504_s3 + $0xe8] sm:$0xff] }
 0x25b   : >> { %4716 = vmatprep.subr.bf16.mxu0 %v5384_v13  ;;  %v2456_v49 = vpack.c.bf16 %v2453_v47, %v2452_v36 }
 0x25d   : >> { %4705 = vmatmul.mubr.msk.bf16.vlgmr.msra.gmra.mrb[4].mxu0 %vm1726_vm14, %v5795_v61  ;;  %4727 = vmatpush3.bf16.msra.mxu1 %v1955_v3 }
 0x25e   : >> { %4717 = vmatpush3.bf16.msra.mxu0 %v1954_v63  ;;  %4720 = vmatprep.mubr.msk.bf16.mxu0 %vm5385_vm15, %v5384_v13  ;;  %v5386_v63 = vmov 0.0|0.0  }
 0x25f   : >> { %4718 = vmatprep.subr.bf16.mxu0 %v5384_v13  ;;  %4740 = vmatprep.subr.bf16.mxu1 %v5384_v13 }
 0x260   : >> { %4729 = vmatmul.mubr.msk.bf16.vlgmr.msra.gmra.mrb[8].mxu1 %vm1726_vm14, %v2005_v6 }
 0x261   : >> { %4741 = vmatpush3.bf16.msra.mxu1 %v2061_v7  ;;  %4744 = vmatprep.mubr.msk.bf16.mxu1 %vm5385_vm15, %v5384_v13 }
 0x262   : >> { %4719 = vmatpush3.bf16.msra.mxu0 %v1955_v3  ;;  %4742 = vmatprep.subr.bf16.mxu1 %v5384_v13 }
 0x263   : >> { %4732 = vmatprep.subr.bf16.mxu0 %v5384_v13 }
 0x265   : >> { %4721 = vmatmul.mubr.msk.bf16.vlgmr.msra.gmra.mrb[8].mxu0 %vm1726_vm14, %v1957_v15  ;;  %4743 = vmatpush3.bf16.msra.mxu1 %v2062_v18 }
 0x266   : >> { %4733 = vmatpush3.bf16.msra.mxu0 %v2061_v7  ;;  %4736 = vmatprep.mubr.msk.bf16.mxu0 %vm5385_vm15, %v5384_v13 }
 0x267   : >> { %4734 = vmatprep.subr.bf16.mxu0 %v5384_v13  ;;  %4756 = vmatprep.subr.bf16.mxu1 %v5384_v13 }
 0x268   : >> { %4745 = vmatmul.mubr.msk.bf16.vlgmr.msra.gmra.mrb[12].mxu1 %vm1726_vm14, %v5832_v20 }
 0x269   : >> { %4757 = vmatpush3.bf16.msra.mxu1 %v2157_v24  ;;  %4760 = vmatprep.mubr.msk.bf16.mxu1 %vm5385_vm15, %v5384_v13 }
 0x26a   : >> { %4735 = vmatpush3.bf16.msra.mxu0 %v2062_v18  ;;  %4758 = vmatprep.subr.bf16.mxu1 %v5384_v13 }
 0x26b   : >> { %4748 = vmatprep.subr.bf16.mxu0 %v5384_v13 }
 0x26d   : >> { %4737 = vmatmul.mubr.msk.bf16.vlgmr.msra.gmra.mrb[12].mxu0 %vm1726_vm14, %v5765_v54  ;;  %4759 = vmatpush3.bf16.msra.mxu1 %v2158_v29  ;;  %v2505_v54 = vrot.slane %v2503_v48, 1 }
 0x26e   : >> { %4749 = vmatpush3.bf16.msra.mxu0 %v2157_v24  ;;  %4752 = vmatprep.mubr.msk.bf16.mxu0 %vm5385_vm15, %v5384_v13 }
 0x26f   : >> { %4750 = vmatprep.subr.bf16.mxu0 %v5384_v13  ;;  %4772 = vmatprep.subr.bf16.mxu1 %v5384_v13  ;;  %v2506_v57 = vor.u32 %v2505_v54, %v2501_v52 }
 0x270   : >> { %4761 = vmatmul.mubr.msk.bf16.vlgmr.msra.gmra.mrb[16].mxu1 %vm1726_vm14, %v5867_v32 }
 0x271   : >> { %4773 = vmatpush3.bf16.msra.mxu1 %v2258_v34  ;;  %4776 = vmatprep.mubr.msk.bf16.mxu1 %vm5385_vm15, %v5384_v13 }
 0x272   : >> { %4751 = vmatpush3.bf16.msra.mxu0 %v2158_v29  ;;  %4774 = vmatprep.subr.bf16.mxu1 %v5384_v13 }
 0x273   : >> { %4764 = vmatprep.subr.bf16.mxu0 %v5384_v13 }
 0x275   : >> { %4753 = vmatmul.mubr.msk.bf16.vlgmr.msra.gmra.mrb[16].mxu0 %vm1726_vm14, %v5795_v61  ;;  %4775 = vmatpush3.bf16.msra.mxu1 %v2259_v38 }
 0x276   : >> { %4765 = vmatpush3.bf16.msra.mxu0 %v2258_v34  ;;  %4768 = vmatprep.mubr.msk.bf16.mxu0 %vm5385_vm15, %v5384_v13 }
 0x277   : >> { %4766 = vmatprep.subr.bf16.mxu0 %v5384_v13  ;;  %4788 = vmatprep.subr.bf16.mxu1 %v5384_v13 }
 0x278   : >> { %4777 = vmatmul.mubr.msk.bf16.vlgmr.msra.gmra.mrb[20].mxu1 %vm1726_vm14, %v2304_v11 }
 0x279   : >> { %4789 = vmatpush3.bf16.msra.mxu1 %v2360_v41  ;;  %4792 = vmatprep.mubr.msk.bf16.mxu1 %vm5385_vm15, %v5384_v13 }
 0x27a   : >> { %4767 = vmatpush3.bf16.msra.mxu0 %v2259_v38  ;;  %4790 = vmatprep.subr.bf16.mxu1 %v5384_v13 }
 0x27b   : >> { %4780 = vmatprep.subr.bf16.mxu0 %v5384_v13 }
 0x27d   : >> { %4769 = vmatmul.mubr.msk.bf16.vlgmr.msra.gmra.mrb[20].mxu0 %vm1726_vm14, %v2005_v6  ;;  %4791 = vmatpush3.bf16.msra.mxu1 %v2361_v45 }
 0x27e   : >> { %4781 = vmatpush3.bf16.msra.mxu0 %v2360_v41  ;;  %4784 = vmatprep.mubr.msk.bf16.mxu0 %vm5385_vm15, %v5384_v13 }
 0x27f   : >> { %4782 = vmatprep.subr.bf16.mxu0 %v5384_v13  ;;  %4804 = vmatprep.subr.bf16.mxu1 %v5384_v13 }
 0x280   : >> { %4793 = vmatmul.mubr.msk.bf16.vlgmr.msra.gmra.mrb[24].mxu1 %vm1726_vm14, %v2362_v46 }
 0x281   : >> { %4805 = vmatpush3.bf16.msra.mxu1 %v2456_v49  ;;  %4808 = vmatprep.mubr.msk.bf16.mxu1 %vm5385_vm15, %v5384_v13 }
 0x282   : >> { %4783 = vmatpush3.bf16.msra.mxu0 %v2361_v45  ;;  %4806 = vmatprep.subr.bf16.mxu1 %v5384_v13 }
 0x283   : >> { %4796 = vmatprep.subr.bf16.mxu0 %v5384_v13 }
 0x285   : >> { %4785 = vmatmul.mubr.msk.bf16.vlgmr.msra.gmra.mrb[24].mxu0 %vm1726_vm14, %v5832_v20  ;;  %4807 = vmatpush3.bf16.msra.mxu1 %v2457_v53 }
 0x286   : >> { %4797 = vmatpush3.bf16.msra.mxu0 %v2456_v49  ;;  %4800 = vmatprep.mubr.msk.bf16.mxu0 %vm5385_vm15, %v5384_v13 }
 0x287   : >> { %4798 = vmatprep.subr.bf16.mxu0 %v5384_v13  ;;  %4820 = vmatprep.subr.bf16.mxu1 %v5384_v13 }
 0x288   : >> { %4809 = vmatmul.mubr.msk.bf16.vlgmr.msra.gmra.mrb[28].mxu1 %vm1726_vm14, %v2506_v57 }
 0x289   : >> { %4821 = vmatpush3.bf16.msra.mxu1 %v2557_v58  ;;  %4824 = vmatprep.mubr.msk.bf16.mxu1 %vm5385_vm15, %v5384_v13 }
 0x28a   : >> { %4799 = vmatpush3.bf16.msra.mxu0 %v2457_v53  ;;  %4822 = vmatprep.subr.bf16.mxu1 %v5384_v13 }
 0x28b   : >> { %4812 = vmatprep.subr.bf16.mxu0 %v5384_v13 }
 0x28d   : >> { %4801 = vmatmul.mubr.msk.bf16.vlgmr.msra.gmra.mrb[28].mxu0 %vm1726_vm14, %v5867_v32  ;;  %4823 = vmatpush3.bf16.msra.mxu1 %v2558_v60 }
 0x28e   : >> { %4813 = vmatpush3.bf16.msra.mxu0 %v2557_v58  ;;  %4816 = vmatprep.mubr.msk.bf16.mxu0 %vm5385_vm15, %v5384_v13 }
 0x28f   : >> { %4814 = vmatprep.subr.bf16.mxu0 %v5384_v13  ;;  %5127 = vmatprep.subr.bf16.mxu1 %v5386_v63 }
 0x290   : >> { %4825 = vmatmul.mubr.msk.bf16.vlgmr.msra.gmra.mrb[32].mxu1 %vm1726_vm14, %v2603_v62 }
 0x291   : >> { %4839 = vmatprep.mubr.msk.f32.mxu1 %vm5385_vm15, %v5384_v13 }
 0x292   : >> { %4815 = vmatpush3.bf16.msra.mxu0 %v2558_v60 }
 0x293   : >> { %5123 = vmatprep.subr.bf16.mxu0 %v5386_v63 }
 0x295   : >> { %4817 = vmatmul.mubr.msk.bf16.vlgmr.msra.gmra.mrb[32].mxu0 %vm1726_vm14, %v2304_v11 }
 0x296   : >> { %4832 = vmatprep.mubr.msk.f32.mxu0 %vm5385_vm15, %v5384_v13 }
 0x323   : >> { %v1849_v1 = vpop.f32.mrb[0].mxu1 }
 0x324   : >> { %v4698_v2 = vpop.f32.mrb[1].mxu1 }
 0x325   : >> { %v1852_v61 = vpop.f32.mrb[2].mxu1 }
 0x326   : >> { %v4699_v4 = vpop.f32.mrb[3].mxu1 }
 0x328   : >> { %v1806_v3 = vpop.f32.mrb[0].mxu0 }
 0x329   : >> { %v1850_v5 = vadd.f32 %v1849_v1, %v1806_v3  ;;  %v4690_v6 = vpop.f32.mrb[1].mxu0 }
 0x32a   : >> { %v1809_v7 = vpop.f32.mrb[2].mxu0 }
 0x32b   : >> { %v1853_v10 = vadd.f32 %v1852_v61, %v1809_v7  ;;  %v4691_v14 = vpop.f32.mrb[3].mxu0  ;;  %v1943_v15 = vpop.f32.mrb[4].mxu1 }
 0x32c   : >> { %v4714_v16 = vpop.f32.mrb[5].mxu1 }
 0x32d   : >> { %v1946_v17 = vpop.f32.mrb[6].mxu1 }
 0x32e   : >> { %v4715_v20 = vpop.f32.mrb[7].mxu1 }
 0x330   : >> { %v1900_v18 = vpop.f32.mrb[4].mxu0 }
 0x331   : >> { %v1944_v21 = vadd.f32 %v1943_v15, %v1900_v18  ;;  %v4706_v13 = vpop.f32.mrb[5].mxu0 }
 0x332   : >> { %v1903_v22 = vpop.f32.mrb[6].mxu0 }
 0x333   : >> { %v1947_v23 = vadd.f32 %v1946_v17, %v1903_v22  ;;  %v4707_v24 = vpop.f32.mrb[7].mxu0  ;;  %v2043_v25 = vpop.f32.mrb[8].mxu1 }
 0x334   : >> { %v2050_v26 = vadd.f32 %v2043_v25, %v1944_v21  ;;  %v4730_v27 = vpop.f32.mrb[9].mxu1 }
 0x335   : >> { %v2046_v28 = vpop.f32.mrb[10].mxu1 }
 0x336   : >> { %v2051_v29 = vadd.f32 %v2046_v28, %v1947_v23  ;;  %v4731_v31 = vpop.f32.mrb[11].mxu1 }
 0x338   : >> { %v1995_v30 = vpop.f32.mrb[8].mxu0 }
 0x339   : >> { %v2002_v32 = vadd.f32 %v1995_v30, %v1850_v5  ;;  %v4722_v34 = vpop.f32.mrb[9].mxu0 }
 0x33a   : >> { %v1998_v35 = vpop.f32.mrb[10].mxu0 }
 0x33b   : >> { %v2003_v37 = vadd.f32 %v1998_v35, %v1853_v10  ;;  %v4723_v38 = vpop.f32.mrb[11].mxu0  ;;  %v2144_v40 = vpop.f32.mrb[12].mxu1 }
 0x33c   : >> { %v2151_v0 = vadd.f32 %v2144_v40, %v2050_v26  ;;  %v4746_v11 = vpop.f32.mrb[13].mxu1 }
 0x33d   : >> { %v2147_v41 = vpop.f32.mrb[14].mxu1 }
 0x33e   : >> { %v2152_v42 = vadd.f32 %v2147_v41, %v2051_v29  ;;  %v4747_v33 = vpop.f32.mrb[15].mxu1 }
 0x340   : >> { %v2098_v43 = vpop.f32.mrb[12].mxu0 }
 0x341   : >> { %v2105_v44 = vadd.f32 %v2098_v43, %v2002_v32  ;;  %v4738_v45 = vpop.f32.mrb[13].mxu0 }
 0x342   : >> { %v2101_v46 = vpop.f32.mrb[14].mxu0 }
 0x343   : >> { %v2106_v36 = vadd.f32 %v2101_v46, %v2003_v37  ;;  %v4739_v47 = vpop.f32.mrb[15].mxu0  ;;  %v2245_v48 = vpop.f32.mrb[16].mxu1 }
 0x344   : >> { %v2252_v49 = vadd.f32 %v2245_v48, %v2151_v0  ;;  %v4762_v50 = vpop.f32.mrb[17].mxu1 }
 0x345   : >> { %v2248_v51 = vpop.f32.mrb[18].mxu1 }
 0x346   : >> { %v2253_v52 = vadd.f32 %v2248_v51, %v2152_v42  ;;  %v4763_v53 = vpop.f32.mrb[19].mxu1 }
 0x348   : >> { %v2193_v54 = vpop.f32.mrb[16].mxu0 }
 0x349   : >> { %v2200_v55 = vadd.f32 %v2193_v54, %v2105_v44  ;;  %v4754_v56 = vpop.f32.mrb[17].mxu0 }
 0x34a   : >> { %v2196_v57 = vpop.f32.mrb[18].mxu0 }
 0x34b   : >> { %v2201_v58 = vadd.f32 %v2196_v57, %v2106_v36  ;;  %v4755_v19 = vpop.f32.mrb[19].mxu0  ;;  %v2342_v59 = vpop.f32.mrb[20].mxu1 }
 0x34c   : >> { %v2349_v60 = vadd.f32 %v2342_v59, %v2252_v49  ;;  %v4778_v62 = vpop.f32.mrb[21].mxu1 }
 0x34d   : >> { %v2345_v63 = vpop.f32.mrb[22].mxu1 }
 0x34e   : >> { %v2350_v1 = vadd.f32 %v2345_v63, %v2253_v52  ;;  %v4779_v61 = vpop.f32.mrb[23].mxu1 }
 0x350   : >> { %v2294_v2 = vpop.f32.mrb[20].mxu0 }
 0x351   : >> { %v2301_v3 = vadd.f32 %v2294_v2, %v2200_v55  ;;  %v4770_v4 = vpop.f32.mrb[21].mxu0 }
 0x352   : >> { %v2297_v5 = vpop.f32.mrb[22].mxu0 }
 0x353   : >> { %v2302_v6 = vadd.f32 %v2297_v5, %v2201_v58  ;;  %v4771_v7 = vpop.f32.mrb[23].mxu0  ;;  %v2443_v10 = vpop.f32.mrb[24].mxu1 }
 0x354   : >> { %v2450_v14 = vadd.f32 %v2443_v10, %v2349_v60  ;;  %v4794_v15 = vpop.f32.mrb[25].mxu1 }
 0x355   : >> { %v2446_v16 = vpop.f32.mrb[26].mxu1 }
 0x356   : >> { %v2451_v17 = vadd.f32 %v2446_v16, %v2350_v1  ;;  %v4795_v20 = vpop.f32.mrb[27].mxu1  ;;  %v5987_v1 = vld [vmem:[%s6507_s6] ss:$0 sm:$0xff] (%p1733_p12) }
 0x358   : >> { %v2397_v18 = vpop.f32.mrb[24].mxu0 }
 0x359   : >> { %v2404_v21 = vadd.f32 %v2397_v18, %v2301_v3  ;;  %v4786_v13 = vpop.f32.mrb[25].mxu0 }
 0x35a   : >> { %v2400_v22 = vpop.f32.mrb[26].mxu0 }
 0x35b   : >> { %v2405_v23 = vadd.f32 %v2400_v22, %v2302_v6  ;;  %v4787_v24 = vpop.f32.mrb[27].mxu0  ;;  %v2544_v25 = vpop.f32.mrb[28].mxu1 }
 0x35c   : >> { %v2551_v26 = vadd.f32 %v2544_v25, %v2450_v14  ;;  %v4810_v27 = vpop.f32.mrb[29].mxu1 }
 0x35d   : >> { %v2547_v28 = vpop.f32.mrb[30].mxu1 }
 0x35e   : >> { %v2552_v29 = vadd.f32 %v2547_v28, %v2451_v17  ;;  %v4811_v31 = vpop.f32.mrb[31].mxu1 }
 0x360   : >> { %v2492_v30 = vpop.f32.mrb[28].mxu0 }
 0x361   : >> { %v2499_v32 = vadd.f32 %v2492_v30, %v2404_v21  ;;  %v4802_v34 = vpop.f32.mrb[29].mxu0 }
 0x362   : >> { %v2495_v35 = vpop.f32.mrb[30].mxu0 }
 0x363   : >> { %v2500_v37 = vadd.f32 %v2495_v35, %v2405_v23  ;;  %v4803_v38 = vpop.f32.mrb[31].mxu0  ;;  %v2641_v40 = vpop.f32.mrb[32].mxu1 }
 0x364   : >> { %v2648_v0 = vadd.f32 %v2641_v40, %v2551_v26  ;;  %v4826_v11 = vpop.f32.mrb[33].mxu1 }
 0x365   : >> { %v2644_v41 = vpop.f32.mrb[34].mxu1 }
 0x366   : >> { %v2649_v42 = vadd.f32 %v2644_v41, %v2552_v29  ;;  %v4827_v33 = vpop.f32.mrb[35].mxu1  ;;  %v2660_v44 = vadd.f32 %v5717_v39, %v2648_v0 }
 0x368   : >> { %v2593_v43 = vpop.f32.mrb[32].mxu0  ;;  %v2661_v47 = vadd.f32 %v5717_v39, %v2649_v42  ;;  %v2662_v51 = vmax.f32 %v2660_v44, 0.0 }
 0x369   : >> { %v2600_v45 = vadd.f32 %v2593_v43, %v2499_v32  ;;  %v4818_v46 = vpop.f32.mrb[33].mxu0 }
 0x36a   : >> { %v2596_v36 = vpop.f32.mrb[34].mxu0  ;;  %v2663_v53 = vmax.f32 %v2661_v47, 0.0 }
 0x36b   : >> { %v2656_v48 = vadd.f32 %v5717_v39, %v2600_v45  ;;  %v2601_v49 = vadd.f32 %v2596_v36, %v2500_v37  ;;  %v4819_v50 = vpop.f32.mrb[35].mxu0 }
 0x36d   : >> { %v2658_v52 = vmax.f32 %v2656_v48, 0.0  ;;  %v2657_v54 = vadd.f32 %v5717_v39, %v2601_v49 }
 0x36f   : >> { %v2664_v55 = vmax.f32 %v2658_v52, %v2662_v51  ;;  %v2659_v56 = vmax.f32 %v2657_v54, 0.0 }
 0x371   : >> { %v2665_v57 = vmax.f32 %v2659_v56, %v2663_v53 }
 0x373   : >> { %v5124_v58 = vpack.c.bf16 %v2665_v57, %v2664_v55 }
 0x375   : >> { %5126 = vmatpush3.bf16.msk.msra.mxu0 %vm5125_vm2, %v5124_v58  ;;  %5130 = vmatpush3.bf16.msk.msra.mxu1 %vm5125_vm2, %v5124_v58 }
 0x378   : >> { %4833 = vmatmul.mubr.msk.f32.vlgmr.msra.gmra.mrb[36].mxu0 %vm2666_vm3, %v5505_v9  ;;  %4840 = vmatmul.mubr.msk.f32.vlgmr.msra.gmra.mrb[36].mxu1 %vm2666_vm3, %v5511_v12 }
 0x448   : > { %1735 = sbr.rel (!%p1733_p12) target bundleno = 582 (0x246), region = 137 }
 0x44b   : >> { %v2740_v19 = vpop.f32.mrb[36].mxu0  ;;  %v2813_v59 = vpop.f32.mrb[36].mxu1 }
 0x44c   : >> { %v2817_v60 = vmax.f32 %v2740_v19, %v2813_v59  ;;  %v4834_v62 = vpop.f32.mrb[37].mxu0  ;;  %v4841_v63 = vpop.f32.mrb[37].mxu1 }
 0x44e   : >> { %2821 = vst.msk [vmem:[%s2819_s26] sm:$0x3f] %vm2820_vm4, %v2817_v60 }
 0x44f LB: >> { %v2852_v2 = vld [vmem:[%s6506_s5 + $0x40] sm:$0xff]  ;;  %v2853_v39 = vld [vmem:[%s6506_s5 + $0x48] sm:$0xff]  ;;  %v5388_v3 = vmov 0.0   ;;  %v2854_v6 = vld [vmem:[%s6506_s5 + $0x50] sm:$0xff]  ;;  %vm5389_vm6 = vmmov 0   ;;  %s4313_s26 = sshll.u32 %s5379_s27, 4  ;;  %s5379_s27 = sphi %s5989_s27, %s2829_s27  }
 0x450   : >> { %v2838_v61 = vld [vmem:[%s6506_s5] sm:$0xff]  ;;  %4842 = vmatprep.subr.bf16.mxu0 %v5388_v3  ;;  %4854 = vmatprep.subr.bf16.mxu1 %v5388_v3  ;;  %v2860_v4 = vpack.c.bf16 %v2853_v39, %v2852_v2  ;;  %v2839_v5 = vld [vmem:[%s6506_s5 + $0x8] sm:$0xff]  ;;  %v2855_v7 = vld [vmem:[%s6506_s5 + $0x58] sm:$0xff]  ;;  %s6039_s25 = scalar_lea.vmem [#allocation3], %s4313_s26  ;;  %vm2871_vm7 = vcmask 523264   ;;  %vm3776_vm8 = vcmask 1043456  }
 0x451   : >> { %v2846_v10 = vpack.c.bf16 %v2839_v5, %v2838_v61  ;;  %v2840_v14 = vld [vmem:[%s6506_s5 + $0x10] sm:$0xff]  ;;  %v2841_v15 = vld [vmem:[%s6506_s5 + $0x18] sm:$0xff]  ;;  %4850 = vmatprep.mubr.msk.bf16.mxu0 %vm5389_vm6, %v5388_v3  ;;  %4862 = vmatprep.mubr.msk.bf16.mxu1 %vm5389_vm6, %v5388_v3  ;;  %v2861_v16 = vpack.c.bf16 %v2855_v7, %v2854_v6  ;;  %v2856_v18 = vld [vmem:[%s6506_s5 + $0x60] sm:$0xff]  ;;  %vm3772_vm9 = vcmask 31744   ;;  %s2829_s27 = sadd.s32 1, %s5379_s27  }
 0x452   : >> { %4843 = vmatpush3.bf16.msra.mxu0 %v2860_v4  ;;  %v2847_v17 = vpack.c.bf16 %v2841_v15, %v2840_v14  ;;  %v2857_v20 = vld [vmem:[%s6506_s5 + $0x68] sm:$0xff]  ;;  %v2842_v21 = vld [vmem:[%s6506_s5 + $0x20] sm:$0xff]  ;;  %v2858_v26 = vld [vmem:[%s6506_s5 + $0x70] sm:$0xff]  ;;  %p2826_p13 = scmp.ge.s32.totalorder %s2829_s27, 2  }
 0x453   : >> { %4855 = vmatpush3.bf16.msra.mxu1 %v2846_v10  ;;  %4844 = vmatprep.subr.bf16.mxu0 %v5388_v3  ;;  %v2843_v13 = vld [vmem:[%s6506_s5 + $0x28] sm:$0xff]  ;;  %v2862_v24 = vpack.c.bf16 %v2857_v20, %v2856_v18  ;;  %v2859_v27 = vld [vmem:[%s6506_s5 + $0x78] sm:$0xff]  ;;  %v2844_v29 = vld [vmem:[%s6506_s5 + $0x30] sm:$0xff]  ;;  %vm5391_vm10 = vmmov (%p2826_p13), 0   ;;  %s4301_s22 = sshll.u32 (%p2826_p13), %s5464_s13, 4  ;;  %s4039_s21 = sshll.u32 (%p2826_p13), %s5518_s29, 4  ;;  %s6458_s21 = int_to_ptr.vmem [resolvable:$true] %s4039_s21 }
 0x454   : >> { %4856 = vmatprep.subr.bf16.mxu1 %v5388_v3  ;;  %v2848_v25 = vpack.c.bf16 %v2843_v13, %v2842_v21  ;;  %v2845_v30 = vld [vmem:[%s6506_s5 + $0x38] sm:$0xff]  ;;  %v2863_v34 = vpack.c.bf16 %v2859_v27, %v2858_v26  ;;  %v3049_v42 = vld [vmem:[%s6506_s5 + $0x80] sm:$0xff]  ;;  %v3050_v43 = vld [vmem:[%s6506_s5 + $0x88] sm:$0xff]  ;;  %s6456_s26 = scalar_lea.hbm (%p2826_p13), %s6510_s9, %s4301_s22  ;;  %s6514_s14 = sand.u32 (%p2826_p13), 1, %s5359_s10  }
 0x455   : >> { %v2833_v22 = vld [vmem:[%s6039_s25] sm:$0x3f]  ;;  %v2849_v35 = vpack.c.bf16 %v2845_v30, %v2844_v29  ;;  %v4271_v38 = vld [vmem:[%s6039_s25 + $0x8] sm:$0x3f]  ;;  %v3057_v44 = vpack.c.bf16 %v3050_v43, %v3049_v42  ;;  %v3051_v45 = vld [vmem:[%s6506_s5 + $0x90] sm:$0xff]  ;;  %s4027_s16 = scalar_lea.sflag (%p2826_p13), [#allocation6], %s6514_s14 }
 0x456   : >> { %v6042_v23 = vpack.c.bf16 %v2833_v22, %v2833_v22  ;;  %4845 = vmatpush3.bf16.msra.mxu0 %v2861_v16  ;;  %v6065_v40 = vpack.c.bf16 %v4271_v38, %v4271_v38  ;;  %v3052_v46 = vld [vmem:[%s6506_s5 + $0x98] sm:$0xff]  ;;  %v3053_v47 = vld [vmem:[%s6506_s5 + $0xa0] sm:$0xff]  ;;  %v3054_v48 = vld [vmem:[%s6506_s5 + $0xa8] sm:$0xff]  ;;  %s5293_s27 = scalar_lea.vmem (%p2826_p13), %s6458_s21, 16  ;;  %s5392_s13 = smov (%p2826_p13), [#allocation5]  }
 0x457   : >> { %4857 = vmatpush3.bf16.msra.mxu1 %v2847_v17  ;;  %4846 = vmatprep.subr.bf16.mxu0 %v5388_v3  ;;  %v3058_v36 = vpack.c.bf16 %v3052_v46, %v3051_v45  ;;  %v3059_v49 = vpack.c.bf16 %v3054_v48, %v3053_v47  ;;  %v3055_v50 = vld [vmem:[%s6506_s5 + $0xb0] sm:$0xff]  ;;  %v3056_v51 = vld [vmem:[%s6506_s5 + $0xb8] sm:$0xff]  ;;  %v3157_v54 = vld [vmem:[%s6506_s5 + $0xc0] sm:$0xff]  ;;  %p5294_p0 = scmp.ne.s32.totalorder (%p2826_p13), %s6458_s21, %s5293_s27  ;;  %s5297_s28 = sshll.u32 (%p2826_p13), %s5392_s13, 4  ;;  %s5298_s28 = int_to_ptr.vmem [resolvable:$false] %s5297_s28 }
 0x458   : >> { %v2867_v28 = vshll.u32 %v6042_v23, 16  ;;  %4858 = vmatprep.subr.bf16.mxu1 %v5388_v3  ;;  %v2865_v31 = vshrl.u32 %v6042_v23, 16  ;;  %v2960_v0 = vshll.u32 %v6065_v40, 16  ;;  %v2958_v11 = vshrl.u32 %v6065_v40, 16  ;;  %v3158_v53 = vld [vmem:[%s6506_s5 + $0xc8] sm:$0xff]  ;;  %v3159_v58 = vld [vmem:[%s6506_s5 + $0xd0] sm:$0xff]  ;;  %p5300_p3 = scmp.lt.s32.totalorder (%p2826_p13), %s6458_s21, %s5298_s28 }
 0x459   : >> { %v3060_v52 = vpack.c.bf16 %v3056_v51, %v3055_v50  ;;  %v3062_v55 = vrot.slane %v6042_v23, 1  ;;  %v3108_v56 = vrot.slane %v6065_v40, 1  ;;  %v3165_v57 = vpack.c.bf16 %v3158_v53, %v3157_v54  ;;  %v3160_v19 = vld [vmem:[%s6506_s5 + $0xd8] sm:$0xff]  ;;  %v3161_v60 = vld [vmem:[%s6506_s5 + $0xe0] sm:$0xff]  ;;  %v3162_v62 = vld [vmem:[%s6506_s5 + $0xe8] sm:$0xff]  ;;  %p5295_p1 = pnand (%p2826_p13), %p5294_p0, %p5481_p5  ;;  %s5299_s24 = scalar_lea.vmem (%p2826_p13), %s5298_s28, 32 }
 0x45a   : >> { %v2869_v32 = vrot.slane %v2867_v28, 1  ;;  %4847 = vmatpush3.bf16.msra.mxu0 %v2862_v24  ;;  %v2962_v41 = vrot.slane %v2960_v0, 1  ;;  %v3166_v59 = vpack.c.bf16 %v3160_v19, %v3159_v58  ;;  %v3167_v63 = vpack.c.bf16 %v3162_v62, %v3161_v60  ;;  %v3163_v2 = vld [vmem:[%s6506_s5 + $0xf0] sm:$0xff]  ;;  %v3164_v39 = vld [vmem:[%s6506_s5 + $0xf8] sm:$0xff]  ;;  %v3255_v5 = vld [vmem:[%s6506_s5 + $0x100] sm:$0xff]  ;;  %p5301_p4 = scmp.lt.s32.totalorder (%p2826_p13), %s5299_s24, %s5293_s27 }
 0x45b   : >> { %4859 = vmatpush3.bf16.msra.mxu1 %v2848_v25  ;;  %4848 = vmatprep.subr.bf16.mxu0 %v5388_v3  ;;  %v3168_v61 = vpack.c.bf16 %v3164_v39, %v3163_v2  ;;  %v3256_v6 = vld [vmem:[%s6506_s5 + $0x108] sm:$0xff]  ;;  %v3257_v14 = vld [vmem:[%s6506_s5 + $0x110] sm:$0xff]  ;;  %v3258_v15 = vld [vmem:[%s6506_s5 + $0x118] sm:$0xff]  ;;  %p5296_p2 = pneg (%p2826_p13), %p5295_p1 }
 0x45c   : >> { %4860 = vmatprep.subr.bf16.mxu1 %v5388_v3  ;;  %v2870_v37 = vor.u32 %v2869_v32, %v2865_v31  ;;  %v6088_v33 = vor.u32 %v2962_v41, %v2958_v11  ;;  %v3260_v18 = vld [vmem:[%s6506_s5 + $0x128] sm:$0xff]  ;;  %v3261_v13 = vld [vmem:[%s6506_s5 + $0x130] sm:$0xff]  ;;  %v3262_v22 = vld [vmem:[%s6506_s5 + $0x138] sm:$0xff]  ;;  %p5302_p7 = por (%p2826_p13), %p5301_p4, %p5300_p3 }
 0x45d   : >> { %v3358_v26 = vld [vmem:[%s6506_s5 + $0x140] sm:$0xff]  ;;  %v3359_v27 = vld [vmem:[%s6506_s5 + $0x148] sm:$0xff]  ;;  %v3360_v30 = vld [vmem:[%s6506_s5 + $0x150] sm:$0xff] }
 0x45e   : >> { %4849 = vmatpush3.bf16.msra.mxu0 %v2863_v34  ;;  %v3366_v29 = vpack.c.bf16 %v3359_v27, %v3358_v26  ;;  %v3361_v31 = vld [vmem:[%s6506_s5 + $0x158] sm:$0xff]  ;;  %v3364_v38 = vld [vmem:[%s6506_s5 + $0x170] sm:$0xff]  ;;  %v3461_v41 = vld [vmem:[%s6506_s5 + $0x180] sm:$0xff]  ;;  %p5303_p8 = pnand (%p2826_p13), %p5302_p7, %p5296_p2 }
 0x45f   : >> { %4861 = vmatpush3.bf16.msra.mxu1 %v2849_v35  ;;  %4866 = vmatprep.subr.bf16.mxu0 %v5388_v3  ;;  %v3367_v32 = vpack.c.bf16 %v3361_v31, %v3360_v30  ;;  %v3365_v0 = vld [vmem:[%s6506_s5 + $0x178] sm:$0xff]  ;;  %v3462_v42 = vld [vmem:[%s6506_s5 + $0x188] sm:$0xff]  ;;  %v3467_v48 = vld [vmem:[%s6506_s5 + $0x1b0] sm:$0xff] }
 0x460   : >> { %4878 = vmatprep.subr.bf16.mxu1 %v5388_v3  ;;  %v3369_v11 = vpack.c.bf16 %v3365_v0, %v3364_v38  ;;  %v3464_v45 = vld [vmem:[%s6506_s5 + $0x198] sm:$0xff]  ;;  %v3560_v54 = vld [vmem:[%s6506_s5 + $0x1c8] sm:$0xff]  ;;  %v3563_v19 = vld [vmem:[%s6506_s5 + $0x1e0] sm:$0xff] }
 0x461   : >> { %4851 = vmatmul.mubr.msk.bf16.vlgmr.msra.gmra.mrb[0].mxu0 %vm2871_vm7, %v2870_v37  ;;  %v4289_v51 = vld [vmem:[%s6039_s25 + $0x18] sm:$0x3f] }
 0x462   : >> { %4863 = vmatmul.mubr.msk.bf16.vlgmr.msra.gmra.mrb[0].mxu1 %vm2871_vm7, %v6042_v23  ;;  %4867 = vmatpush3.bf16.msra.mxu0 %v2860_v4  ;;  %v4280_v4 = vld [vmem:[%s6039_s25 + $0x10] sm:$0x3f]  ;;  %v3266_v23 = vpack.c.bf16 %v3262_v22, %v3261_v13  ;;  %v6303_v53 = vpack.c.bf16 %v4289_v51, %v4289_v51  ;;  %v3566_v2 = vld [vmem:[%s6506_s5 + $0x1f8] sm:$0xff] }
 0x463   : >> { %4879 = vmatpush3.bf16.msra.mxu1 %v2846_v10  ;;  %4868 = vmatprep.subr.bf16.mxu0 %v5388_v3  ;;  %v6173_v7 = vpack.c.bf16 %v4280_v4, %v4280_v4  ;;  %v3263_v10 = vpack.c.bf16 %v3256_v6, %v3255_v5  ;;  %v3662_v5 = vld [vmem:[%s6506_s5 + $0x200] sm:$0xff]  ;;  %v3663_v6 = vld [vmem:[%s6506_s5 + $0x208] sm:$0xff]  ;;  %v3668_v13 = vld [vmem:[%s6506_s5 + $0x230] sm:$0xff] }
 0x464   : >> { %4880 = vmatprep.subr.bf16.mxu1 %v5388_v3  ;;  %4874 = vmatprep.mubr.msk.bf16.mxu0 %vm5389_vm6, %v5388_v3  ;;  %v3614_v62 = vshll.u32 %v6303_v53, 16  ;;  %v3669_v22 = vld [vmem:[%s6506_s5 + $0x238] sm:$0xff] }
 0x465   : >> { %4886 = vmatprep.mubr.msk.bf16.mxu1 %vm5389_vm6, %v5388_v3  ;;  %v3310_v21 = vshll.u32 %v6173_v7, 16  ;;  %v3412_v43 = vrot.slane %v6173_v7, 1 }
 0x466   : >> { %4869 = vmatpush3.bf16.msra.mxu0 %v2861_v16  ;;  %v3264_v16 = vpack.c.bf16 %v3258_v15, %v3257_v14  ;;  %v3616_v4 = vrot.slane %v3614_v62, 1  ;;  %v3670_v14 = vpack.c.bf16 %v3663_v6, %v3662_v5  ;;  %v3664_v15 = vld [vmem:[%s6506_s5 + $0x210] sm:$0xff] }
 0x467   : >> { %4881 = vmatpush3.bf16.msra.mxu1 %v2847_v17  ;;  %4870 = vmatprep.subr.bf16.mxu0 %v5388_v3  ;;  %v3259_v17 = vld [vmem:[%s6506_s5 + $0x120] sm:$0xff] }
 0x468   : >> { %4882 = vmatprep.subr.bf16.mxu1 %v5388_v3  ;;  %v3265_v20 = vpack.c.bf16 %v3260_v18, %v3259_v17  ;;  %v3666_v18 = vld [vmem:[%s6506_s5 + $0x220] sm:$0xff] }
 0x46a   : >> { %4871 = vmatpush3.bf16.msra.mxu0 %v2862_v24  ;;  %v3308_v24 = vshrl.u32 %v6173_v7, 16 }
 0x46b   : >> { %4883 = vmatpush3.bf16.msra.mxu1 %v2848_v25  ;;  %4872 = vmatprep.subr.bf16.mxu0 %v5388_v3  ;;  %v3312_v25 = vrot.slane %v3310_v21, 1 }
 0x46c   : >> { %4884 = vmatprep.subr.bf16.mxu1 %v5388_v3 }
 0x46d   : >> { %v6217_v28 = vor.u32 %v3312_v25, %v3308_v24  ;;  %v3716_v24 = vrot.slane %v6303_v53, 1 }
 0x46e   : >> { %4873 = vmatpush3.bf16.msra.mxu0 %v2863_v34  ;;  %v3362_v34 = vld [vmem:[%s6506_s5 + $0x160] sm:$0xff] }
 0x46f   : >> { %4885 = vmatpush3.bf16.msra.mxu1 %v2849_v35  ;;  %4890 = vmatprep.subr.bf16.mxu0 %v5388_v3  ;;  %v3363_v35 = vld [vmem:[%s6506_s5 + $0x168] sm:$0xff] }
 0x470   : >> { %4902 = vmatprep.subr.bf16.mxu1 %v5388_v3  ;;  %v3368_v37 = vpack.c.bf16 %v3363_v35, %v3362_v34 }
 0x471   : >> { %4875 = vmatmul.mubr.msk.bf16.vlgmr.msra.gmra.mrb[4].mxu0 %vm2871_vm7, %v6088_v33 }
 0x472   : >> { %4887 = vmatmul.mubr.msk.bf16.vlgmr.msra.gmra.mrb[4].mxu1 %vm2871_vm7, %v6065_v40  ;;  %4891 = vmatpush3.bf16.msra.mxu0 %v3057_v44 }
 0x473   : >> { %4903 = vmatpush3.bf16.msra.mxu1 %v3057_v44  ;;  %4892 = vmatprep.subr.bf16.mxu0 %v5388_v3  ;;  %v3463_v44 = vld [vmem:[%s6506_s5 + $0x190] sm:$0xff] }
 0x474   : >> { %4904 = vmatprep.subr.bf16.mxu1 %v5388_v3  ;;  %4898 = vmatprep.mubr.msk.bf16.mxu0 %vm5389_vm6, %v5388_v3  ;;  %v3470_v46 = vpack.c.bf16 %v3464_v45, %v3463_v44 }
 0x475   : >> { %4910 = vmatprep.mubr.msk.bf16.mxu1 %vm5389_vm6, %v5388_v3 }
 0x476   : >> { %4893 = vmatpush3.bf16.msra.mxu0 %v3058_v36 }
 0x477   : >> { %4905 = vmatpush3.bf16.msra.mxu1 %v3058_v36  ;;  %4894 = vmatprep.subr.bf16.mxu0 %v5388_v3  ;;  %v3465_v36 = vld [vmem:[%s6506_s5 + $0x1a0] sm:$0xff] }
 0x478   : >> { %4906 = vmatprep.subr.bf16.mxu1 %v5388_v3 }
 0x47a   : >> { %4895 = vmatpush3.bf16.msra.mxu0 %v3059_v49 }
 0x47b   : >> { %4907 = vmatpush3.bf16.msra.mxu1 %v3059_v49  ;;  %4896 = vmatprep.subr.bf16.mxu0 %v5388_v3  ;;  %v3468_v49 = vld [vmem:[%s6506_s5 + $0x1b8] sm:$0xff] }
 0x47c   : >> { %4908 = vmatprep.subr.bf16.mxu1 %v5388_v3  ;;  %v3472_v50 = vpack.c.bf16 %v3468_v49, %v3467_v48 }
 0x47e   : >> { %4897 = vmatpush3.bf16.msra.mxu0 %v3060_v52 }
 0x47f   : >> { %4909 = vmatpush3.bf16.msra.mxu1 %v3060_v52  ;;  %4914 = vmatprep.subr.bf16.mxu0 %v5388_v3  ;;  %v3559_v52 = vld [vmem:[%s6506_s5 + $0x1c0] sm:$0xff] }
 0x480   : >> { %4926 = vmatprep.subr.bf16.mxu1 %v5388_v3 }
 0x481   : >> { %4899 = vmatmul.mubr.msk.bf16.vlgmr.msra.gmra.mrb[8].mxu0 %vm2871_vm7, %v3062_v55  ;;  %v3567_v55 = vpack.c.bf16 %v3560_v54, %v3559_v52 }
 0x482   : >> { %4911 = vmatmul.mubr.msk.bf16.vlgmr.msra.gmra.mrb[8].mxu1 %vm2871_vm7, %v3108_v56  ;;  %4915 = vmatpush3.bf16.msra.mxu0 %v3165_v57 }
 0x483   : >> { %4927 = vmatpush3.bf16.msra.mxu1 %v3165_v57  ;;  %4916 = vmatprep.subr.bf16.mxu0 %v5388_v3  ;;  %v3562_v57 = vld [vmem:[%s6506_s5 + $0x1d8] sm:$0xff] }
 0x484   : >> { %4928 = vmatprep.subr.bf16.mxu1 %v5388_v3  ;;  %4922 = vmatprep.mubr.msk.bf16.mxu0 %vm5389_vm6, %v5388_v3 }
 0x485   : >> { %4934 = vmatprep.mubr.msk.bf16.mxu1 %vm5389_vm6, %v5388_v3 }
 0x486   : >> { %4917 = vmatpush3.bf16.msra.mxu0 %v3166_v59 }
 0x487   : >> { %4929 = vmatpush3.bf16.msra.mxu1 %v3166_v59  ;;  %4918 = vmatprep.subr.bf16.mxu0 %v5388_v3  ;;  %v3564_v59 = vld [vmem:[%s6506_s5 + $0x1e8] sm:$0xff] }
 0x488   : >> { %4930 = vmatprep.subr.bf16.mxu1 %v5388_v3  ;;  %v3569_v60 = vpack.c.bf16 %v3564_v59, %v3563_v19 }
 0x48a   : >> { %4919 = vmatpush3.bf16.msra.mxu0 %v3167_v63 }
 0x48b   : >> { %4931 = vmatpush3.bf16.msra.mxu1 %v3167_v63  ;;  %4920 = vmatprep.subr.bf16.mxu0 %v5388_v3  ;;  %v3565_v63 = vld [vmem:[%s6506_s5 + $0x1f0] sm:$0xff] }
 0x48c   : >> { %4932 = vmatprep.subr.bf16.mxu1 %v5388_v3  ;;  %v3570_v39 = vpack.c.bf16 %v3566_v2, %v3565_v63 }
 0x48e   : >> { %4921 = vmatpush3.bf16.msra.mxu0 %v3168_v61 }
 0x48f   : >> { %4933 = vmatpush3.bf16.msra.mxu1 %v3168_v61  ;;  %4938 = vmatprep.subr.bf16.mxu0 %v5388_v3  ;;  %v3612_v61 = vshrl.u32 %v6303_v53, 16 }
 0x490   : >> { %4950 = vmatprep.subr.bf16.mxu1 %v5388_v3 }
 0x491   : >> { %4923 = vmatmul.mubr.msk.bf16.vlgmr.msra.gmra.mrb[12].mxu0 %vm2871_vm7, %v6065_v40  ;;  %v3466_v40 = vld [vmem:[%s6506_s5 + $0x1a8] sm:$0xff] }
 0x492   : >> { %4935 = vmatmul.mubr.msk.bf16.vlgmr.msra.gmra.mrb[12].mxu1 %vm2871_vm7, %v6173_v7  ;;  %4939 = vmatpush3.bf16.msra.mxu0 %v3263_v10  ;;  %v3471_v47 = vpack.c.bf16 %v3466_v40, %v3465_v36 }
 0x493   : >> { %4951 = vmatpush3.bf16.msra.mxu1 %v3263_v10  ;;  %4940 = vmatprep.subr.bf16.mxu0 %v5388_v3  ;;  %v3617_v10 = vor.u32 %v3616_v4, %v3612_v61 }
 0x494   : >> { %4952 = vmatprep.subr.bf16.mxu1 %v5388_v3  ;;  %4946 = vmatprep.mubr.msk.bf16.mxu0 %vm5389_vm6, %v5388_v3 }
 0x495   : >> { %4958 = vmatprep.mubr.msk.bf16.mxu1 %vm5389_vm6, %v5388_v3 }
 0x496   : >> { %4941 = vmatpush3.bf16.msra.mxu0 %v3264_v16 }
 0x497   : >> { %4953 = vmatpush3.bf16.msra.mxu1 %v3264_v16  ;;  %4942 = vmatprep.subr.bf16.mxu0 %v5388_v3  ;;  %v3665_v16 = vld [vmem:[%s6506_s5 + $0x218] sm:$0xff] }
 0x498   : >> { %4954 = vmatprep.subr.bf16.mxu1 %v5388_v3  ;;  %v3671_v17 = vpack.c.bf16 %v3665_v16, %v3664_v15 }
 0x49a   : >> { %4943 = vmatpush3.bf16.msra.mxu0 %v3265_v20 }
 0x49b   : >> { %4955 = vmatpush3.bf16.msra.mxu1 %v3265_v20  ;;  %4944 = vmatprep.subr.bf16.mxu0 %v5388_v3  ;;  %v3667_v20 = vld [vmem:[%s6506_s5 + $0x228] sm:$0xff] }
 0x49c   : >> { %4956 = vmatprep.subr.bf16.mxu1 %v5388_v3  ;;  %v3672_v21 = vpack.c.bf16 %v3667_v20, %v3666_v18 }
 0x49e   : >> { %4945 = vmatpush3.bf16.msra.mxu0 %v3266_v23 }
 0x49f   : >> { %4957 = vmatpush3.bf16.msra.mxu1 %v3266_v23  ;;  %4962 = vmatprep.subr.bf16.mxu0 %v5388_v3  ;;  %v3673_v23 = vpack.c.bf16 %v3669_v22, %v3668_v13 }
 0x4a0   : >> { %4974 = vmatprep.subr.bf16.mxu1 %v5388_v3 }
 0x4a1   : >> { %4947 = vmatmul.mubr.msk.bf16.vlgmr.msra.gmra.mrb[16].mxu0 %vm2871_vm7, %v6088_v33  ;;  %v3469_v33 = vpack.c.bf16 %v3462_v42, %v3461_v41 }
 0x4a2   : >> { %4959 = vmatmul.mubr.msk.bf16.vlgmr.msra.gmra.mrb[16].mxu1 %vm2871_vm7, %v6217_v28  ;;  %4963 = vmatpush3.bf16.msra.mxu0 %v3366_v29 }
 0x4a3   : >> { %4975 = vmatpush3.bf16.msra.mxu1 %v3366_v29  ;;  %4964 = vmatprep.subr.bf16.mxu0 %v5388_v3 }
 0x4a4   : >> { %4976 = vmatprep.subr.bf16.mxu1 %v5388_v3  ;;  %4970 = vmatprep.mubr.msk.bf16.mxu0 %vm5389_vm6, %v5388_v3 }
 0x4a5   : >> { %4982 = vmatprep.mubr.msk.bf16.mxu1 %vm5389_vm6, %v5388_v3 }
 0x4a6   : >> { %4965 = vmatpush3.bf16.msra.mxu0 %v3367_v32 }
 0x4a7   : >> { %4977 = vmatpush3.bf16.msra.mxu1 %v3367_v32  ;;  %4966 = vmatprep.subr.bf16.mxu0 %v5388_v3 }
 0x4a8   : >> { %4978 = vmatprep.subr.bf16.mxu1 %v5388_v3 }
 0x4aa   : >> { %4967 = vmatpush3.bf16.msra.mxu0 %v3368_v37 }
 0x4ab   : >> { %4979 = vmatpush3.bf16.msra.mxu1 %v3368_v37  ;;  %4968 = vmatprep.subr.bf16.mxu0 %v5388_v3 }
 0x4ac   : >> { %4980 = vmatprep.subr.bf16.mxu1 %v5388_v3 }
 0x4ae   : >> { %4969 = vmatpush3.bf16.msra.mxu0 %v3369_v11 }
 0x4af   : >> { %4981 = vmatpush3.bf16.msra.mxu1 %v3369_v11  ;;  %4986 = vmatprep.subr.bf16.mxu0 %v5388_v3 }
 0x4b0   : >> { %4998 = vmatprep.subr.bf16.mxu1 %v5388_v3 }
 0x4b1   : >> { %4971 = vmatmul.mubr.msk.bf16.vlgmr.msra.gmra.mrb[20].mxu0 %vm2871_vm7, %v3108_v56  ;;  %v3561_v56 = vld [vmem:[%s6506_s5 + $0x1d0] sm:$0xff] }
 0x4b2   : >> { %4983 = vmatmul.mubr.msk.bf16.vlgmr.msra.gmra.mrb[20].mxu1 %vm2871_vm7, %v3412_v43  ;;  %4987 = vmatpush3.bf16.msra.mxu0 %v3469_v33  ;;  %v3568_v58 = vpack.c.bf16 %v3562_v57, %v3561_v56 }
 0x4b3   : >> { %4999 = vmatpush3.bf16.msra.mxu1 %v3469_v33  ;;  %4988 = vmatprep.subr.bf16.mxu0 %v5388_v3 }
 0x4b4   : >> { %5000 = vmatprep.subr.bf16.mxu1 %v5388_v3  ;;  %4994 = vmatprep.mubr.msk.bf16.mxu0 %vm5389_vm6, %v5388_v3 }
 0x4b5   : >> { %5006 = vmatprep.mubr.msk.bf16.mxu1 %vm5389_vm6, %v5388_v3 }
 0x4b6   : >> { %4989 = vmatpush3.bf16.msra.mxu0 %v3470_v46 }
 0x4b7   : >> { %5001 = vmatpush3.bf16.msra.mxu1 %v3470_v46  ;;  %4990 = vmatprep.subr.bf16.mxu0 %v5388_v3 }
 0x4b8   : >> { %5002 = vmatprep.subr.bf16.mxu1 %v5388_v3 }
 0x4ba   : >> { %4991 = vmatpush3.bf16.msra.mxu0 %v3471_v47 }
 0x4bb   : >> { %5003 = vmatpush3.bf16.msra.mxu1 %v3471_v47  ;;  %4992 = vmatprep.subr.bf16.mxu0 %v5388_v3 }
 0x4bc   : >> { %5004 = vmatprep.subr.bf16.mxu1 %v5388_v3 }
 0x4be   : >> { %4993 = vmatpush3.bf16.msra.mxu0 %v3472_v50 }
 0x4bf   : >> { %5005 = vmatpush3.bf16.msra.mxu1 %v3472_v50  ;;  %5010 = vmatprep.subr.bf16.mxu0 %v5388_v3 }
 0x4c0   : >> { %5022 = vmatprep.subr.bf16.mxu1 %v5388_v3 }
 0x4c1   : >> { %4995 = vmatmul.mubr.msk.bf16.vlgmr.msra.gmra.mrb[24].mxu0 %vm2871_vm7, %v6173_v7 }
 0x4c2   : >> { %5007 = vmatmul.mubr.msk.bf16.vlgmr.msra.gmra.mrb[24].mxu1 %vm2871_vm7, %v6303_v53  ;;  %5011 = vmatpush3.bf16.msra.mxu0 %v3567_v55 }
 0x4c3   : >> { %5023 = vmatpush3.bf16.msra.mxu1 %v3567_v55  ;;  %5012 = vmatprep.subr.bf16.mxu0 %v5388_v3 }
 0x4c4   : >> { %5024 = vmatprep.subr.bf16.mxu1 %v5388_v3  ;;  %5018 = vmatprep.mubr.msk.bf16.mxu0 %vm5389_vm6, %v5388_v3 }
 0x4c5   : >> { %5030 = vmatprep.mubr.msk.bf16.mxu1 %vm5389_vm6, %v5388_v3 }
 0x4c6   : >> { %5013 = vmatpush3.bf16.msra.mxu0 %v3568_v58 }
 0x4c7   : >> { %5025 = vmatpush3.bf16.msra.mxu1 %v3568_v58  ;;  %5014 = vmatprep.subr.bf16.mxu0 %v5388_v3 }
 0x4c8   : >> { %5026 = vmatprep.subr.bf16.mxu1 %v5388_v3 }
 0x4ca   : >> { %5015 = vmatpush3.bf16.msra.mxu0 %v3569_v60 }
 0x4cb   : >> { %5027 = vmatpush3.bf16.msra.mxu1 %v3569_v60  ;;  %5016 = vmatprep.subr.bf16.mxu0 %v5388_v3 }
 0x4cc   : >> { %5028 = vmatprep.subr.bf16.mxu1 %v5388_v3 }
 0x4ce   : >> { %5017 = vmatpush3.bf16.msra.mxu0 %v3570_v39 }
 0x4cf   : >> { %5029 = vmatpush3.bf16.msra.mxu1 %v3570_v39  ;;  %5034 = vmatprep.subr.bf16.mxu0 %v5388_v3 }
 0x4d0   : >> { %5046 = vmatprep.subr.bf16.mxu1 %v5388_v3 }
 0x4d1   : >> { %5019 = vmatmul.mubr.msk.bf16.vlgmr.msra.gmra.mrb[28].mxu0 %vm2871_vm7, %v6217_v28 }
 0x4d2   : >> { %5031 = vmatmul.mubr.msk.bf16.vlgmr.msra.gmra.mrb[28].mxu1 %vm2871_vm7, %v3617_v10  ;;  %5035 = vmatpush3.bf16.msra.mxu0 %v3670_v14 }
 0x4d3   : >> { %5047 = vmatpush3.bf16.msra.mxu1 %v3670_v14  ;;  %5036 = vmatprep.subr.bf16.mxu0 %v5388_v3 }
 0x4d4   : >> { %5048 = vmatprep.subr.bf16.mxu1 %v5388_v3  ;;  %5042 = vmatprep.mubr.msk.bf16.mxu0 %vm5389_vm6, %v5388_v3 }
 0x4d5   : >> { %5054 = vmatprep.mubr.msk.bf16.mxu1 %vm5389_vm6, %v5388_v3 }
 0x4d6   : >> { %5037 = vmatpush3.bf16.msra.mxu0 %v3671_v17 }
 0x4d7   : >> { %5049 = vmatpush3.bf16.msra.mxu1 %v3671_v17  ;;  %5038 = vmatprep.subr.bf16.mxu0 %v5388_v3 }
 0x4d8   : >> { %5050 = vmatprep.subr.bf16.mxu1 %v5388_v3 }
 0x4da   : >> { %5039 = vmatpush3.bf16.msra.mxu0 %v3672_v21 }
 0x4db   : >> { %5051 = vmatpush3.bf16.msra.mxu1 %v3672_v21  ;;  %5040 = vmatprep.subr.bf16.mxu0 %v5388_v3 }
 0x4dc   : >> { %5052 = vmatprep.subr.bf16.mxu1 %v5388_v3 }
 0x4de   : >> { %5041 = vmatpush3.bf16.msra.mxu0 %v3673_v23 }
 0x4df   : >> { %5053 = vmatpush3.bf16.msra.mxu1 %v3673_v23  ;;  %5058 = vmatprep.subr.mxu0 %v5388_v3 }
 0x4e0   : >> { %5063 = vmatprep.subr.mxu1 %v5388_v3 }
 0x4e1   : >> { %5043 = vmatmul.mubr.msk.bf16.vlgmr.msra.gmra.mrb[32].mxu0 %vm2871_vm7, %v3412_v43 }
 0x4e2   : >> { %5055 = vmatmul.mubr.msk.bf16.vlgmr.msra.gmra.mrb[32].mxu1 %vm2871_vm7, %v3716_v24  ;;  %5060 = vmatprep.mubr.msk.f32.mxu0 %vm5389_vm6, %v5388_v3 }
 0x4e3   : >> { %5065 = vmatprep.mubr.msk.f32.mxu1 %vm5389_vm6, %v5388_v3 }
 0x534   : >> { %v2909_v25 = vpop.f32.mrb[0].mxu0 }
 0x535   : >> { %v2951_v26 = vpop.f32.mrb[0].mxu1  ;;  %v4852_v27 = vpop.f32.mrb[1].mxu0 }
 0x536   : >> { %v2952_v28 = vadd.f32 %v2951_v26, %v2909_v25  ;;  %v4864_v29 = vpop.f32.mrb[1].mxu1  ;;  %v2912_v30 = vpop.f32.mrb[2].mxu0 }
 0x537   : >> { %v2954_v31 = vpop.f32.mrb[2].mxu1  ;;  %v4853_v32 = vpop.f32.mrb[3].mxu0 }
 0x538   : >> { %v4865_v34 = vpop.f32.mrb[3].mxu1 }
 0x544   : >> { %v3001_v7 = vpop.f32.mrb[4].mxu0 }
 0x545   : >> { %v3043_v35 = vpop.f32.mrb[4].mxu1  ;;  %v4876_v37 = vpop.f32.mrb[5].mxu0 }
 0x546   : >> { %v3044_v38 = vadd.f32 %v3043_v35, %v3001_v7  ;;  %v4888_v0 = vpop.f32.mrb[5].mxu1  ;;  %v3004_v11 = vpop.f32.mrb[6].mxu0 }
 0x547   : >> { %v3046_v41 = vpop.f32.mrb[6].mxu1  ;;  %v4877_v42 = vpop.f32.mrb[7].mxu0 }
 0x548   : >> { %v4889_v43 = vpop.f32.mrb[7].mxu1 }
 0x554   : >> { %v3100_v33 = vpop.f32.mrb[8].mxu0 }
 0x555   : >> { %v3106_v3 = vadd.f32 %v3100_v33, %v2952_v28  ;;  %v3146_v44 = vpop.f32.mrb[8].mxu1  ;;  %v4900_v45 = vpop.f32.mrb[9].mxu0 }
 0x556   : >> { %v3152_v46 = vadd.f32 %v3146_v44, %v3044_v38  ;;  %v4912_v36 = vpop.f32.mrb[9].mxu1  ;;  %v3103_v40 = vpop.f32.mrb[10].mxu0 }
 0x557   : >> { %v3149_v47 = vpop.f32.mrb[10].mxu1  ;;  %v4901_v48 = vpop.f32.mrb[11].mxu0 }
 0x558   : >> { %v4913_v49 = vpop.f32.mrb[11].mxu1 }
 0x564   : >> { %v3204_v50 = vpop.f32.mrb[12].mxu0 }
 0x565   : >> { %v3210_v51 = vadd.f32 %v3204_v50, %v3106_v3  ;;  %v3248_v52 = vpop.f32.mrb[12].mxu1  ;;  %v4924_v54 = vpop.f32.mrb[13].mxu0 }
 0x566   : >> { %v3254_v53 = vadd.f32 %v3248_v52, %v3152_v46  ;;  %v4936_v55 = vpop.f32.mrb[13].mxu1  ;;  %v3207_v56 = vpop.f32.mrb[14].mxu0 }
 0x567   : >> { %v3251_v57 = vpop.f32.mrb[14].mxu1  ;;  %v4925_v58 = vpop.f32.mrb[15].mxu0 }
 0x568   : >> { %v4937_v19 = vpop.f32.mrb[15].mxu1 }
 0x574   : >> { %v3301_v59 = vpop.f32.mrb[16].mxu0 }
 0x575   : >> { %v3307_v60 = vadd.f32 %v3301_v59, %v3210_v51  ;;  %v3351_v62 = vpop.f32.mrb[16].mxu1  ;;  %v4948_v63 = vpop.f32.mrb[17].mxu0 }
 0x576   : >> { %v3357_v2 = vadd.f32 %v3351_v62, %v3254_v53  ;;  %v4960_v39 = vpop.f32.mrb[17].mxu1  ;;  %v3304_v61 = vpop.f32.mrb[18].mxu0 }
 0x577   : >> { %v3354_v4 = vpop.f32.mrb[18].mxu1  ;;  %v4949_v5 = vpop.f32.mrb[19].mxu0  ;;  %v3924_v61 = vld [vmem:[#allocation4] sm:$0x1] }
 0x578   : >> { %v4961_v6 = vpop.f32.mrb[19].mxu1 }
 0x579   : > { %v3937_v6 = vld [vmem:[%s6508_s7] sm:$0xff] (%p2826_p13) }
 0x584   : >> { %v3404_v10 = vpop.f32.mrb[20].mxu0 }
 0x585   : >> { %v3410_v14 = vadd.f32 %v3404_v10, %v3307_v60  ;;  %v3450_v15 = vpop.f32.mrb[20].mxu1  ;;  %v4972_v16 = vpop.f32.mrb[21].mxu0  ;;  %v3938_v10 = vld [vmem:[%s6508_s7 + $0x8] sm:$0xff] (%p2826_p13) }
 0x586   : >> { %v3456_v17 = vadd.f32 %v3450_v15, %v3357_v2  ;;  %v4984_v18 = vpop.f32.mrb[21].mxu1  ;;  %v3407_v20 = vpop.f32.mrb[22].mxu0  ;;  %v5390_v15 = vmov (%p2826_p13), 0.0|0.0   ;;  %v5132_v16 = vpack.c.bf16 (%p2826_p13), %v3938_v10, %v3937_v6 }
 0x587   : >> { %v3453_v21 = vpop.f32.mrb[22].mxu1  ;;  %v4973_v13 = vpop.f32.mrb[23].mxu0  ;;  %v3943_v20 = vld [vmem:[%s6508_s7 + $0x30] sm:$0xff] (%p2826_p13) }
 0x588   : >> { %v4985_v22 = vpop.f32.mrb[23].mxu1  ;;  %v3945_v13 = vld [vmem:[%s6508_s7 + $0x40] sm:$0xff] (%p2826_p13) }
 0x589   : > { %v3946_v22 = vld [vmem:[%s6508_s7 + $0x48] sm:$0xff] (%p2826_p13) }
 0x594   : >> { %v3508_v23 = vpop.f32.mrb[24].mxu0 }
 0x595   : >> { %v3514_v24 = vadd.f32 %v3508_v23, %v3410_v14  ;;  %v3552_v25 = vpop.f32.mrb[24].mxu1  ;;  %v4996_v26 = vpop.f32.mrb[25].mxu0  ;;  %v3939_v14 = vld [vmem:[%s6508_s7 + $0x10] sm:$0xff] (%p2826_p13)  ;;  %v5144_v23 = vpack.c.bf16 (%p2826_p13), %v3946_v22, %v3945_v13 }
 0x596   : >> { %v3558_v27 = vadd.f32 %v3552_v25, %v3456_v17  ;;  %v5008_v28 = vpop.f32.mrb[25].mxu1  ;;  %v3511_v29 = vpop.f32.mrb[26].mxu0  ;;  %v3940_v17 = vld [vmem:[%s6508_s7 + $0x18] sm:$0xff] (%p2826_p13) }
 0x597   : >> { %v3555_v30 = vpop.f32.mrb[26].mxu1  ;;  %v4997_v31 = vpop.f32.mrb[27].mxu0  ;;  %v3948_v25 = vld [vmem:[%s6508_s7 + $0x58] sm:$0xff] (%p2826_p13)  ;;  %v3950_v28 = vld [vmem:[%s6508_s7 + $0x68] sm:$0xff] (%p2826_p13) }
 0x598   : >> { %v5009_v32 = vpop.f32.mrb[27].mxu1  ;;  %v3951_v30 = vld [vmem:[%s6508_s7 + $0x70] sm:$0xff] (%p2826_p13)  ;;  %v3952_v31 = vld [vmem:[%s6508_s7 + $0x78] sm:$0xff] (%p2826_p13) }
 0x599   : > { %v5153_v32 = vpack.c.bf16 (%p2826_p13), %v3952_v31, %v3951_v30 }
 0x5a4   : >> { %v3605_v34 = vpop.f32.mrb[28].mxu0 }
 0x5a5   : >> { %v3611_v7 = vadd.f32 %v3605_v34, %v3514_v24  ;;  %v3655_v35 = vpop.f32.mrb[28].mxu1  ;;  %v5020_v37 = vpop.f32.mrb[29].mxu0  ;;  %v3947_v24 = vld [vmem:[%s6508_s7 + $0x50] sm:$0xff] (%p2826_p13) }
 0x5a6   : >> { %v3661_v38 = vadd.f32 %v3655_v35, %v3558_v27  ;;  %v5032_v0 = vpop.f32.mrb[29].mxu1  ;;  %v3608_v11 = vpop.f32.mrb[30].mxu0  ;;  %v5147_v26 = vpack.c.bf16 (%p2826_p13), %v3948_v25, %v3947_v24  ;;  %v3949_v27 = vld [vmem:[%s6508_s7 + $0x60] sm:$0xff] (%p2826_p13) }
 0x5a7   : >> { %v3658_v41 = vpop.f32.mrb[30].mxu1  ;;  %v5021_v42 = vpop.f32.mrb[31].mxu0  ;;  %v5150_v29 = vpack.c.bf16 (%p2826_p13), %v3950_v28, %v3949_v27  ;;  %v3953_v35 = vld [vmem:[%s6509_s8] sm:$0x1] (%p2826_p13) }
 0x5a8   : >> { %v5033_v43 = vpop.f32.mrb[31].mxu1 }
 0x5b4   : >> { %v3708_v33 = vpop.f32.mrb[32].mxu0 }
 0x5b5   : >> { %v3714_v3 = vadd.f32 %v3708_v33, %v3611_v7  ;;  %v3754_v44 = vpop.f32.mrb[32].mxu1  ;;  %v5044_v45 = vpop.f32.mrb[33].mxu0 }
 0x5b6   : >> { %v3760_v46 = vadd.f32 %v3754_v44, %v3661_v38  ;;  %v5056_v36 = vpop.f32.mrb[33].mxu1  ;;  %v3711_v40 = vpop.f32.mrb[34].mxu0 }
 0x5b7   : >> { %v3767_v47 = vadd.f32 %v5987_v1, %v3714_v3  ;;  %v3757_v48 = vpop.f32.mrb[34].mxu1  ;;  %v5045_v49 = vpop.f32.mrb[35].mxu0 }
 0x5b8   : >> { %v3769_v50 = vadd.f32 %v5987_v1, %v3760_v46  ;;  %v5057_v51 = vpop.f32.mrb[35].mxu1  ;;  %v3942_v1 = vld [vmem:[%s6508_s7 + $0x28] sm:$0xff] (%p2826_p13) }
 0x5b9   : >> { %v3768_v52 = vmax.f32 %v3767_v47, 0.0 }
 0x5ba   : >> { %v3770_v54 = vmax.f32 %v3769_v50, 0.0 }
 0x5bc   : >> { %v3771_v53 = vmax.f32 %v3768_v52, %v3770_v54 }
 0x5be   : >> { %5059 = vmatpush3.msk.msra.mxu0 %vm3776_vm8, %v3771_v53  ;;  %5064 = vmatpush3.msk.msra.mxu1 %vm3776_vm8, %v3771_v53 }
 0x5bf   : >> { %5061 = vmatmul.mubr.msk.f32.vlgmr.msra.gmra.mrb[36].mxu0 %vm3772_vm9, %v5505_v9  ;;  %5066 = vmatmul.mubr.msk.f32.vlgmr.msra.gmra.mrb[36].mxu1 %vm3772_vm9, %v5511_v12  ;;  %v5135_v9 = vpack.c.bf16 (%p2826_p13), %v3940_v17, %v3939_v14  ;;  %v3941_v12 = vld [vmem:[%s6508_s7 + $0x20] sm:$0xff] (%p2826_p13) }
 0x5c0   : > { %5131 = vmatprep.subr.bf16.mxu0 (%p2826_p13), %v5390_v15  ;;  %5100 = vmatprep.mubr.msk.f32.mxu0 (%p2826_p13), %vm5391_vm10, %v5381_v8  ;;  %v5138_v18 = vpack.c.bf16 (%p2826_p13), %v3942_v1, %v3941_v12  ;;  %v3944_v8 = vld [vmem:[%s6508_s7 + $0x38] sm:$0xff] (%p2826_p13) }
 0x5c1   : > { %5133 = vmatpush3.bf16.msra.mxu0 (%p2826_p13), %v5132_v16  ;;  %v5141_v21 = vpack.c.bf16 (%p2826_p13), %v3944_v8, %v3943_v20 }
 0x5c2   : > { %5134 = vmatprep.subr.bf16.mxu0 (%p2826_p13), %v5390_v15 }
 0x5c5   : > { %5136 = vmatpush3.bf16.msra.mxu0 (%p2826_p13), %v5135_v9 }
 0x5c6   : > { %5137 = vmatprep.subr.bf16.mxu0 (%p2826_p13), %v5390_v15 }
 0x5c9   : > { %5139 = vmatpush3.bf16.msra.mxu0 (%p2826_p13), %v5138_v18 }
 0x5ca   : > { %5140 = vmatprep.subr.bf16.mxu0 (%p2826_p13), %v5390_v15 }
 0x5cd   : > { %5142 = vmatpush3.bf16.msra.mxu0 (%p2826_p13), %v5141_v21 }
 0x5ce   : > { %5143 = vmatprep.subr.bf16.mxu0 (%p2826_p13), %v5390_v15 }
 0x5d1   : > { %5145 = vmatpush3.bf16.msra.mxu0 (%p2826_p13), %v5144_v23 }
 0x5d2   : > { %5146 = vmatprep.subr.bf16.mxu0 (%p2826_p13), %v5390_v15 }
 0x5d5   : > { %5148 = vmatpush3.bf16.msra.mxu0 (%p2826_p13), %v5147_v26 }
 0x5d6   : > { %5149 = vmatprep.subr.bf16.mxu0 (%p2826_p13), %v5390_v15 }
 0x5d9   : > { %5151 = vmatpush3.bf16.msra.mxu0 (%p2826_p13), %v5150_v29 }
 0x5da   : > { %5152 = vmatprep.subr.bf16.mxu0 (%p2826_p13), %v5390_v15 }
 0x5dd   : > { %5154 = vmatpush3.bf16.msra.mxu0 (%p2826_p13), %v5153_v32 }
 0x692   : >> { %v3846_v55 = vpop.f32.mrb[36].mxu0  ;;  %v3919_v56 = vpop.f32.mrb[36].mxu1 }
 0x693   : >> { %v3923_v57 = vmax.f32 %v3846_v55, %v3919_v56  ;;  %v5062_v58 = vpop.f32.mrb[37].mxu0  ;;  %v5067_v19 = vpop.f32.mrb[37].mxu1 }
 0x695   : >> { %v3926_v59 = vsel %vm405_vm5, %v3923_v57, 0.0  ;;  %vm4024_vm5 = vcmask (%p2826_p13), 73728  }
 0x696   : >> { %v3927_v60 = vrot.slane %v3926_v59, 4 }
 0x698   : >> { %v3928_v62 = vadd.f32 %v3927_v60, %v3926_v59 }
 0x69a   : >> { %v3929_v63 = vrot.slane %v3928_v62, 2 }
 0x69c   : >> { %v3930_v2 = vadd.f32 %v3929_v63, %v3928_v62 }
 0x69e   : >> { %v3931_v39 = vrot.slane %v3930_v2, 1  ;;  %2828 = sbr.rel (!%p2826_p13) target bundleno = 1103 (0x44f), region = 148 }
 0x6a0   : >> { %v3932_v4 = vadd.f32 %v3931_v39, %v3930_v2 }
 0x6a2   : >> { %v3933_v5 = vadd.f32 %v3932_v4, %v3924_v61 }
 0x6a4   : >> { %3934 = vst [vmem:[#allocation4] sm:$0x1] %v3933_v5 }
 0x6ab   : > { %v3935_v34 = vld [vmem:[#allocation4] sm:$0x1] }
 0x6ac   : > { %v3936_v7 = vmul.f32 0.25, %v3935_v34 }
 0x6ae   : > { %5101 = vmatmul.mubr.f32.vlgmr.msra.gmra.mrb[0].mxu0 %v3936_v7 }
 0x781   : > { %v4020_v37 = vpop.f32.mrb[0].mxu0 }
 0x782   : > { %v4021_v38 = vadd.f32 %v4020_v37, %v3953_v35  ;;  %v5102_v0 = vpop.f32.mrb[1].mxu0 }
 0x784   : > { %4025 = vst.msk [vmem:[%s5518_s29] sm:$0x1] %vm4024_vm5, %v4021_v38 }
 0x785   : > { %5306 = shalt.err (!%p5303_p8)
}
 0x786   : > { %s5307_s29 = scalar_lea.hbm %s6456_s26, 16  ;;  %s5311_s23 = scalar_lea.hbm %s6510_s9, 32 }
 0x787   : > { %p5308_p9 = scmp.ne.s32.totalorder %s6456_s26, %s5307_s29  ;;  %p5312_p12 = scmp.lt.u32.totalorder %s6456_s26, %s6510_s9 }
 0x788   : > { %p5313_p13 = scmp.lt.u32.totalorder %s5311_s23, %s5307_s29  ;;  %p5315_p1 = scmp.lt.u32.totalorder %s5307_s29, %s6456_s26 }
 0x789   : > { %p5309_p10 = pnand %p5308_p9, %p5481_p5 }
 0x78a   : > { %p5314_p0 = por %p5313_p13, %p5312_p12 }
 0x78b   : > { %p5310_p11 = pneg %p5309_p10 }
 0x78c   : > { %p5316_p2 = por %p5315_p1, %p5314_p0 }
 0x78e   : > { %p5317_p3 = pnand %p5316_p2, %p5310_p11 }
 0x790   : > { %5320 = shalt.err (!%p5317_p3)
}
 0x791   : > { %5219 = dma.vmem_to_hbm [thread:$0]  (%p5481_p5), %s6458_s21, 16, %s6456_s26, %s4027_s16  }
 0x792 PF: > { %p5225_p4 = scmp.ge.s32.totalorder %s5367_s12, 2  ;;  %s4051_s27 = sand.u32 1, %s5355_s30  }
 0x793   : > { %s4052_s13 = scalar_lea.sflag [#allocation6], %s4051_s27 }
 0x794   : > { %p5222_p7 = pnand %p5225_p4, %p5485_p6 }
 0x796   : > { %5350 = dma.done.wait (!%p5222_p7), %s4052_s13, 16  }
 0x797   : > { %5352 = vsyncadd (!%p5222_p7), %s4052_s13, 4294967280  ;;  %p19_p8 = scmp.ge.s32.totalorder %s5468_s15, 4   ;;  %s6515_s30 = smov %s5359_s10 }
 0x798   : > { %s6516_s10 = smov %s5363_s11  ;;  %s6517_s11 = smov %s5479_s18 }
 0x799   : > { %s6518_s12 = smov %s5468_s15  ;;  %21 = sbr.rel (!%p19_p8) target bundleno = 3 (0x3), region = 159 }
 0x7a0   :  { %4056 = vsyncpa [#allocation6], 1 }
 0x7a1   :  { %4058 = vsyncpa [#allocation6 + $0x1], 1 }

</bundles_post_ra>
